<compile_context>
chip_gen: v6e
topology: v6e:2x2x1
jax: 0.10.0
libtpu: 0.0.40
codegen_flags: <defaults>
</compile_context>

<pallas_src>
import math
import numpy as np
import jax
import jax.numpy as jnp
from jax.experimental import pallas as pl
from jax.experimental.pallas import tpu as pltpu  # noqa: F401  (TPU backend)

# ---- small config consistent with the module (d_model divisible by num_heads) ----
VOCAB = 32      # vocab_size
D = 32          # d_model
H = 4           # num_heads
HD = D // H     # head dim
E = 4           # num_experts
L = 2           # num_layers
FF = 4 * D      # dim_feedforward = 4 * d_model
B = 2           # batch
S = 8           # seq len
N = B * S       # flattened rows
EPS = 1e-5      # LayerNorm eps (PyTorch default)

BF16 = jnp.bfloat16


def _dot(a, b):
    """MXU matmul: bf16 operands, f32 accumulation."""
    return jnp.dot(a.astype(BF16), b.astype(BF16), preferred_element_type=jnp.float32)


def _layer_norm(x, g, b):
    mu = jnp.mean(x, axis=-1, keepdims=True)
    var = jnp.mean((x - mu) ** 2, axis=-1, keepdims=True)
    return (x - mu) * jax.lax.rsqrt(var + EPS) * g + b


# ----------------------------- fused Pallas kernel ------------------------------
def fused_forward_kernel(
        x_ref, bias_ref,
        wqkv_ref, bqkv_ref, wo_ref, bo_ref, g1_ref, b1_ref,
        w1_ref, bf1_ref, w2_ref, bf2_ref, g2_ref, b2_ref,
        wg_ref, bg_ref, w1e_ref, b1e_ref, expand_ref, w2e_ref, b2e_ref,
        wf_ref, bf_ref,
        o_ref):
    x = x_ref[...]              # (N, D)  rows = flattened (batch, seq)
    attn_bias = bias_ref[...]   # (N, N)  block-diagonal additive mask (0 / -1e9)
    scale = 1.0 / math.sqrt(HD)

    # ---------------- transformer encoder layers (static unroll) ----------------
    for l in range(L):
        # --- multi-head self attention (post-norm, batch_first) ---
        qkv = _dot(x, wqkv_ref[l]) + bqkv_ref[l]                 # (N, 3D)
        q = qkv[:, 0:D]
        k = qkv[:, D:2 * D]
        v = qkv[:, 2 * D:3 * D]
        wo = wo_ref[l]                                           # (D, D)
        attn = jnp.zeros((N, D), jnp.float32)
        for h in range(H):
            sl = slice(h * HD, (h + 1) * HD)
            s = _dot(q[:, sl], k[:, sl].T) * scale + attn_bias   # (N, N)
            s = s - jnp.max(s, axis=-1, keepdims=True)
            p = jnp.exp(s)
            p = p / jnp.sum(p, axis=-1, keepdims=True)
            head = _dot(p, v[:, sl])                             # (N, HD)
            attn = attn + _dot(head, wo[sl, :])                  # fold W_o, no concat
        x = _layer_norm(x + attn + bo_ref[l], g1_ref[l], b1_ref[l])

        # --- feed forward (ReLU, PyTorch default activation) ---
        hid = jnp.maximum(_dot(x, w1_ref[l]) + bf1_ref[l], 0.0)
        ff = _dot(hid, w2_ref[l]) + bf2_ref[l]
        x = _layer_norm(x + ff, g2_ref[l], b2_ref[l])

    # ---------------- Mixture-of-Experts (all experts fused) --------------------
    gate = _dot(x, wg_ref[...]) + bg_ref[...]                    # (N, E)
    gate = gate - jnp.max(gate, axis=-1, keepdims=True)
    gate = jnp.exp(gate)
    gate = gate / jnp.sum(gate, axis=-1, keepdims=True)

    h_all = _dot(x, w1e_ref[...]) + b1e_ref[...]                 # (N, E*FF)
    # exact (erf) GELU — matches nn.GELU() default
    h_all = 0.5 * h_all * (1.0 + jax.lax.erf(h_all / math.sqrt(2.0)))
    # broadcast gate over each expert's FF block via a 0/1 expansion matmul
    gate_wide = jnp.dot(gate, expand_ref[...],
                        preferred_element_type=jnp.float32)      # (N, E*FF)
    moe = _dot(h_all * gate_wide, w2e_ref[...])                  # (N, D)
    moe = moe + jnp.dot(gate, b2e_ref[...], preferred_element_type=jnp.float32)

    # ---------------- final fc_out ----------------------------------------------
    o_ref[...] = _dot(moe, wf_ref[...]) + bf_ref[...]


# ------------------------------ wrapper -----------------------------------------
def forward(src, params):
    # embedding gather + positional encoding (glue, plain JAX)
    x = params["emb"][src] * math.sqrt(D) + params["pe"][None, :S, :]
    x = x.reshape(N, D).astype(jnp.float32)
    args = (x, params["attn_bias"]) + params["layers_stacked"] + params["moe_fused"]
    out = pl.pallas_call(
        fused_forward_kernel,
        out_shape=jax.ShapeDtypeStruct((N, D), jnp.float32),
    )(*args)
    return out.reshape(B, S, D)


def positional_encoding(max_len, d_model):
    pos = np.arange(max_len, dtype=np.float32)[:, None]
    div = np.exp(np.arange(0, d_model, 2, dtype=np.float32) * (-math.log(10000.0) / d_model))
    pe = np.zeros((max_len, d_model), np.float32)
    pe[:, 0::2] = np.sin(pos * div)
    pe[:, 1::2] = np.cos(pos * div)
    return jnp.asarray(pe)


# ------------------------------ pure-JAX reference -------------------------------
def _ln(x, g, b):
    mu = jnp.mean(x, axis=-1, keepdims=True)
    var = jnp.mean((x - mu) ** 2, axis=-1, keepdims=True)
    return (x - mu) * jax.lax.rsqrt(var + EPS) * g + b


def ref_forward(src, params):
    x = params["emb"][src] * math.sqrt(D) + params["pe"][None, :S, :]
    for (wqkv, bqkv, wo, bo, g1, b1, w1, bf1, w2, bf2, g2, b2) in params["layers"]:
        qkv = x @ wqkv + bqkv
        q, k, v = jnp.split(qkv, 3, axis=-1)
        qh = q.reshape(B, S, H, HD).transpose(0, 2, 1, 3)
        kh = k.reshape(B, S, H, HD).transpose(0, 2, 1, 3)
        vh = v.reshape(B, S, H, HD).transpose(0, 2, 1, 3)
        sc = (qh @ kh.transpose(0, 1, 3, 2)) / math.sqrt(HD)
        p = jax.nn.softmax(sc, axis=-1)
        a = (p @ vh).transpose(0, 2, 1, 3).reshape(B, S, D)
        x = _ln(x + a @ wo + bo, g1, b1)
        x = _ln(x + jnp.maximum(x @ w1 + bf1, 0.0) @ w2 + bf2, g2, b2)
    wg, bg, we1, be1, we2, be2, wf, bf = params["moe"]
    gate = jax.nn.softmax(x @ wg + bg, axis=-1)
    out = jnp.zeros_like(x)
    for e in range(E):
        h = x @ we1[e] + be1[e]
        h = 0.5 * h * (1.0 + jax.lax.erf(h / math.sqrt(2.0)))
        out = out + gate[..., e:e + 1] * (h @ we2[e] + be2[e])
    return out @ wf + bf


# ------------------------------ parameter init -----------------------------------
def init_params(key):
    keys = iter(jax.random.split(key, 64))

    def nrm(shape, std=0.05):
        return jax.random.normal(next(keys), shape, jnp.float32) * std

    emb = jax.random.normal(next(keys), (VOCAB, D), jnp.float32) * 0.1
    pe = positional_encoding(S, D)

    layers = []
    for _ in range(L):
        layers.append((
            nrm((D, 3 * D)), nrm((1, 3 * D)),          # in_proj  W, b
            nrm((D, D)),     nrm((1, D)),              # out_proj W, b
            jnp.ones((1, D), jnp.float32), jnp.zeros((1, D), jnp.float32),   # LN1
            nrm((D, FF)),    nrm((1, FF)),             # FFN linear1
            nrm((FF, D)),    nrm((1, D)),              # FFN linear2
            jnp.ones((1, D), jnp.float32), jnp.zeros((1, D), jnp.float32),   # LN2
        ))

    moe = (
        nrm((D, E)),        nrm((1, E)),               # gate
        nrm((E, D, FF)),    nrm((E, 1, FF)),           # expert linear1 (stacked)
        nrm((E, FF, D)),    nrm((E, 1, D)),            # expert linear2 (stacked)
        nrm((D, D)),        nrm((1, D)),               # fc_out
    )

    # --- stacked / fused views consumed by the single Pallas kernel ---
    layers_stacked = tuple(jnp.stack([lw[i] for lw in layers], axis=0)
                           for i in range(12))         # each (L, ...)

    wg, bg, we1, be1, we2, be2, wf, bf = moe
    w1e = we1.transpose(1, 0, 2).reshape(D, E * FF)    # column block e = W1_e
    b1e = be1.transpose(1, 0, 2).reshape(1, E * FF)
    expand = jnp.asarray(np.kron(np.eye(E, dtype=np.float32),
                                 np.ones((1, FF), np.float32)))   # (E, E*FF) 0/1
    w2e = we2.reshape(E * FF, D)                       # row block e = W2_e
    b2e = be2.reshape(E, D)
    moe_fused = (wg, bg, w1e, b1e, expand, w2e, b2e, wf, bf)

    # block-diagonal additive mask so the flattened (B*S) rows only attend
    # within their own batch element
    blk = np.kron(np.eye(B, dtype=np.float32), np.ones((S, S), np.float32))
    attn_bias = jnp.asarray((1.0 - blk) * -1e9)

    return {"emb": emb, "pe": pe, "layers": layers, "moe": moe,
            "layers_stacked": layers_stacked, "moe_fused": moe_fused,
            "attn_bias": attn_bias}


# ------------------------------ main ----------------------------------------------
if __name__ == "__main__":
    params = init_params(jax.random.PRNGKey(0))
    src = jax.random.randint(jax.random.PRNGKey(1), (B, S), 0, VOCAB)

    out = jax.block_until_ready(forward(src, params))

    ref = ref_forward(src, params)
    err = float(jnp.max(jnp.abs(out - ref)))
    assert out.shape == (B, S, D) and err < 5e-2, f"mismatch: max abs err {err}"

    print("KERNEL_OK")
</pallas_src>

<mosaic_0001>
module attributes {stable_mosaic.version = 11 : i64} {
  func.func @fused_forward_kernel(%arg0: memref<16x32xf32, #tpu.memory_space<vmem>>, %arg1: memref<16x16xf32, #tpu.memory_space<vmem>>, %arg2: memref<2x32x96xf32, #tpu.memory_space<vmem>>, %arg3: memref<2x1x96xf32, #tpu.memory_space<vmem>>, %arg4: memref<2x32x32xf32, #tpu.memory_space<vmem>>, %arg5: memref<2x1x32xf32, #tpu.memory_space<vmem>>, %arg6: memref<2x1x32xf32, #tpu.memory_space<vmem>>, %arg7: memref<2x1x32xf32, #tpu.memory_space<vmem>>, %arg8: memref<2x32x128xf32, #tpu.memory_space<vmem>>, %arg9: memref<2x1x128xf32, #tpu.memory_space<vmem>>, %arg10: memref<2x128x32xf32, #tpu.memory_space<vmem>>, %arg11: memref<2x1x32xf32, #tpu.memory_space<vmem>>, %arg12: memref<2x1x32xf32, #tpu.memory_space<vmem>>, %arg13: memref<2x1x32xf32, #tpu.memory_space<vmem>>, %arg14: memref<32x4xf32, #tpu.memory_space<vmem>>, %arg15: memref<1x4xf32, #tpu.memory_space<vmem>>, %arg16: memref<32x512xf32, #tpu.memory_space<vmem>>, %arg17: memref<1x512xf32, #tpu.memory_space<vmem>>, %arg18: memref<4x512xf32, #tpu.memory_space<vmem>>, %arg19: memref<512x32xf32, #tpu.memory_space<vmem>>, %arg20: memref<4x32xf32, #tpu.memory_space<vmem>>, %arg21: memref<32x32xf32, #tpu.memory_space<vmem>>, %arg22: memref<1x32xf32, #tpu.memory_space<vmem>>, %arg23: memref<16x32xf32, #tpu.memory_space<vmem>>) attributes {dimension_semantics = [], scalar_prefetch = 0 : i64, scratch_operands = 0 : i64, tpu.core_type = #tpu.core_type<tc>} {
    %c0 = arith.constant 0 : index
    %c0_0 = arith.constant 0 : index
    %0 = vector.load %arg0[%c0, %c0_0] : memref<16x32xf32, #tpu.memory_space<vmem>>, vector<16x32xf32>
    %c0_1 = arith.constant 0 : index
    %c0_2 = arith.constant 0 : index
    %1 = vector.load %arg1[%c0_1, %c0_2] : memref<16x16xf32, #tpu.memory_space<vmem>>, vector<16x16xf32>
    %c0_3 = arith.constant 0 : index
    %c0_4 = arith.constant 0 : index
    %c0_5 = arith.constant 0 : index
    %2 = vector.load %arg2[%c0_3, %c0_4, %c0_5] : memref<2x32x96xf32, #tpu.memory_space<vmem>>, vector<1x32x96xf32>
    %3 = vector.shape_cast %2 : vector<1x32x96xf32> to vector<32x96xf32>
    %4 = arith.truncf %0 : vector<16x32xf32> to vector<16x32xbf16>
    %5 = arith.truncf %3 : vector<32x96xf32> to vector<32x96xbf16>
    %cst = arith.constant dense<0.000000e+00> : vector<16x96xf32>
    %6 = tpu.matmul %4, %5, %cst {dimension_numbers = #tpu.dot_dimension_numbers<[1], [0], [0], [1], [0, 0, 1, 1], [], []>} : vector<16x32xbf16>, vector<32x96xbf16>, vector<16x96xf32> -> vector<16x96xf32>
    %c0_6 = arith.constant 0 : index
    %c0_7 = arith.constant 0 : index
    %c0_8 = arith.constant 0 : index
    %7 = vector.load %arg3[%c0_6, %c0_7, %c0_8] : memref<2x1x96xf32, #tpu.memory_space<vmem>>, vector<1x1x96xf32>
    %8 = vector.shape_cast %7 : vector<1x1x96xf32> to vector<1x96xf32>
    %9 = vector.broadcast %8 : vector<1x96xf32> to vector<16x96xf32>
    %10 = arith.addf %6, %9 : vector<16x96xf32>
    %11 = vector.extract_strided_slice %10 {offsets = [0, 0], sizes = [16, 32], strides = [1, 1]} : vector<16x96xf32> to vector<16x32xf32>
    %12 = vector.extract_strided_slice %10 {offsets = [0, 32], sizes = [16, 32], strides = [1, 1]} : vector<16x96xf32> to vector<16x32xf32>
    %13 = vector.extract_strided_slice %10 {offsets = [0, 64], sizes = [16, 32], strides = [1, 1]} : vector<16x96xf32> to vector<16x32xf32>
    %c0_9 = arith.constant 0 : index
    %c0_10 = arith.constant 0 : index
    %c0_11 = arith.constant 0 : index
    %14 = vector.load %arg4[%c0_9, %c0_10, %c0_11] : memref<2x32x32xf32, #tpu.memory_space<vmem>>, vector<1x32x32xf32>
    %15 = vector.shape_cast %14 : vector<1x32x32xf32> to vector<32x32xf32>
    %cst_12 = arith.constant 0.000000e+00 : f32
    %16 = vector.broadcast %cst_12 : f32 to vector<16x32xf32>
    %17 = vector.extract_strided_slice %11 {offsets = [0, 0], sizes = [16, 8], strides = [1, 1]} : vector<16x32xf32> to vector<16x8xf32>
    %18 = vector.extract_strided_slice %12 {offsets = [0, 0], sizes = [16, 8], strides = [1, 1]} : vector<16x32xf32> to vector<16x8xf32>
    %19 = tpu.transpose %18, [1, 0] : vector<16x8xf32> -> vector<8x16xf32>
    %20 = arith.truncf %17 : vector<16x8xf32> to vector<16x8xbf16>
    %21 = arith.truncf %19 : vector<8x16xf32> to vector<8x16xbf16>
    %cst_13 = arith.constant dense<0.000000e+00> : vector<16x16xf32>
    %22 = tpu.matmul %20, %21, %cst_13 {dimension_numbers = #tpu.dot_dimension_numbers<[1], [0], [0], [1], [0, 0, 1, 1], [], []>} : vector<16x8xbf16>, vector<8x16xbf16>, vector<16x16xf32> -> vector<16x16xf32>
    %cst_14 = arith.constant 0.353553385 : f32
    %23 = vector.broadcast %cst_14 : f32 to vector<16x16xf32>
    %24 = arith.mulf %22, %23 : vector<16x16xf32>
    %25 = arith.addf %24, %1 : vector<16x16xf32>
    %cst_15 = arith.constant dense<0xFF800000> : vector<16xf32>
    %26 = vector.multi_reduction <maximumf>, %25, %cst_15 [1] : vector<16x16xf32> to vector<16xf32>
    %27 = vector.shape_cast %26 : vector<16xf32> to vector<16x1xf32>
    %28 = vector.broadcast %27 : vector<16x1xf32> to vector<16x16xf32>
    %29 = arith.subf %25, %28 : vector<16x16xf32>
    %30 = math.exp %29 : vector<16x16xf32>
    %cst_16 = arith.constant dense<0.000000e+00> : vector<16xf32>
    %31 = vector.multi_reduction <add>, %30, %cst_16 [1] : vector<16x16xf32> to vector<16xf32>
    %32 = vector.shape_cast %31 : vector<16xf32> to vector<16x1xf32>
    %33 = vector.broadcast %32 : vector<16x1xf32> to vector<16x16xf32>
    %34 = arith.divf %30, %33 : vector<16x16xf32>
    %35 = vector.extract_strided_slice %13 {offsets = [0, 0], sizes = [16, 8], strides = [1, 1]} : vector<16x32xf32> to vector<16x8xf32>
    %36 = arith.truncf %34 : vector<16x16xf32> to vector<16x16xbf16>
    %37 = arith.truncf %35 : vector<16x8xf32> to vector<16x8xbf16>
    %cst_17 = arith.constant dense<0.000000e+00> : vector<16x8xf32>
    %38 = tpu.matmul %36, %37, %cst_17 {dimension_numbers = #tpu.dot_dimension_numbers<[1], [0], [0], [1], [0, 0, 1, 1], [], []>} : vector<16x16xbf16>, vector<16x8xbf16>, vector<16x8xf32> -> vector<16x8xf32>
    %39 = vector.extract_strided_slice %15 {offsets = [0, 0], sizes = [8, 32], strides = [1, 1]} : vector<32x32xf32> to vector<8x32xf32>
    %40 = arith.truncf %38 : vector<16x8xf32> to vector<16x8xbf16>
    %41 = arith.truncf %39 : vector<8x32xf32> to vector<8x32xbf16>
    %cst_18 = arith.constant dense<0.000000e+00> : vector<16x32xf32>
    %42 = tpu.matmul %40, %41, %cst_18 {dimension_numbers = #tpu.dot_dimension_numbers<[1], [0], [0], [1], [0, 0, 1, 1], [], []>} : vector<16x8xbf16>, vector<8x32xbf16>, vector<16x32xf32> -> vector<16x32xf32>
    %43 = arith.addf %16, %42 : vector<16x32xf32>
    %44 = vector.extract_strided_slice %11 {offsets = [0, 8], sizes = [16, 8], strides = [1, 1]} : vector<16x32xf32> to vector<16x8xf32>
    %45 = vector.extract_strided_slice %12 {offsets = [0, 8], sizes = [16, 8], strides = [1, 1]} : vector<16x32xf32> to vector<16x8xf32>
    %46 = tpu.transpose %45, [1, 0] : vector<16x8xf32> -> vector<8x16xf32>
    %47 = arith.truncf %44 : vector<16x8xf32> to vector<16x8xbf16>
    %48 = arith.truncf %46 : vector<8x16xf32> to vector<8x16xbf16>
    %cst_19 = arith.constant dense<0.000000e+00> : vector<16x16xf32>
    %49 = tpu.matmul %47, %48, %cst_19 {dimension_numbers = #tpu.dot_dimension_numbers<[1], [0], [0], [1], [0, 0, 1, 1], [], []>} : vector<16x8xbf16>, vector<8x16xbf16>, vector<16x16xf32> -> vector<16x16xf32>
    %cst_20 = arith.constant 0.353553385 : f32
    %50 = vector.broadcast %cst_20 : f32 to vector<16x16xf32>
    %51 = arith.mulf %49, %50 : vector<16x16xf32>
    %52 = arith.addf %51, %1 : vector<16x16xf32>
    %cst_21 = arith.constant dense<0xFF800000> : vector<16xf32>
    %53 = vector.multi_reduction <maximumf>, %52, %cst_21 [1] : vector<16x16xf32> to vector<16xf32>
    %54 = vector.shape_cast %53 : vector<16xf32> to vector<16x1xf32>
    %55 = vector.broadcast %54 : vector<16x1xf32> to vector<16x16xf32>
    %56 = arith.subf %52, %55 : vector<16x16xf32>
    %57 = math.exp %56 : vector<16x16xf32>
    %cst_22 = arith.constant dense<0.000000e+00> : vector<16xf32>
    %58 = vector.multi_reduction <add>, %57, %cst_22 [1] : vector<16x16xf32> to vector<16xf32>
    %59 = vector.shape_cast %58 : vector<16xf32> to vector<16x1xf32>
    %60 = vector.broadcast %59 : vector<16x1xf32> to vector<16x16xf32>
    %61 = arith.divf %57, %60 : vector<16x16xf32>
    %62 = vector.extract_strided_slice %13 {offsets = [0, 8], sizes = [16, 8], strides = [1, 1]} : vector<16x32xf32> to vector<16x8xf32>
    %63 = arith.truncf %61 : vector<16x16xf32> to vector<16x16xbf16>
    %64 = arith.truncf %62 : vector<16x8xf32> to vector<16x8xbf16>
    %cst_23 = arith.constant dense<0.000000e+00> : vector<16x8xf32>
    %65 = tpu.matmul %63, %64, %cst_23 {dimension_numbers = #tpu.dot_dimension_numbers<[1], [0], [0], [1], [0, 0, 1, 1], [], []>} : vector<16x16xbf16>, vector<16x8xbf16>, vector<16x8xf32> -> vector<16x8xf32>
    %66 = vector.extract_strided_slice %15 {offsets = [8, 0], sizes = [8, 32], strides = [1, 1]} : vector<32x32xf32> to vector<8x32xf32>
    %67 = arith.truncf %65 : vector<16x8xf32> to vector<16x8xbf16>
    %68 = arith.truncf %66 : vector<8x32xf32> to vector<8x32xbf16>
    %cst_24 = arith.constant dense<0.000000e+00> : vector<16x32xf32>
    %69 = tpu.matmul %67, %68, %cst_24 {dimension_numbers = #tpu.dot_dimension_numbers<[1], [0], [0], [1], [0, 0, 1, 1], [], []>} : vector<16x8xbf16>, vector<8x32xbf16>, vector<16x32xf32> -> vector<16x32xf32>
    %70 = arith.addf %43, %69 : vector<16x32xf32>
    %71 = vector.extract_strided_slice %11 {offsets = [0, 16], sizes = [16, 8], strides = [1, 1]} : vector<16x32xf32> to vector<16x8xf32>
    %72 = vector.extract_strided_slice %12 {offsets = [0, 16], sizes = [16, 8], strides = [1, 1]} : vector<16x32xf32> to vector<16x8xf32>
    %73 = tpu.transpose %72, [1, 0] : vector<16x8xf32> -> vector<8x16xf32>
    %74 = arith.truncf %71 : vector<16x8xf32> to vector<16x8xbf16>
    %75 = arith.truncf %73 : vector<8x16xf32> to vector<8x16xbf16>
    %cst_25 = arith.constant dense<0.000000e+00> : vector<16x16xf32>
    %76 = tpu.matmul %74, %75, %cst_25 {dimension_numbers = #tpu.dot_dimension_numbers<[1], [0], [0], [1], [0, 0, 1, 1], [], []>} : vector<16x8xbf16>, vector<8x16xbf16>, vector<16x16xf32> -> vector<16x16xf32>
    %cst_26 = arith.constant 0.353553385 : f32
    %77 = vector.broadcast %cst_26 : f32 to vector<16x16xf32>
    %78 = arith.mulf %76, %77 : vector<16x16xf32>
    %79 = arith.addf %78, %1 : vector<16x16xf32>
    %cst_27 = arith.constant dense<0xFF800000> : vector<16xf32>
    %80 = vector.multi_reduction <maximumf>, %79, %cst_27 [1] : vector<16x16xf32> to vector<16xf32>
    %81 = vector.shape_cast %80 : vector<16xf32> to vector<16x1xf32>
    %82 = vector.broadcast %81 : vector<16x1xf32> to vector<16x16xf32>
    %83 = arith.subf %79, %82 : vector<16x16xf32>
    %84 = math.exp %83 : vector<16x16xf32>
    %cst_28 = arith.constant dense<0.000000e+00> : vector<16xf32>
    %85 = vector.multi_reduction <add>, %84, %cst_28 [1] : vector<16x16xf32> to vector<16xf32>
    %86 = vector.shape_cast %85 : vector<16xf32> to vector<16x1xf32>
    %87 = vector.broadcast %86 : vector<16x1xf32> to vector<16x16xf32>
    %88 = arith.divf %84, %87 : vector<16x16xf32>
    %89 = vector.extract_strided_slice %13 {offsets = [0, 16], sizes = [16, 8], strides = [1, 1]} : vector<16x32xf32> to vector<16x8xf32>
    %90 = arith.truncf %88 : vector<16x16xf32> to vector<16x16xbf16>
    %91 = arith.truncf %89 : vector<16x8xf32> to vector<16x8xbf16>
    %cst_29 = arith.constant dense<0.000000e+00> : vector<16x8xf32>
    %92 = tpu.matmul %90, %91, %cst_29 {dimension_numbers = #tpu.dot_dimension_numbers<[1], [0], [0], [1], [0, 0, 1, 1], [], []>} : vector<16x16xbf16>, vector<16x8xbf16>, vector<16x8xf32> -> vector<16x8xf32>
    %93 = vector.extract_strided_slice %15 {offsets = [16, 0], sizes = [8, 32], strides = [1, 1]} : vector<32x32xf32> to vector<8x32xf32>
    %94 = arith.truncf %92 : vector<16x8xf32> to vector<16x8xbf16>
    %95 = arith.truncf %93 : vector<8x32xf32> to vector<8x32xbf16>
    %cst_30 = arith.constant dense<0.000000e+00> : vector<16x32xf32>
    %96 = tpu.matmul %94, %95, %cst_30 {dimension_numbers = #tpu.dot_dimension_numbers<[1], [0], [0], [1], [0, 0, 1, 1], [], []>} : vector<16x8xbf16>, vector<8x32xbf16>, vector<16x32xf32> -> vector<16x32xf32>
    %97 = arith.addf %70, %96 : vector<16x32xf32>
    %98 = vector.extract_strided_slice %11 {offsets = [0, 24], sizes = [16, 8], strides = [1, 1]} : vector<16x32xf32> to vector<16x8xf32>
    %99 = vector.extract_strided_slice %12 {offsets = [0, 24], sizes = [16, 8], strides = [1, 1]} : vector<16x32xf32> to vector<16x8xf32>
    %100 = tpu.transpose %99, [1, 0] : vector<16x8xf32> -> vector<8x16xf32>
    %101 = arith.truncf %98 : vector<16x8xf32> to vector<16x8xbf16>
    %102 = arith.truncf %100 : vector<8x16xf32> to vector<8x16xbf16>
    %cst_31 = arith.constant dense<0.000000e+00> : vector<16x16xf32>
    %103 = tpu.matmul %101, %102, %cst_31 {dimension_numbers = #tpu.dot_dimension_numbers<[1], [0], [0], [1], [0, 0, 1, 1], [], []>} : vector<16x8xbf16>, vector<8x16xbf16>, vector<16x16xf32> -> vector<16x16xf32>
    %cst_32 = arith.constant 0.353553385 : f32
    %104 = vector.broadcast %cst_32 : f32 to vector<16x16xf32>
    %105 = arith.mulf %103, %104 : vector<16x16xf32>
    %106 = arith.addf %105, %1 : vector<16x16xf32>
    %cst_33 = arith.constant dense<0xFF800000> : vector<16xf32>
    %107 = vector.multi_reduction <maximumf>, %106, %cst_33 [1] : vector<16x16xf32> to vector<16xf32>
    %108 = vector.shape_cast %107 : vector<16xf32> to vector<16x1xf32>
    %109 = vector.broadcast %108 : vector<16x1xf32> to vector<16x16xf32>
    %110 = arith.subf %106, %109 : vector<16x16xf32>
    %111 = math.exp %110 : vector<16x16xf32>
    %cst_34 = arith.constant dense<0.000000e+00> : vector<16xf32>
    %112 = vector.multi_reduction <add>, %111, %cst_34 [1] : vector<16x16xf32> to vector<16xf32>
    %113 = vector.shape_cast %112 : vector<16xf32> to vector<16x1xf32>
    %114 = vector.broadcast %113 : vector<16x1xf32> to vector<16x16xf32>
    %115 = arith.divf %111, %114 : vector<16x16xf32>
    %116 = vector.extract_strided_slice %13 {offsets = [0, 24], sizes = [16, 8], strides = [1, 1]} : vector<16x32xf32> to vector<16x8xf32>
    %117 = arith.truncf %115 : vector<16x16xf32> to vector<16x16xbf16>
    %118 = arith.truncf %116 : vector<16x8xf32> to vector<16x8xbf16>
    %cst_35 = arith.constant dense<0.000000e+00> : vector<16x8xf32>
    %119 = tpu.matmul %117, %118, %cst_35 {dimension_numbers = #tpu.dot_dimension_numbers<[1], [0], [0], [1], [0, 0, 1, 1], [], []>} : vector<16x16xbf16>, vector<16x8xbf16>, vector<16x8xf32> -> vector<16x8xf32>
    %120 = vector.extract_strided_slice %15 {offsets = [24, 0], sizes = [8, 32], strides = [1, 1]} : vector<32x32xf32> to vector<8x32xf32>
    %121 = arith.truncf %119 : vector<16x8xf32> to vector<16x8xbf16>
    %122 = arith.truncf %120 : vector<8x32xf32> to vector<8x32xbf16>
    %cst_36 = arith.constant dense<0.000000e+00> : vector<16x32xf32>
    %123 = tpu.matmul %121, %122, %cst_36 {dimension_numbers = #tpu.dot_dimension_numbers<[1], [0], [0], [1], [0, 0, 1, 1], [], []>} : vector<16x8xbf16>, vector<8x32xbf16>, vector<16x32xf32> -> vector<16x32xf32>
    %124 = arith.addf %97, %123 : vector<16x32xf32>
    %125 = arith.addf %0, %124 : vector<16x32xf32>
    %c0_37 = arith.constant 0 : index
    %c0_38 = arith.constant 0 : index
    %c0_39 = arith.constant 0 : index
    %126 = vector.load %arg5[%c0_37, %c0_38, %c0_39] : memref<2x1x32xf32, #tpu.memory_space<vmem>>, vector<1x1x32xf32>
    %127 = vector.shape_cast %126 : vector<1x1x32xf32> to vector<1x32xf32>
    %128 = vector.broadcast %127 : vector<1x32xf32> to vector<16x32xf32>
    %129 = arith.addf %125, %128 : vector<16x32xf32>
    %c0_40 = arith.constant 0 : index
    %c0_41 = arith.constant 0 : index
    %c0_42 = arith.constant 0 : index
    %130 = vector.load %arg6[%c0_40, %c0_41, %c0_42] : memref<2x1x32xf32, #tpu.memory_space<vmem>>, vector<1x1x32xf32>
    %131 = vector.shape_cast %130 : vector<1x1x32xf32> to vector<1x32xf32>
    %c0_43 = arith.constant 0 : index
    %c0_44 = arith.constant 0 : index
    %c0_45 = arith.constant 0 : index
    %132 = vector.load %arg7[%c0_43, %c0_44, %c0_45] : memref<2x1x32xf32, #tpu.memory_space<vmem>>, vector<1x1x32xf32>
    %133 = vector.shape_cast %132 : vector<1x1x32xf32> to vector<1x32xf32>
    %cst_46 = arith.constant dense<0.000000e+00> : vector<16xf32>
    %134 = vector.multi_reduction <add>, %129, %cst_46 [1] : vector<16x32xf32> to vector<16xf32>
    %135 = vector.shape_cast %134 : vector<16xf32> to vector<16x1xf32>
    %cst_47 = arith.constant 3.200000e+01 : f32
    %136 = vector.broadcast %cst_47 : f32 to vector<16x1xf32>
    %137 = arith.divf %135, %136 : vector<16x1xf32>
    %138 = vector.broadcast %137 : vector<16x1xf32> to vector<16x32xf32>
    %139 = arith.subf %129, %138 : vector<16x32xf32>
    %140 = arith.mulf %139, %139 : vector<16x32xf32>
    %cst_48 = arith.constant dense<0.000000e+00> : vector<16xf32>
    %141 = vector.multi_reduction <add>, %140, %cst_48 [1] : vector<16x32xf32> to vector<16xf32>
    %142 = vector.shape_cast %141 : vector<16xf32> to vector<16x1xf32>
    %cst_49 = arith.constant 3.200000e+01 : f32
    %143 = vector.broadcast %cst_49 : f32 to vector<16x1xf32>
    %144 = arith.divf %142, %143 : vector<16x1xf32>
    %145 = vector.broadcast %137 : vector<16x1xf32> to vector<16x32xf32>
    %146 = arith.subf %129, %145 : vector<16x32xf32>
    %cst_50 = arith.constant 9.99999974E-6 : f32
    %147 = vector.broadcast %cst_50 : f32 to vector<16x1xf32>
    %148 = arith.addf %144, %147 : vector<16x1xf32>
    %149 = math.rsqrt %148 : vector<16x1xf32>
    %150 = vector.broadcast %149 : vector<16x1xf32> to vector<16x32xf32>
    %151 = arith.mulf %146, %150 : vector<16x32xf32>
    %152 = vector.broadcast %131 : vector<1x32xf32> to vector<16x32xf32>
    %153 = arith.mulf %151, %152 : vector<16x32xf32>
    %154 = vector.broadcast %133 : vector<1x32xf32> to vector<16x32xf32>
    %155 = arith.addf %153, %154 : vector<16x32xf32>
    %c0_51 = arith.constant 0 : index
    %c0_52 = arith.constant 0 : index
    %c0_53 = arith.constant 0 : index
    %156 = vector.load %arg8[%c0_51, %c0_52, %c0_53] : memref<2x32x128xf32, #tpu.memory_space<vmem>>, vector<1x32x128xf32>
    %157 = vector.shape_cast %156 : vector<1x32x128xf32> to vector<32x128xf32>
    %158 = arith.truncf %155 : vector<16x32xf32> to vector<16x32xbf16>
    %159 = arith.truncf %157 : vector<32x128xf32> to vector<32x128xbf16>
    %cst_54 = arith.constant dense<0.000000e+00> : vector<16x128xf32>
    %160 = tpu.matmul %158, %159, %cst_54 {dimension_numbers = #tpu.dot_dimension_numbers<[1], [0], [0], [1], [0, 0, 1, 1], [], []>} : vector<16x32xbf16>, vector<32x128xbf16>, vector<16x128xf32> -> vector<16x128xf32>
    %c0_55 = arith.constant 0 : index
    %c0_56 = arith.constant 0 : index
    %c0_57 = arith.constant 0 : index
    %161 = vector.load %arg9[%c0_55, %c0_56, %c0_57] : memref<2x1x128xf32, #tpu.memory_space<vmem>>, vector<1x1x128xf32>
    %162 = vector.shape_cast %161 : vector<1x1x128xf32> to vector<1x128xf32>
    %163 = vector.broadcast %162 : vector<1x128xf32> to vector<16x128xf32>
    %164 = arith.addf %160, %163 : vector<16x128xf32>
    %cst_58 = arith.constant 0.000000e+00 : f32
    %165 = vector.broadcast %cst_58 : f32 to vector<16x128xf32>
    %166 = arith.maximumf %164, %165 : vector<16x128xf32>
    %c0_59 = arith.constant 0 : index
    %c0_60 = arith.constant 0 : index
    %c0_61 = arith.constant 0 : index
    %167 = vector.load %arg10[%c0_59, %c0_60, %c0_61] : memref<2x128x32xf32, #tpu.memory_space<vmem>>, vector<1x128x32xf32>
    %168 = vector.shape_cast %167 : vector<1x128x32xf32> to vector<128x32xf32>
    %169 = arith.truncf %166 : vector<16x128xf32> to vector<16x128xbf16>
    %170 = arith.truncf %168 : vector<128x32xf32> to vector<128x32xbf16>
    %cst_62 = arith.constant dense<0.000000e+00> : vector<16x32xf32>
    %171 = tpu.matmul %169, %170, %cst_62 {dimension_numbers = #tpu.dot_dimension_numbers<[1], [0], [0], [1], [0, 0, 1, 1], [], []>} : vector<16x128xbf16>, vector<128x32xbf16>, vector<16x32xf32> -> vector<16x32xf32>
    %c0_63 = arith.constant 0 : index
    %c0_64 = arith.constant 0 : index
    %c0_65 = arith.constant 0 : index
    %172 = vector.load %arg11[%c0_63, %c0_64, %c0_65] : memref<2x1x32xf32, #tpu.memory_space<vmem>>, vector<1x1x32xf32>
    %173 = vector.shape_cast %172 : vector<1x1x32xf32> to vector<1x32xf32>
    %174 = vector.broadcast %173 : vector<1x32xf32> to vector<16x32xf32>
    %175 = arith.addf %171, %174 : vector<16x32xf32>
    %176 = arith.addf %155, %175 : vector<16x32xf32>
    %c0_66 = arith.constant 0 : index
    %c0_67 = arith.constant 0 : index
    %c0_68 = arith.constant 0 : index
    %177 = vector.load %arg12[%c0_66, %c0_67, %c0_68] : memref<2x1x32xf32, #tpu.memory_space<vmem>>, vector<1x1x32xf32>
    %178 = vector.shape_cast %177 : vector<1x1x32xf32> to vector<1x32xf32>
    %c0_69 = arith.constant 0 : index
    %c0_70 = arith.constant 0 : index
    %c0_71 = arith.constant 0 : index
    %179 = vector.load %arg13[%c0_69, %c0_70, %c0_71] : memref<2x1x32xf32, #tpu.memory_space<vmem>>, vector<1x1x32xf32>
    %180 = vector.shape_cast %179 : vector<1x1x32xf32> to vector<1x32xf32>
    %cst_72 = arith.constant dense<0.000000e+00> : vector<16xf32>
    %181 = vector.multi_reduction <add>, %176, %cst_72 [1] : vector<16x32xf32> to vector<16xf32>
    %182 = vector.shape_cast %181 : vector<16xf32> to vector<16x1xf32>
    %cst_73 = arith.constant 3.200000e+01 : f32
    %183 = vector.broadcast %cst_73 : f32 to vector<16x1xf32>
    %184 = arith.divf %182, %183 : vector<16x1xf32>
    %185 = vector.broadcast %184 : vector<16x1xf32> to vector<16x32xf32>
    %186 = arith.subf %176, %185 : vector<16x32xf32>
    %187 = arith.mulf %186, %186 : vector<16x32xf32>
    %cst_74 = arith.constant dense<0.000000e+00> : vector<16xf32>
    %188 = vector.multi_reduction <add>, %187, %cst_74 [1] : vector<16x32xf32> to vector<16xf32>
    %189 = vector.shape_cast %188 : vector<16xf32> to vector<16x1xf32>
    %cst_75 = arith.constant 3.200000e+01 : f32
    %190 = vector.broadcast %cst_75 : f32 to vector<16x1xf32>
    %191 = arith.divf %189, %190 : vector<16x1xf32>
    %192 = vector.broadcast %184 : vector<16x1xf32> to vector<16x32xf32>
    %193 = arith.subf %176, %192 : vector<16x32xf32>
    %cst_76 = arith.constant 9.99999974E-6 : f32
    %194 = vector.broadcast %cst_76 : f32 to vector<16x1xf32>
    %195 = arith.addf %191, %194 : vector<16x1xf32>
    %196 = math.rsqrt %195 : vector<16x1xf32>
    %197 = vector.broadcast %196 : vector<16x1xf32> to vector<16x32xf32>
    %198 = arith.mulf %193, %197 : vector<16x32xf32>
    %199 = vector.broadcast %178 : vector<1x32xf32> to vector<16x32xf32>
    %200 = arith.mulf %198, %199 : vector<16x32xf32>
    %201 = vector.broadcast %180 : vector<1x32xf32> to vector<16x32xf32>
    %202 = arith.addf %200, %201 : vector<16x32xf32>
    %c1 = arith.constant 1 : index
    %c0_77 = arith.constant 0 : index
    %c0_78 = arith.constant 0 : index
    %203 = vector.load %arg2[%c1, %c0_77, %c0_78] : memref<2x32x96xf32, #tpu.memory_space<vmem>>, vector<1x32x96xf32>
    %204 = vector.shape_cast %203 : vector<1x32x96xf32> to vector<32x96xf32>
    %205 = arith.truncf %202 : vector<16x32xf32> to vector<16x32xbf16>
    %206 = arith.truncf %204 : vector<32x96xf32> to vector<32x96xbf16>
    %cst_79 = arith.constant dense<0.000000e+00> : vector<16x96xf32>
    %207 = tpu.matmul %205, %206, %cst_79 {dimension_numbers = #tpu.dot_dimension_numbers<[1], [0], [0], [1], [0, 0, 1, 1], [], []>} : vector<16x32xbf16>, vector<32x96xbf16>, vector<16x96xf32> -> vector<16x96xf32>
    %c1_80 = arith.constant 1 : index
    %c0_81 = arith.constant 0 : index
    %c0_82 = arith.constant 0 : index
    %208 = vector.load %arg3[%c1_80, %c0_81, %c0_82] : memref<2x1x96xf32, #tpu.memory_space<vmem>>, vector<1x1x96xf32>
    %209 = vector.shape_cast %208 : vector<1x1x96xf32> to vector<1x96xf32>
    %210 = vector.broadcast %209 : vector<1x96xf32> to vector<16x96xf32>
    %211 = arith.addf %207, %210 : vector<16x96xf32>
    %212 = vector.extract_strided_slice %211 {offsets = [0, 0], sizes = [16, 32], strides = [1, 1]} : vector<16x96xf32> to vector<16x32xf32>
    %213 = vector.extract_strided_slice %211 {offsets = [0, 32], sizes = [16, 32], strides = [1, 1]} : vector<16x96xf32> to vector<16x32xf32>
    %214 = vector.extract_strided_slice %211 {offsets = [0, 64], sizes = [16, 32], strides = [1, 1]} : vector<16x96xf32> to vector<16x32xf32>
    %c1_83 = arith.constant 1 : index
    %c0_84 = arith.constant 0 : index
    %c0_85 = arith.constant 0 : index
    %215 = vector.load %arg4[%c1_83, %c0_84, %c0_85] : memref<2x32x32xf32, #tpu.memory_space<vmem>>, vector<1x32x32xf32>
    %216 = vector.shape_cast %215 : vector<1x32x32xf32> to vector<32x32xf32>
    %cst_86 = arith.constant 0.000000e+00 : f32
    %217 = vector.broadcast %cst_86 : f32 to vector<16x32xf32>
    %218 = vector.extract_strided_slice %212 {offsets = [0, 0], sizes = [16, 8], strides = [1, 1]} : vector<16x32xf32> to vector<16x8xf32>
    %219 = vector.extract_strided_slice %213 {offsets = [0, 0], sizes = [16, 8], strides = [1, 1]} : vector<16x32xf32> to vector<16x8xf32>
    %220 = tpu.transpose %219, [1, 0] : vector<16x8xf32> -> vector<8x16xf32>
    %221 = arith.truncf %218 : vector<16x8xf32> to vector<16x8xbf16>
    %222 = arith.truncf %220 : vector<8x16xf32> to vector<8x16xbf16>
    %cst_87 = arith.constant dense<0.000000e+00> : vector<16x16xf32>
    %223 = tpu.matmul %221, %222, %cst_87 {dimension_numbers = #tpu.dot_dimension_numbers<[1], [0], [0], [1], [0, 0, 1, 1], [], []>} : vector<16x8xbf16>, vector<8x16xbf16>, vector<16x16xf32> -> vector<16x16xf32>
    %cst_88 = arith.constant 0.353553385 : f32
    %224 = vector.broadcast %cst_88 : f32 to vector<16x16xf32>
    %225 = arith.mulf %223, %224 : vector<16x16xf32>
    %226 = arith.addf %225, %1 : vector<16x16xf32>
    %cst_89 = arith.constant dense<0xFF800000> : vector<16xf32>
    %227 = vector.multi_reduction <maximumf>, %226, %cst_89 [1] : vector<16x16xf32> to vector<16xf32>
    %228 = vector.shape_cast %227 : vector<16xf32> to vector<16x1xf32>
    %229 = vector.broadcast %228 : vector<16x1xf32> to vector<16x16xf32>
    %230 = arith.subf %226, %229 : vector<16x16xf32>
    %231 = math.exp %230 : vector<16x16xf32>
    %cst_90 = arith.constant dense<0.000000e+00> : vector<16xf32>
    %232 = vector.multi_reduction <add>, %231, %cst_90 [1] : vector<16x16xf32> to vector<16xf32>
    %233 = vector.shape_cast %232 : vector<16xf32> to vector<16x1xf32>
    %234 = vector.broadcast %233 : vector<16x1xf32> to vector<16x16xf32>
    %235 = arith.divf %231, %234 : vector<16x16xf32>
    %236 = vector.extract_strided_slice %214 {offsets = [0, 0], sizes = [16, 8], strides = [1, 1]} : vector<16x32xf32> to vector<16x8xf32>
    %237 = arith.truncf %235 : vector<16x16xf32> to vector<16x16xbf16>
    %238 = arith.truncf %236 : vector<16x8xf32> to vector<16x8xbf16>
    %cst_91 = arith.constant dense<0.000000e+00> : vector<16x8xf32>
    %239 = tpu.matmul %237, %238, %cst_91 {dimension_numbers = #tpu.dot_dimension_numbers<[1], [0], [0], [1], [0, 0, 1, 1], [], []>} : vector<16x16xbf16>, vector<16x8xbf16>, vector<16x8xf32> -> vector<16x8xf32>
    %240 = vector.extract_strided_slice %216 {offsets = [0, 0], sizes = [8, 32], strides = [1, 1]} : vector<32x32xf32> to vector<8x32xf32>
    %241 = arith.truncf %239 : vector<16x8xf32> to vector<16x8xbf16>
    %242 = arith.truncf %240 : vector<8x32xf32> to vector<8x32xbf16>
    %cst_92 = arith.constant dense<0.000000e+00> : vector<16x32xf32>
    %243 = tpu.matmul %241, %242, %cst_92 {dimension_numbers = #tpu.dot_dimension_numbers<[1], [0], [0], [1], [0, 0, 1, 1], [], []>} : vector<16x8xbf16>, vector<8x32xbf16>, vector<16x32xf32> -> vector<16x32xf32>
    %244 = arith.addf %217, %243 : vector<16x32xf32>
    %245 = vector.extract_strided_slice %212 {offsets = [0, 8], sizes = [16, 8], strides = [1, 1]} : vector<16x32xf32> to vector<16x8xf32>
    %246 = vector.extract_strided_slice %213 {offsets = [0, 8], sizes = [16, 8], strides = [1, 1]} : vector<16x32xf32> to vector<16x8xf32>
    %247 = tpu.transpose %246, [1, 0] : vector<16x8xf32> -> vector<8x16xf32>
    %248 = arith.truncf %245 : vector<16x8xf32> to vector<16x8xbf16>
    %249 = arith.truncf %247 : vector<8x16xf32> to vector<8x16xbf16>
    %cst_93 = arith.constant dense<0.000000e+00> : vector<16x16xf32>
    %250 = tpu.matmul %248, %249, %cst_93 {dimension_numbers = #tpu.dot_dimension_numbers<[1], [0], [0], [1], [0, 0, 1, 1], [], []>} : vector<16x8xbf16>, vector<8x16xbf16>, vector<16x16xf32> -> vector<16x16xf32>
    %cst_94 = arith.constant 0.353553385 : f32
    %251 = vector.broadcast %cst_94 : f32 to vector<16x16xf32>
    %252 = arith.mulf %250, %251 : vector<16x16xf32>
    %253 = arith.addf %252, %1 : vector<16x16xf32>
    %cst_95 = arith.constant dense<0xFF800000> : vector<16xf32>
    %254 = vector.multi_reduction <maximumf>, %253, %cst_95 [1] : vector<16x16xf32> to vector<16xf32>
    %255 = vector.shape_cast %254 : vector<16xf32> to vector<16x1xf32>
    %256 = vector.broadcast %255 : vector<16x1xf32> to vector<16x16xf32>
    %257 = arith.subf %253, %256 : vector<16x16xf32>
    %258 = math.exp %257 : vector<16x16xf32>
    %cst_96 = arith.constant dense<0.000000e+00> : vector<16xf32>
    %259 = vector.multi_reduction <add>, %258, %cst_96 [1] : vector<16x16xf32> to vector<16xf32>
    %260 = vector.shape_cast %259 : vector<16xf32> to vector<16x1xf32>
    %261 = vector.broadcast %260 : vector<16x1xf32> to vector<16x16xf32>
    %262 = arith.divf %258, %261 : vector<16x16xf32>
    %263 = vector.extract_strided_slice %214 {offsets = [0, 8], sizes = [16, 8], strides = [1, 1]} : vector<16x32xf32> to vector<16x8xf32>
    %264 = arith.truncf %262 : vector<16x16xf32> to vector<16x16xbf16>
    %265 = arith.truncf %263 : vector<16x8xf32> to vector<16x8xbf16>
    %cst_97 = arith.constant dense<0.000000e+00> : vector<16x8xf32>
    %266 = tpu.matmul %264, %265, %cst_97 {dimension_numbers = #tpu.dot_dimension_numbers<[1], [0], [0], [1], [0, 0, 1, 1], [], []>} : vector<16x16xbf16>, vector<16x8xbf16>, vector<16x8xf32> -> vector<16x8xf32>
    %267 = vector.extract_strided_slice %216 {offsets = [8, 0], sizes = [8, 32], strides = [1, 1]} : vector<32x32xf32> to vector<8x32xf32>
    %268 = arith.truncf %266 : vector<16x8xf32> to vector<16x8xbf16>
    %269 = arith.truncf %267 : vector<8x32xf32> to vector<8x32xbf16>
    %cst_98 = arith.constant dense<0.000000e+00> : vector<16x32xf32>
    %270 = tpu.matmul %268, %269, %cst_98 {dimension_numbers = #tpu.dot_dimension_numbers<[1], [0], [0], [1], [0, 0, 1, 1], [], []>} : vector<16x8xbf16>, vector<8x32xbf16>, vector<16x32xf32> -> vector<16x32xf32>
    %271 = arith.addf %244, %270 : vector<16x32xf32>
    %272 = vector.extract_strided_slice %212 {offsets = [0, 16], sizes = [16, 8], strides = [1, 1]} : vector<16x32xf32> to vector<16x8xf32>
    %273 = vector.extract_strided_slice %213 {offsets = [0, 16], sizes = [16, 8], strides = [1, 1]} : vector<16x32xf32> to vector<16x8xf32>
    %274 = tpu.transpose %273, [1, 0] : vector<16x8xf32> -> vector<8x16xf32>
    %275 = arith.truncf %272 : vector<16x8xf32> to vector<16x8xbf16>
    %276 = arith.truncf %274 : vector<8x16xf32> to vector<8x16xbf16>
    %cst_99 = arith.constant dense<0.000000e+00> : vector<16x16xf32>
    %277 = tpu.matmul %275, %276, %cst_99 {dimension_numbers = #tpu.dot_dimension_numbers<[1], [0], [0], [1], [0, 0, 1, 1], [], []>} : vector<16x8xbf16>, vector<8x16xbf16>, vector<16x16xf32> -> vector<16x16xf32>
    %cst_100 = arith.constant 0.353553385 : f32
    %278 = vector.broadcast %cst_100 : f32 to vector<16x16xf32>
    %279 = arith.mulf %277, %278 : vector<16x16xf32>
    %280 = arith.addf %279, %1 : vector<16x16xf32>
    %cst_101 = arith.constant dense<0xFF800000> : vector<16xf32>
    %281 = vector.multi_reduction <maximumf>, %280, %cst_101 [1] : vector<16x16xf32> to vector<16xf32>
    %282 = vector.shape_cast %281 : vector<16xf32> to vector<16x1xf32>
    %283 = vector.broadcast %282 : vector<16x1xf32> to vector<16x16xf32>
    %284 = arith.subf %280, %283 : vector<16x16xf32>
    %285 = math.exp %284 : vector<16x16xf32>
    %cst_102 = arith.constant dense<0.000000e+00> : vector<16xf32>
    %286 = vector.multi_reduction <add>, %285, %cst_102 [1] : vector<16x16xf32> to vector<16xf32>
    %287 = vector.shape_cast %286 : vector<16xf32> to vector<16x1xf32>
    %288 = vector.broadcast %287 : vector<16x1xf32> to vector<16x16xf32>
    %289 = arith.divf %285, %288 : vector<16x16xf32>
    %290 = vector.extract_strided_slice %214 {offsets = [0, 16], sizes = [16, 8], strides = [1, 1]} : vector<16x32xf32> to vector<16x8xf32>
    %291 = arith.truncf %289 : vector<16x16xf32> to vector<16x16xbf16>
    %292 = arith.truncf %290 : vector<16x8xf32> to vector<16x8xbf16>
    %cst_103 = arith.constant dense<0.000000e+00> : vector<16x8xf32>
    %293 = tpu.matmul %291, %292, %cst_103 {dimension_numbers = #tpu.dot_dimension_numbers<[1], [0], [0], [1], [0, 0, 1, 1], [], []>} : vector<16x16xbf16>, vector<16x8xbf16>, vector<16x8xf32> -> vector<16x8xf32>
    %294 = vector.extract_strided_slice %216 {offsets = [16, 0], sizes = [8, 32], strides = [1, 1]} : vector<32x32xf32> to vector<8x32xf32>
    %295 = arith.truncf %293 : vector<16x8xf32> to vector<16x8xbf16>
    %296 = arith.truncf %294 : vector<8x32xf32> to vector<8x32xbf16>
    %cst_104 = arith.constant dense<0.000000e+00> : vector<16x32xf32>
    %297 = tpu.matmul %295, %296, %cst_104 {dimension_numbers = #tpu.dot_dimension_numbers<[1], [0], [0], [1], [0, 0, 1, 1], [], []>} : vector<16x8xbf16>, vector<8x32xbf16>, vector<16x32xf32> -> vector<16x32xf32>
    %298 = arith.addf %271, %297 : vector<16x32xf32>
    %299 = vector.extract_strided_slice %212 {offsets = [0, 24], sizes = [16, 8], strides = [1, 1]} : vector<16x32xf32> to vector<16x8xf32>
    %300 = vector.extract_strided_slice %213 {offsets = [0, 24], sizes = [16, 8], strides = [1, 1]} : vector<16x32xf32> to vector<16x8xf32>
    %301 = tpu.transpose %300, [1, 0] : vector<16x8xf32> -> vector<8x16xf32>
    %302 = arith.truncf %299 : vector<16x8xf32> to vector<16x8xbf16>
    %303 = arith.truncf %301 : vector<8x16xf32> to vector<8x16xbf16>
    %cst_105 = arith.constant dense<0.000000e+00> : vector<16x16xf32>
    %304 = tpu.matmul %302, %303, %cst_105 {dimension_numbers = #tpu.dot_dimension_numbers<[1], [0], [0], [1], [0, 0, 1, 1], [], []>} : vector<16x8xbf16>, vector<8x16xbf16>, vector<16x16xf32> -> vector<16x16xf32>
    %cst_106 = arith.constant 0.353553385 : f32
    %305 = vector.broadcast %cst_106 : f32 to vector<16x16xf32>
    %306 = arith.mulf %304, %305 : vector<16x16xf32>
    %307 = arith.addf %306, %1 : vector<16x16xf32>
    %cst_107 = arith.constant dense<0xFF800000> : vector<16xf32>
    %308 = vector.multi_reduction <maximumf>, %307, %cst_107 [1] : vector<16x16xf32> to vector<16xf32>
    %309 = vector.shape_cast %308 : vector<16xf32> to vector<16x1xf32>
    %310 = vector.broadcast %309 : vector<16x1xf32> to vector<16x16xf32>
    %311 = arith.subf %307, %310 : vector<16x16xf32>
    %312 = math.exp %311 : vector<16x16xf32>
    %cst_108 = arith.constant dense<0.000000e+00> : vector<16xf32>
    %313 = vector.multi_reduction <add>, %312, %cst_108 [1] : vector<16x16xf32> to vector<16xf32>
    %314 = vector.shape_cast %313 : vector<16xf32> to vector<16x1xf32>
    %315 = vector.broadcast %314 : vector<16x1xf32> to vector<16x16xf32>
    %316 = arith.divf %312, %315 : vector<16x16xf32>
    %317 = vector.extract_strided_slice %214 {offsets = [0, 24], sizes = [16, 8], strides = [1, 1]} : vector<16x32xf32> to vector<16x8xf32>
    %318 = arith.truncf %316 : vector<16x16xf32> to vector<16x16xbf16>
    %319 = arith.truncf %317 : vector<16x8xf32> to vector<16x8xbf16>
    %cst_109 = arith.constant dense<0.000000e+00> : vector<16x8xf32>
    %320 = tpu.matmul %318, %319, %cst_109 {dimension_numbers = #tpu.dot_dimension_numbers<[1], [0], [0], [1], [0, 0, 1, 1], [], []>} : vector<16x16xbf16>, vector<16x8xbf16>, vector<16x8xf32> -> vector<16x8xf32>
    %321 = vector.extract_strided_slice %216 {offsets = [24, 0], sizes = [8, 32], strides = [1, 1]} : vector<32x32xf32> to vector<8x32xf32>
    %322 = arith.truncf %320 : vector<16x8xf32> to vector<16x8xbf16>
    %323 = arith.truncf %321 : vector<8x32xf32> to vector<8x32xbf16>
    %cst_110 = arith.constant dense<0.000000e+00> : vector<16x32xf32>
    %324 = tpu.matmul %322, %323, %cst_110 {dimension_numbers = #tpu.dot_dimension_numbers<[1], [0], [0], [1], [0, 0, 1, 1], [], []>} : vector<16x8xbf16>, vector<8x32xbf16>, vector<16x32xf32> -> vector<16x32xf32>
    %325 = arith.addf %298, %324 : vector<16x32xf32>
    %326 = arith.addf %202, %325 : vector<16x32xf32>
    %c1_111 = arith.constant 1 : index
    %c0_112 = arith.constant 0 : index
    %c0_113 = arith.constant 0 : index
    %327 = vector.load %arg5[%c1_111, %c0_112, %c0_113] : memref<2x1x32xf32, #tpu.memory_space<vmem>>, vector<1x1x32xf32>
    %328 = vector.shape_cast %327 : vector<1x1x32xf32> to vector<1x32xf32>
    %329 = vector.broadcast %328 : vector<1x32xf32> to vector<16x32xf32>
    %330 = arith.addf %326, %329 : vector<16x32xf32>
    %c1_114 = arith.constant 1 : index
    %c0_115 = arith.constant 0 : index
    %c0_116 = arith.constant 0 : index
    %331 = vector.load %arg6[%c1_114, %c0_115, %c0_116] : memref<2x1x32xf32, #tpu.memory_space<vmem>>, vector<1x1x32xf32>
    %332 = vector.shape_cast %331 : vector<1x1x32xf32> to vector<1x32xf32>
    %c1_117 = arith.constant 1 : index
    %c0_118 = arith.constant 0 : index
    %c0_119 = arith.constant 0 : index
    %333 = vector.load %arg7[%c1_117, %c0_118, %c0_119] : memref<2x1x32xf32, #tpu.memory_space<vmem>>, vector<1x1x32xf32>
    %334 = vector.shape_cast %333 : vector<1x1x32xf32> to vector<1x32xf32>
    %cst_120 = arith.constant dense<0.000000e+00> : vector<16xf32>
    %335 = vector.multi_reduction <add>, %330, %cst_120 [1] : vector<16x32xf32> to vector<16xf32>
    %336 = vector.shape_cast %335 : vector<16xf32> to vector<16x1xf32>
    %cst_121 = arith.constant 3.200000e+01 : f32
    %337 = vector.broadcast %cst_121 : f32 to vector<16x1xf32>
    %338 = arith.divf %336, %337 : vector<16x1xf32>
    %339 = vector.broadcast %338 : vector<16x1xf32> to vector<16x32xf32>
    %340 = arith.subf %330, %339 : vector<16x32xf32>
    %341 = arith.mulf %340, %340 : vector<16x32xf32>
    %cst_122 = arith.constant dense<0.000000e+00> : vector<16xf32>
    %342 = vector.multi_reduction <add>, %341, %cst_122 [1] : vector<16x32xf32> to vector<16xf32>
    %343 = vector.shape_cast %342 : vector<16xf32> to vector<16x1xf32>
    %cst_123 = arith.constant 3.200000e+01 : f32
    %344 = vector.broadcast %cst_123 : f32 to vector<16x1xf32>
    %345 = arith.divf %343, %344 : vector<16x1xf32>
    %346 = vector.broadcast %338 : vector<16x1xf32> to vector<16x32xf32>
    %347 = arith.subf %330, %346 : vector<16x32xf32>
    %cst_124 = arith.constant 9.99999974E-6 : f32
    %348 = vector.broadcast %cst_124 : f32 to vector<16x1xf32>
    %349 = arith.addf %345, %348 : vector<16x1xf32>
    %350 = math.rsqrt %349 : vector<16x1xf32>
    %351 = vector.broadcast %350 : vector<16x1xf32> to vector<16x32xf32>
    %352 = arith.mulf %347, %351 : vector<16x32xf32>
    %353 = vector.broadcast %332 : vector<1x32xf32> to vector<16x32xf32>
    %354 = arith.mulf %352, %353 : vector<16x32xf32>
    %355 = vector.broadcast %334 : vector<1x32xf32> to vector<16x32xf32>
    %356 = arith.addf %354, %355 : vector<16x32xf32>
    %c1_125 = arith.constant 1 : index
    %c0_126 = arith.constant 0 : index
    %c0_127 = arith.constant 0 : index
    %357 = vector.load %arg8[%c1_125, %c0_126, %c0_127] : memref<2x32x128xf32, #tpu.memory_space<vmem>>, vector<1x32x128xf32>
    %358 = vector.shape_cast %357 : vector<1x32x128xf32> to vector<32x128xf32>
    %359 = arith.truncf %356 : vector<16x32xf32> to vector<16x32xbf16>
    %360 = arith.truncf %358 : vector<32x128xf32> to vector<32x128xbf16>
    %cst_128 = arith.constant dense<0.000000e+00> : vector<16x128xf32>
    %361 = tpu.matmul %359, %360, %cst_128 {dimension_numbers = #tpu.dot_dimension_numbers<[1], [0], [0], [1], [0, 0, 1, 1], [], []>} : vector<16x32xbf16>, vector<32x128xbf16>, vector<16x128xf32> -> vector<16x128xf32>
    %c1_129 = arith.constant 1 : index
    %c0_130 = arith.constant 0 : index
    %c0_131 = arith.constant 0 : index
    %362 = vector.load %arg9[%c1_129, %c0_130, %c0_131] : memref<2x1x128xf32, #tpu.memory_space<vmem>>, vector<1x1x128xf32>
    %363 = vector.shape_cast %362 : vector<1x1x128xf32> to vector<1x128xf32>
    %364 = vector.broadcast %363 : vector<1x128xf32> to vector<16x128xf32>
    %365 = arith.addf %361, %364 : vector<16x128xf32>
    %cst_132 = arith.constant 0.000000e+00 : f32
    %366 = vector.broadcast %cst_132 : f32 to vector<16x128xf32>
    %367 = arith.maximumf %365, %366 : vector<16x128xf32>
    %c1_133 = arith.constant 1 : index
    %c0_134 = arith.constant 0 : index
    %c0_135 = arith.constant 0 : index
    %368 = vector.load %arg10[%c1_133, %c0_134, %c0_135] : memref<2x128x32xf32, #tpu.memory_space<vmem>>, vector<1x128x32xf32>
    %369 = vector.shape_cast %368 : vector<1x128x32xf32> to vector<128x32xf32>
    %370 = arith.truncf %367 : vector<16x128xf32> to vector<16x128xbf16>
    %371 = arith.truncf %369 : vector<128x32xf32> to vector<128x32xbf16>
    %cst_136 = arith.constant dense<0.000000e+00> : vector<16x32xf32>
    %372 = tpu.matmul %370, %371, %cst_136 {dimension_numbers = #tpu.dot_dimension_numbers<[1], [0], [0], [1], [0, 0, 1, 1], [], []>} : vector<16x128xbf16>, vector<128x32xbf16>, vector<16x32xf32> -> vector<16x32xf32>
    %c1_137 = arith.constant 1 : index
    %c0_138 = arith.constant 0 : index
    %c0_139 = arith.constant 0 : index
    %373 = vector.load %arg11[%c1_137, %c0_138, %c0_139] : memref<2x1x32xf32, #tpu.memory_space<vmem>>, vector<1x1x32xf32>
    %374 = vector.shape_cast %373 : vector<1x1x32xf32> to vector<1x32xf32>
    %375 = vector.broadcast %374 : vector<1x32xf32> to vector<16x32xf32>
    %376 = arith.addf %372, %375 : vector<16x32xf32>
    %377 = arith.addf %356, %376 : vector<16x32xf32>
    %c1_140 = arith.constant 1 : index
    %c0_141 = arith.constant 0 : index
    %c0_142 = arith.constant 0 : index
    %378 = vector.load %arg12[%c1_140, %c0_141, %c0_142] : memref<2x1x32xf32, #tpu.memory_space<vmem>>, vector<1x1x32xf32>
    %379 = vector.shape_cast %378 : vector<1x1x32xf32> to vector<1x32xf32>
    %c1_143 = arith.constant 1 : index
    %c0_144 = arith.constant 0 : index
    %c0_145 = arith.constant 0 : index
    %380 = vector.load %arg13[%c1_143, %c0_144, %c0_145] : memref<2x1x32xf32, #tpu.memory_space<vmem>>, vector<1x1x32xf32>
    %381 = vector.shape_cast %380 : vector<1x1x32xf32> to vector<1x32xf32>
    %cst_146 = arith.constant dense<0.000000e+00> : vector<16xf32>
    %382 = vector.multi_reduction <add>, %377, %cst_146 [1] : vector<16x32xf32> to vector<16xf32>
    %383 = vector.shape_cast %382 : vector<16xf32> to vector<16x1xf32>
    %cst_147 = arith.constant 3.200000e+01 : f32
    %384 = vector.broadcast %cst_147 : f32 to vector<16x1xf32>
    %385 = arith.divf %383, %384 : vector<16x1xf32>
    %386 = vector.broadcast %385 : vector<16x1xf32> to vector<16x32xf32>
    %387 = arith.subf %377, %386 : vector<16x32xf32>
    %388 = arith.mulf %387, %387 : vector<16x32xf32>
    %cst_148 = arith.constant dense<0.000000e+00> : vector<16xf32>
    %389 = vector.multi_reduction <add>, %388, %cst_148 [1] : vector<16x32xf32> to vector<16xf32>
    %390 = vector.shape_cast %389 : vector<16xf32> to vector<16x1xf32>
    %cst_149 = arith.constant 3.200000e+01 : f32
    %391 = vector.broadcast %cst_149 : f32 to vector<16x1xf32>
    %392 = arith.divf %390, %391 : vector<16x1xf32>
    %393 = vector.broadcast %385 : vector<16x1xf32> to vector<16x32xf32>
    %394 = arith.subf %377, %393 : vector<16x32xf32>
    %cst_150 = arith.constant 9.99999974E-6 : f32
    %395 = vector.broadcast %cst_150 : f32 to vector<16x1xf32>
    %396 = arith.addf %392, %395 : vector<16x1xf32>
    %397 = math.rsqrt %396 : vector<16x1xf32>
    %398 = vector.broadcast %397 : vector<16x1xf32> to vector<16x32xf32>
    %399 = arith.mulf %394, %398 : vector<16x32xf32>
    %400 = vector.broadcast %379 : vector<1x32xf32> to vector<16x32xf32>
    %401 = arith.mulf %399, %400 : vector<16x32xf32>
    %402 = vector.broadcast %381 : vector<1x32xf32> to vector<16x32xf32>
    %403 = arith.addf %401, %402 : vector<16x32xf32>
    %c0_151 = arith.constant 0 : index
    %c0_152 = arith.constant 0 : index
    %404 = vector.load %arg14[%c0_151, %c0_152] : memref<32x4xf32, #tpu.memory_space<vmem>>, vector<32x4xf32>
    %405 = arith.truncf %403 : vector<16x32xf32> to vector<16x32xbf16>
    %406 = arith.truncf %404 : vector<32x4xf32> to vector<32x4xbf16>
    %cst_153 = arith.constant dense<0.000000e+00> : vector<16x4xf32>
    %407 = tpu.matmul %405, %406, %cst_153 {dimension_numbers = #tpu.dot_dimension_numbers<[1], [0], [0], [1], [0, 0, 1, 1], [], []>} : vector<16x32xbf16>, vector<32x4xbf16>, vector<16x4xf32> -> vector<16x4xf32>
    %c0_154 = arith.constant 0 : index
    %c0_155 = arith.constant 0 : index
    %408 = vector.load %arg15[%c0_154, %c0_155] : memref<1x4xf32, #tpu.memory_space<vmem>>, vector<1x4xf32>
    %409 = vector.broadcast %408 : vector<1x4xf32> to vector<16x4xf32>
    %410 = arith.addf %407, %409 : vector<16x4xf32>
    %cst_156 = arith.constant dense<0xFF800000> : vector<16xf32>
    %411 = vector.multi_reduction <maximumf>, %410, %cst_156 [1] : vector<16x4xf32> to vector<16xf32>
    %412 = vector.shape_cast %411 : vector<16xf32> to vector<16x1xf32>
    %413 = vector.broadcast %412 : vector<16x1xf32> to vector<16x4xf32>
    %414 = arith.subf %410, %413 : vector<16x4xf32>
    %415 = math.exp %414 : vector<16x4xf32>
    %cst_157 = arith.constant dense<0.000000e+00> : vector<16xf32>
    %416 = vector.multi_reduction <add>, %415, %cst_157 [1] : vector<16x4xf32> to vector<16xf32>
    %417 = vector.shape_cast %416 : vector<16xf32> to vector<16x1xf32>
    %418 = vector.broadcast %417 : vector<16x1xf32> to vector<16x4xf32>
    %419 = arith.divf %415, %418 : vector<16x4xf32>
    %c0_158 = arith.constant 0 : index
    %c0_159 = arith.constant 0 : index
    %420 = vector.load %arg16[%c0_158, %c0_159] : memref<32x512xf32, #tpu.memory_space<vmem>>, vector<32x512xf32>
    %421 = arith.truncf %403 : vector<16x32xf32> to vector<16x32xbf16>
    %422 = arith.truncf %420 : vector<32x512xf32> to vector<32x512xbf16>
    %cst_160 = arith.constant dense<0.000000e+00> : vector<16x512xf32>
    %423 = tpu.matmul %421, %422, %cst_160 {dimension_numbers = #tpu.dot_dimension_numbers<[1], [0], [0], [1], [0, 0, 1, 1], [], []>} : vector<16x32xbf16>, vector<32x512xbf16>, vector<16x512xf32> -> vector<16x512xf32>
    %c0_161 = arith.constant 0 : index
    %c0_162 = arith.constant 0 : index
    %424 = vector.load %arg17[%c0_161, %c0_162] : memref<1x512xf32, #tpu.memory_space<vmem>>, vector<1x512xf32>
    %425 = vector.broadcast %424 : vector<1x512xf32> to vector<16x512xf32>
    %426 = arith.addf %423, %425 : vector<16x512xf32>
    %cst_163 = arith.constant 5.000000e-01 : f32
    %427 = vector.broadcast %cst_163 : f32 to vector<16x512xf32>
    %428 = arith.mulf %427, %426 : vector<16x512xf32>
    %cst_164 = arith.constant 1.41421354 : f32
    %429 = vector.broadcast %cst_164 : f32 to vector<16x512xf32>
    %430 = arith.divf %426, %429 : vector<16x512xf32>
    %431 = math.erf %430 : vector<16x512xf32>
    %cst_165 = arith.constant 1.000000e+00 : f32
    %432 = vector.broadcast %cst_165 : f32 to vector<16x512xf32>
    %433 = arith.addf %432, %431 : vector<16x512xf32>
    %434 = arith.mulf %428, %433 : vector<16x512xf32>
    %c0_166 = arith.constant 0 : index
    %c0_167 = arith.constant 0 : index
    %435 = vector.load %arg18[%c0_166, %c0_167] : memref<4x512xf32, #tpu.memory_space<vmem>>, vector<4x512xf32>
    %cst_168 = arith.constant dense<0.000000e+00> : vector<16x512xf32>
    %436 = tpu.matmul %419, %435, %cst_168 {dimension_numbers = #tpu.dot_dimension_numbers<[1], [0], [0], [1], [0, 0, 1, 1], [], []>} : vector<16x4xf32>, vector<4x512xf32>, vector<16x512xf32> -> vector<16x512xf32>
    %437 = arith.mulf %434, %436 : vector<16x512xf32>
    %c0_169 = arith.constant 0 : index
    %c0_170 = arith.constant 0 : index
    %438 = vector.load %arg19[%c0_169, %c0_170] : memref<512x32xf32, #tpu.memory_space<vmem>>, vector<512x32xf32>
    %439 = arith.truncf %437 : vector<16x512xf32> to vector<16x512xbf16>
    %440 = arith.truncf %438 : vector<512x32xf32> to vector<512x32xbf16>
    %cst_171 = arith.constant dense<0.000000e+00> : vector<16x32xf32>
    %441 = tpu.matmul %439, %440, %cst_171 {dimension_numbers = #tpu.dot_dimension_numbers<[1], [0], [0], [1], [0, 0, 1, 1], [], []>} : vector<16x512xbf16>, vector<512x32xbf16>, vector<16x32xf32> -> vector<16x32xf32>
    %c0_172 = arith.constant 0 : index
    %c0_173 = arith.constant 0 : index
    %442 = vector.load %arg20[%c0_172, %c0_173] : memref<4x32xf32, #tpu.memory_space<vmem>>, vector<4x32xf32>
    %cst_174 = arith.constant dense<0.000000e+00> : vector<16x32xf32>
    %443 = tpu.matmul %419, %442, %cst_174 {dimension_numbers = #tpu.dot_dimension_numbers<[1], [0], [0], [1], [0, 0, 1, 1], [], []>} : vector<16x4xf32>, vector<4x32xf32>, vector<16x32xf32> -> vector<16x32xf32>
    %444 = arith.addf %441, %443 : vector<16x32xf32>
    %c0_175 = arith.constant 0 : index
    %c0_176 = arith.constant 0 : index
    %445 = vector.load %arg21[%c0_175, %c0_176] : memref<32x32xf32, #tpu.memory_space<vmem>>, vector<32x32xf32>
    %446 = arith.truncf %444 : vector<16x32xf32> to vector<16x32xbf16>
    %447 = arith.truncf %445 : vector<32x32xf32> to vector<32x32xbf16>
    %cst_177 = arith.constant dense<0.000000e+00> : vector<16x32xf32>
    %448 = tpu.matmul %446, %447, %cst_177 {dimension_numbers = #tpu.dot_dimension_numbers<[1], [0], [0], [1], [0, 0, 1, 1], [], []>} : vector<16x32xbf16>, vector<32x32xbf16>, vector<16x32xf32> -> vector<16x32xf32>
    %c0_178 = arith.constant 0 : index
    %c0_179 = arith.constant 0 : index
    %449 = vector.load %arg22[%c0_178, %c0_179] : memref<1x32xf32, #tpu.memory_space<vmem>>, vector<1x32xf32>
    %450 = vector.broadcast %449 : vector<1x32xf32> to vector<16x32xf32>
    %451 = arith.addf %448, %450 : vector<16x32xf32>
    %c0_180 = arith.constant 0 : index
    %c0_181 = arith.constant 0 : index
    %452 = vector.load %arg23[%c0_180, %c0_181] : memref<16x32xf32, #tpu.memory_space<vmem>>, vector<16x32xf32>
    tpu.vector_store %arg23[%c0_180, %c0_181], %451 {strides = array<i32>} : memref<16x32xf32, #tpu.memory_space<vmem>>, vector<16x32xf32>,
    return
  }
}

</mosaic_0001>

<bundles_post_ra>
// kernel: tpu_custom_call.1
= control target key start
LH: loop header
LB: loop body
LE: loop exit
PB: predicated region body
PF: predicated region fallthrough
CT: control target
= control target key end

     0   :  { %s4814_s0 = inlined_call_operand.vmem [shape: f32[16,32], index: 0, kind: input, shape index: {}]   ;;  %s4815_s1 = inlined_call_operand.vmem [shape: f32[16,16], index: 1, kind: input, shape index: {}]   ;;  %s4816_s2 = inlined_call_operand.vmem [shape: f32[2,32,96], index: 2, kind: input, shape index: {}]   ;;  %s4817_s3 = inlined_call_operand.vmem [shape: f32[2,1,96], index: 3, kind: input, shape index: {}]   ;;  %s4818_s4 = inlined_call_operand.vmem [shape: f32[2,32,32], index: 4, kind: input, shape index: {}]   ;;  %s4819_s5 = inlined_call_operand.vmem [shape: f32[2,1,32], index: 5, kind: input, shape index: {}]   ;;  %s4820_s6 = inlined_call_operand.vmem [shape: f32[2,1,32], index: 6, kind: input, shape index: {}]   ;;  %s4821_s7 = inlined_call_operand.vmem [shape: f32[2,1,32], index: 7, kind: input, shape index: {}]   ;;  %s4822_s8 = inlined_call_operand.vmem [shape: f32[2,32,128], index: 8, kind: input, shape index: {}]   ;;  %s4823_s9 = inlined_call_operand.vmem [shape: f32[2,1,128], index: 9, kind: input, shape index: {}]   ;;  %s4824_s10 = inlined_call_operand.vmem [shape: f32[2,128,32], index: 10, kind: input, shape index: {}]   ;;  %s4825_s11 = inlined_call_operand.vmem [shape: f32[2,1,32], index: 11, kind: input, shape index: {}]   ;;  %s4826_s12 = inlined_call_operand.vmem [shape: f32[2,1,32], index: 12, kind: input, shape index: {}]   ;;  %s4827_s13 = inlined_call_operand.vmem [shape: f32[2,1,32], index: 13, kind: input, shape index: {}]   ;;  %s4828_s14 = inlined_call_operand.vmem [shape: f32[32,4], index: 14, kind: input, shape index: {}]   ;;  %s4829_s15 = inlined_call_operand.vmem [shape: f32[1,4], index: 15, kind: input, shape index: {}]   ;;  %s4830_s16 = inlined_call_operand.vmem [shape: f32[32,512], index: 16, kind: input, shape index: {}]   ;;  %s4831_s17 = inlined_call_operand.vmem [shape: f32[1,512], index: 17, kind: input, shape index: {}]   ;;  %s4832_s18 = inlined_call_operand.vmem [shape: f32[4,512], index: 18, kind: input, shape index: {}]   ;;  %s4833_s19 = inlined_call_operand.vmem [shape: f32[512,32], index: 19, kind: input, shape index: {}]   ;;  %s4834_s20 = inlined_call_operand.vmem [shape: f32[4,32], index: 20, kind: input, shape index: {}]   ;;  %s4835_s21 = inlined_call_operand.vmem [shape: f32[32,32], index: 21, kind: input, shape index: {}]   ;;  %s4836_s22 = inlined_call_operand.vmem [shape: f32[1,32], index: 22, kind: input, shape index: {}]   ;;  %s4837_s23 = inlined_call_operand.hbm [shape: f32[16,32], index: 23, kind: output, shape index: {}]  }
   0x1   :  { %4859 = sst [smem:[#allocation5_spill]] %s4814_s0 }
   0x2   :  { %4860 = sst [smem:[#allocation6_spill]] %s4815_s1 }
   0x3   :  { %4861 = sst [smem:[#allocation7_spill]] %s4816_s2 }
   0x4   :  { %4862 = sst [smem:[#allocation8_spill]] %s4817_s3 }
   0x5   :  { %4863 = sst [smem:[#allocation9_spill]] %s4818_s4 }
   0x6   :  { %4864 = sst [smem:[#allocation10_spill]] %s4819_s5 }
   0x7   :  { %4865 = sst [smem:[#allocation11_spill]] %s4820_s6 }
   0x8   :  { %4866 = sst [smem:[#allocation12_spill]] %s4821_s7 }
   0x9   :  { %s4867_s24 = sld [smem:[#allocation7_spill]]  ;;  %v3789_v3 = vmov 0.0   ;;  %vm3790_vm0 = vmmov 0  }
   0xa   :  { %3390 = vmatprep.subr.bf16.mxu0 %v3789_v3  ;;  %3394 = vmatprep.mubr.msk.bf16.mxu0 %vm3790_vm0, %v3789_v3 }
   0xb   :  { %3398 = vmatprep.subr.bf16.mxu1 %v3789_v3  ;;  %3400 = vmatprep.mubr.msk.bf16.mxu1 %vm3790_vm0, %v3789_v3 }
   0xf   :  { %v82_v0 = vld [vmem:[%s4867_s24 + $0x10] sm:$0xff]  ;;  %v83_v1 = vld [vmem:[%s4867_s24 + $0x18] sm:$0xff]  ;;  %v80_v2 = vld [vmem:[%s4867_s24] sm:$0xff] }
  0x10   :  { %v86_v4 = vpack.c.bf16 %v83_v1, %v82_v0  ;;  %v81_v5 = vld [vmem:[%s4867_s24 + $0x8] sm:$0xff] }
  0x11   :  { %28 = vsyncpa [#allocation3], 0  ;;  %v85_v6 = vpack.c.bf16 %v81_v5, %v80_v2  ;;  %s4868_s28 = sld [smem:[#allocation5_spill]]  ;;  %vm94_vm1 = vcmask 261120   ;;  %s4856_s25 = smov 88   ;;  %vm189_vm2 = vcmask 1043456  }
  0x12   :  { %3391 = vmatpush3.bf16.msra.mxu0 %v86_v4  ;;  %s4869_s30 = sld [smem:[#allocation8_spill]]  ;;  %s4857_s5 = smov 96   ;;  %vm185_vm3 = vcmask 64512   ;;  %vm238_vm4 = vcmask 130048   ;;  %vm2447_vm5 = vcmask 31744  }
  0x13   :  { %3392 = vmatprep.subr.bf16.mxu0 %v3789_v3  ;;  %s4854_s1 = smov 120   ;;  %s4870_s6 = sld [smem:[#allocation6_spill]] }
  0x14   :  { %s4855_s29 = smov 64   ;;  %s4851_s3 = smov 80  }
  0x15   :  { %s4850_s0 = smov 112   ;;  %s4871_s2 = sld [smem:[#allocation9_spill]] }
  0x16   :  { %3393 = vmatpush3.bf16.msra.mxu0 %v85_v6  ;;  %s4849_s4 = smov 72   ;;  %s4848_s26 = smov 104  }
  0x17   :  { %v3947_v7 = vld [vmem:[%s4868_s28] sm:$0xff]  ;;  %v3952_v8 = vld [vmem:[%s4868_s28 + $0x8] sm:$0xff]  ;;  %3410 = vmatprep.subr.bf16.mxu0 %v3789_v3  ;;  %s4853_s28 = smov 56   ;;  %s4846_s27 = smov 48  }
  0x18   :  { %v84_v9 = vpack.c.bf16 %v3952_v8, %v3947_v7  ;;  %v3162_v10 = vld [vmem:[%s4869_s30] ss:$0 sm:$0xff]  ;;  %s4885_s7 = smov 40  }
  0x19   :  { %v3996_v31 = vld [vmem:[%s4870_s6] sm:$0xff]  ;;  %v4002_v39 = vld [vmem:[%s4870_s6 + $0x8] sm:$0xff] }
  0x1a   :  { %3395 = vmatmul.mubr.msk.bf16.vlgmr.msra.gmra.mxu0 %vm94_vm1, %v84_v9 }
  0x1b   :  { %3412 = vmatprep.mubr.msk.bf16.mxu0 %vm3790_vm0, %v3789_v3 }
  0xda   :  { %v132_v11 = vpop.f32.mrf.mxu0 }
  0xdb   :  { %v3964_v12 = vadd.f32 %v3162_v10, %v132_v11 }
  0xdc   :  { %v3396_v13 = vpop.f32.mrf.mxu0 }
  0xdd   :  { %312 = vrot.lane.b32.xlu1 %v3964_v12, %s4856_s25  ;;  %145 = vrot.lane.b32.xlu0 %v3964_v12, %s4857_s5 }
  0xde   :  { %v135_v14 = vpop.f32.mrf.mxu0 }
  0xdf   :  { %v3970_v15 = vadd.f32 %v3162_v10, %v135_v14 }
  0xe0   :  { %v3397_v16 = vpop.f32.mrf.mxu0 }
  0xe1   :  { %314 = vrot.lane.b32.xlu1 %v3970_v15, %s4856_s25  ;;  %147 = vrot.lane.b32.xlu0 %v3970_v15, %s4857_s5  ;;  %v3978_v17 = vpack.c.bf16 %v3970_v15, %v3964_v12  ;;  %s4874_s25 = sld [smem:[#allocation12_spill]]  ;;  %s4877_s5 = smov 64  }
  0xe5   :  { %351 = vrot.lane.b32.xlu0 %v3978_v17, %s4854_s1  ;;  %s4878_s1 = smov 120  }
 0x14f   :  { %v313_v18 = vpop.permute.xlu1 %312  ;;  %v146_v19 = vpop.permute.xlu0 %145 }
 0x150   :  { %151 = vxpose.xlu1.b32.start [1/2] (short) (narrow) %v146_v19, 8  ;;  %318 = vxpose.xlu0.b32.start [1/2] (short) (narrow) %v313_v18, 8 }
 0x153   :  { %v315_v20 = vpop.permute.xlu1 %314  ;;  %v148_v21 = vpop.permute.xlu0 %147 }
 0x154   :  { %152 = vxpose.xlu1.b32.end [2/2] (short) (narrow) %v148_v21, 8  ;;  %319 = vxpose.xlu0.b32.end [2/2] (short) (narrow) %v315_v20, 8 }
 0x157   :  { %v352_v22 = vpop.permute.xlu0 %351 }
 0x1cc   :  { %v167_v23 = vpop.trf.xlu1  ;;  %v334_v24 = vpop.trf.xlu0 }
 0x1cd   :  { %v184_v25 = vpack.c.bf16 %v167_v23, %v167_v23  ;;  %v350_v26 = vpack.c.bf16 %v334_v24, %v334_v24 }
 0x1cf   :  { %v191_v27 = vsel %vm189_vm2, %v184_v25, 0  ;;  %v357_v28 = vsel %vm189_vm2, %v350_v26, 0 }
 0x1d0   :  { %3399 = vmatpush3.bf16.msra.mxu1 %v191_v27  ;;  %3411 = vmatpush3.bf16.msra.mxu0 %v357_v28 }
 0x1d1   :  { %3404 = vmatprep.subr.bf16.mxu1 %v3789_v3  ;;  %3422 = vmatprep.subr.bf16.mxu0 %v3789_v3 }
 0x1d3   :  { %3401 = vmatmul.mubr.msk.bf16.vlgmr.msra.gmra.mxu1 %vm185_vm3, %v3978_v17  ;;  %3413 = vmatmul.mubr.msk.bf16.vlgmr.msra.gmra.mxu0 %vm185_vm3, %v352_v22 }
 0x1d4   :  { %3406 = vmatprep.mubr.msk.bf16.mxu1 %vm3790_vm0, %v3789_v3  ;;  %3424 = vmatprep.mubr.msk.bf16.mxu0 %vm3790_vm0, %v3789_v3 }
 0x293   :  { %v227_v29 = vpop.f32.mrf.mxu1  ;;  %v393_v30 = vpop.f32.mrf.mxu0 }
 0x294   :  { %v234_v32 = vmul.f32 0.35355338, %v227_v29  ;;  %v400_v33 = vmul.f32 0.35355338, %v393_v30 }
 0x295   :  { %v3402_v34 = vpop.f32.mrf.mxu1  ;;  %v3414_v35 = vpop.f32.mrf.mxu0 }
 0x296   :  { %v236_v36 = vadd.f32 %v234_v32, %v3996_v31  ;;  %v402_v43 = vadd.f32 %v400_v33, %v3996_v31  ;;  %v139_v32 = vld [vmem:[%s4871_s2] sm:$0xff]  ;;  %v140_v35 = vld [vmem:[%s4871_s2 + $0x8] sm:$0xff] }
 0x297   :  { %v230_v37 = vpop.f32.mrf.mxu1  ;;  %v396_v38 = vpop.f32.mrf.mxu0  ;;  %v311_v33 = vpack.c.bf16 %v139_v32, %v139_v32 }
 0x298   :  { %v235_v40 = vmul.f32 0.35355338, %v230_v37  ;;  %v401_v41 = vmul.f32 0.35355338, %v396_v38  ;;  %v239_v42 = vsel %vm238_vm4, %v236_v36, -inf  ;;  %v404_v48 = vsel %vm238_vm4, %v402_v43, -inf }
 0x299   :  { %240 = vmax.xlane.f32.xlu0 %v239_v42  ;;  %v3403_v44 = vpop.f32.mrf.mxu1  ;;  %v3415_v45 = vpop.f32.mrf.mxu0  ;;  %v527_v34 = vsel %vm189_vm2, %v311_v33, 0 }
 0x29a   :  { %v237_v46 = vadd.f32 %v235_v40, %v4002_v39  ;;  %v403_v49 = vadd.f32 %v401_v41, %v4002_v39 }
 0x29c   :  { %v242_v47 = vsel %vm238_vm4, %v237_v46, -inf  ;;  %v407_v50 = vsel %vm238_vm4, %v403_v49, -inf }
 0x29d   :  { %243 = vmax.xlane.f32.xlu1 %v242_v47  ;;  %405 = vmax.xlane.f32.xlu0 %v404_v48 }
 0x2a1   :  { %408 = vmax.xlane.f32.xlu1 %v407_v50 }
 0x322   :  { %v241_v51 = vpop.xlane.xlu0 %240 }
 0x323   :  { %v245_v52 = vsub.f32 %v236_v36, %v241_v51  ;;  %v475_v36 = vpack.c.bf16 %v140_v35, %v140_v35 }
 0x325   :  { %v247_v53 = vmul.f32 1.442695, %v245_v52  ;;  %v480_v37 = vsel %vm189_vm2, %v475_v36, 0 }
 0x326   :  { %v244_v54 = vpop.xlane.xlu1 %243  ;;  %v406_v55 = vpop.xlane.xlu0 %405  ;;  %3423 = vmatpush3.bf16.msra.mxu0 %v480_v37 }
 0x327   :  { %3661 = vpow2.f32 %v247_v53  ;;  %v246_v56 = vsub.f32 %v237_v46, %v244_v54  ;;  %v410_v57 = vsub.f32 %v402_v43, %v406_v55  ;;  %3434 = vmatprep.subr.bf16.mxu0 %v3789_v3 }
 0x329   :  { %v249_v58 = vmul.f32 1.442695, %v246_v56  ;;  %v412_v59 = vmul.f32 1.442695, %v410_v57 }
 0x32a   :  { %v409_v60 = vpop.xlane.xlu1 %408 }
 0x32b   :  { %3663 = vpow2.f32 %v249_v58  ;;  %v411_v61 = vsub.f32 %v403_v49, %v409_v60 }
 0x32c   :  { %3665 = vpow2.f32 %v412_v59 }
 0x32d   :  { %v414_v62 = vmul.f32 1.442695, %v411_v61 }
 0x32f   :  { %3667 = vpow2.f32 %v414_v62 }
 0x334   :  { %v3662_v63 = vpop.eup %3661 }
 0x335   :  { %v251_v0 = vsel %vm238_vm4, %v3662_v63, 0.0 }
 0x336   :  { %252 = vadd.xlane.f32.xlu0 %v251_v0 }
 0x338   :  { %v3664_v1 = vpop.eup %3663 }
 0x339   :  { %v3666_v2 = vpop.eup %3665  ;;  %v254_v4 = vsel %vm238_vm4, %v3664_v1, 0.0 }
 0x33a   :  { %v416_v5 = vsel %vm238_vm4, %v3666_v2, 0.0  ;;  %255 = vadd.xlane.f32.xlu1 %v254_v4 }
 0x33b   :  { %417 = vadd.xlane.f32.xlu0 %v416_v5 }
 0x33c   :  { %v3668_v6 = vpop.eup %3667 }
 0x33d   :  { %v419_v9 = vsel %vm238_vm4, %v3668_v6, 0.0 }
 0x33e   :  { %420 = vadd.xlane.f32.xlu1 %v419_v9 }
 0x34f   :  { %427 = vrot.lane.b32.xlu1 %v3978_v17, %s4853_s28  ;;  %s4873_s28 = sld [smem:[#allocation11_spill]] }
 0x351   :  { %263 = vrot.lane.b32.xlu0 %v3978_v17, %s4855_s29  ;;  %s4882_s29 = smov 72  }
 0x353   :  { %570 = vrot.lane.b32.xlu1 %v3964_v12, %s4851_s3 }
 0x355   :  { %572 = vrot.lane.b32.xlu0 %v3970_v15, %s4851_s3  ;;  %s4875_s3 = smov 96  }
 0x357   :  { %609 = vrot.lane.b32.xlu1 %v3978_v17, %s4850_s0  ;;  %s4880_s0 = smov 80  }
 0x3bf   :  { %v253_v10 = vpop.xlane.xlu0 %252 }
 0x3c0   :  { %3669 = vrcp.f32 %v253_v10 }
 0x3c3   :  { %v256_v11 = vpop.xlane.xlu1 %255 }
 0x3c4   :  { %v418_v13 = vpop.xlane.xlu0 %417  ;;  %3671 = vrcp.f32 %v256_v11 }
 0x3c7   :  { %v421_v14 = vpop.xlane.xlu1 %420 }
 0x3c8   :  { %v264_v16 = vpop.permute.xlu0 %263  ;;  %3673 = vrcp.f32 %v421_v14 }
 0x3c9   :  { %3405 = vmatpush3.bf16.msra.mxu1 %v264_v16  ;;  %3675 = vrcp.f32 %v418_v13  ;;  %v3644_v13 = vpack.i.bf16 %v3970_v15, %v3964_v12 }
 0x3ca   :  { %3416 = vmatprep.subr.bf16.mxu1 %v3789_v3 }
 0x3cb   :  { %v428_v18 = vpop.permute.xlu1 %427 }
 0x3cc   :  { %v573_v24 = vpop.permute.xlu0 %572 }
 0x3cd   :  { %v3670_v19 = vpop.eup %3669 }
 0x3ce   :  { %v258_v22 = vmul.f32 %v3670_v19, %v3662_v63 }
 0x3cf   :  { %v571_v20 = vpop.permute.xlu1 %570 }
 0x3d0   :  { %576 = vxpose.xlu0.b32.start [1/2] (short) (narrow) %v571_v20, 8 }
 0x3d1   :  { %v3672_v21 = vpop.eup %3671 }
 0x3d2   :  { %v260_v23 = vmul.f32 %v3672_v21, %v3664_v1 }
 0x3d3   :  { %v610_v52 = vpop.permute.xlu1 %609 }
 0x3d4   :  { %577 = vxpose.xlu0.b32.end [2/2] (short) (narrow) %v573_v24, 8  ;;  %v261_v25 = vpack.c.bf16 %v260_v23, %v258_v22 }
 0x3d5   :  { %v3674_v26 = vpop.eup %3673 }
 0x3d6   :  { %3407 = vmatmul.mubr.msk.bf16.vlgmr.msra.gmra.mxu1 %vm238_vm4, %v261_v25  ;;  %v3676_v27 = vpop.eup %3675  ;;  %v425_v28 = vmul.f32 %v3674_v26, %v3668_v6 }
 0x3d7   :  { %3417 = vmatpush3.bf16.msra.mxu1 %v428_v18  ;;  %3418 = vmatprep.mubr.msk.bf16.mxu1 %vm3790_vm0, %v3789_v3  ;;  %v423_v29 = vmul.f32 %v3676_v27, %v3666_v2 }
 0x3d8   :  { %3428 = vmatprep.subr.bf16.mxu1 %v3789_v3 }
 0x3d9   :  { %v426_v30 = vpack.c.bf16 %v425_v28, %v423_v29 }
 0x3de   :  { %3419 = vmatmul.mubr.msk.bf16.vlgmr.msra.gmra.mxu1 %vm238_vm4, %v426_v30 }
 0x3df   :  { %3430 = vmatprep.mubr.msk.bf16.mxu1 %vm3790_vm0, %v3789_v3  ;;  %3429 = vmatpush3.bf16.msra.mxu1 %v527_v34 }
 0x3e0   :  { %3440 = vmatprep.subr.bf16.mxu1 %v3789_v3 }
 0x44c   :  { %v592_v44 = vpop.trf.xlu0 }
 0x44d   :  { %v608_v46 = vpack.c.bf16 %v592_v44, %v592_v44 }
 0x44f   :  { %v615_v50 = vsel %vm189_vm2, %v608_v46, 0 }
 0x496   :  { %v303_v38 = vpop.f32.mrf.mxu1 }
 0x498   :  { %v3408_v40 = vpop.f32.mrf.mxu1 }
 0x49a   :  { %v306_v41 = vpop.f32.mrf.mxu1 }
 0x49b   :  { %v310_v42 = vpack.c.bf16 %v306_v41, %v303_v38  ;;  %v141_v41 = vld [vmem:[%s4871_s2 + $0x10] sm:$0xff] }
 0x49c   :  { %v3409_v43 = vpop.f32.mrf.mxu1 }
 0x49d   :  { %3431 = vmatmul.mubr.msk.bf16.vlgmr.msra.gmra.mxu1 %vm185_vm3, %v310_v42  ;;  %v733_v42 = vpack.c.bf16 %v141_v41, %v141_v41 }
 0x49e   :  { %v467_v45 = vpop.f32.mrf.mxu1  ;;  %3442 = vmatprep.mubr.msk.bf16.mxu1 %vm3790_vm0, %v3789_v3 }
 0x49f   :  { %v738_v43 = vsel %vm189_vm2, %v733_v42, 0 }
 0x4a0   :  { %v3420_v47 = vpop.f32.mrf.mxu1 }
 0x4a2   :  { %v470_v48 = vpop.f32.mrf.mxu1 }
 0x4a3   :  { %v474_v49 = vpack.c.bf16 %v470_v48, %v467_v45 }
 0x4a4   :  { %v3421_v51 = vpop.f32.mrf.mxu1 }
 0x4a5   :  { %3425 = vmatmul.mubr.msk.bf16.vlgmr.msra.gmra.mxu0 %vm185_vm3, %v474_v49 }
 0x4a6   :  { %3435 = vmatpush3.bf16.msra.mxu0 %v615_v50  ;;  %3436 = vmatprep.mubr.msk.bf16.mxu0 %vm3790_vm0, %v3789_v3 }
 0x4a7   :  { %3446 = vmatprep.subr.bf16.mxu0 %v3789_v3 }
 0x4ad   :  { %3437 = vmatmul.mubr.msk.bf16.vlgmr.msra.gmra.mxu0 %vm185_vm3, %v610_v52 }
 0x4ae   :  { %3448 = vmatprep.mubr.msk.bf16.mxu0 %vm3790_vm0, %v3789_v3  ;;  %3447 = vmatpush3.bf16.msra.mxu0 %v738_v43 }
 0x4af   :  { %3458 = vmatprep.subr.bf16.mxu0 %v3789_v3 }
 0x55d   :  { %v563_v53 = vpop.f32.mrf.mxu1 }
 0x55f   :  { %v3432_v54 = vpop.f32.mrf.mxu1 }
 0x561   :  { %v566_v55 = vpop.f32.mrf.mxu1 }
 0x563   :  { %v3433_v56 = vpop.f32.mrf.mxu1 }
 0x565   :  { %v516_v57 = vpop.f32.mrf.mxu0 }
 0x566   :  { %v4054_v58 = vadd.f32 %v563_v53, %v516_v57 }
 0x567   :  { %v3426_v59 = vpop.f32.mrf.mxu0 }
 0x569   :  { %v519_v60 = vpop.f32.mrf.mxu0 }
 0x56a   :  { %v4056_v61 = vadd.f32 %v566_v55, %v519_v60 }
 0x56b   :  { %v3427_v62 = vpop.f32.mrf.mxu0 }
 0x56d   :  { %v651_v63 = vpop.f32.mrf.mxu0 }
 0x56e   :  { %v658_v0 = vmul.f32 0.35355338, %v651_v63 }
 0x56f   :  { %v3438_v1 = vpop.f32.mrf.mxu0 }
 0x570   :  { %v660_v2 = vadd.f32 %v658_v0, %v3996_v31 }
 0x571   :  { %v654_v4 = vpop.f32.mrf.mxu0 }
 0x572   :  { %v659_v5 = vmul.f32 0.35355338, %v654_v4  ;;  %v662_v6 = vsel %vm238_vm4, %v660_v2, -inf }
 0x573   :  { %663 = vmax.xlane.f32.xlu1 %v662_v6  ;;  %v3439_v9 = vpop.f32.mrf.mxu0 }
 0x574   :  { %v661_v10 = vadd.f32 %v659_v5, %v4002_v39 }
 0x576   :  { %v665_v11 = vsel %vm238_vm4, %v661_v10, -inf }
 0x577   :  { %666 = vmax.xlane.f32.xlu0 %v665_v11 }
 0x584   :  { %3645 = vrot.lane.b32.xlu1 %v3644_v13, %s4849_s4  ;;  %s4881_s4 = smov 112  }
 0x5fc   :  { %v664_v14 = vpop.xlane.xlu1 %663 }
 0x5fd   :  { %v668_v16 = vsub.f32 %v660_v2, %v664_v14 }
 0x5ff   :  { %v670_v18 = vmul.f32 1.442695, %v668_v16 }
 0x600   :  { %v667_v19 = vpop.xlane.xlu0 %666  ;;  %v3646_v12 = vpop.permute.xlu1 %3645 }
 0x601   :  { %3677 = vpow2.f32 %v670_v18  ;;  %v669_v20 = vsub.f32 %v661_v10, %v667_v19  ;;  %v3647_v15 = vunpack.i.l.bf16 %v3646_v12  ;;  %v3648_v26 = vunpack.i.h.bf16 %v3646_v12 }
 0x603   :  { %v672_v21 = vmul.f32 1.442695, %v669_v20 }
 0x605   :  { %3679 = vpow2.f32 %v672_v21 }
 0x60e   :  { %v3678_v22 = vpop.eup %3677 }
 0x60f   :  { %v674_v23 = vsel %vm238_vm4, %v3678_v22, 0.0 }
 0x610   :  { %675 = vadd.xlane.f32.xlu1 %v674_v23 }
 0x612   :  { %v3680_v24 = vpop.eup %3679 }
 0x613   :  { %v677_v25 = vsel %vm238_vm4, %v3680_v24, 0.0 }
 0x614   :  { %678 = vadd.xlane.f32.xlu0 %v677_v25 }
 0x621   :  { %822 = vrot.lane.b32.xlu1 %v3978_v17, %s4848_s26  ;;  %s4872_s26 = sld [smem:[#allocation10_spill]] }
 0x62a   :  { %685 = vrot.lane.b32.xlu0 %v3978_v17, %s4846_s27  ;;  %s4847_s27 = smov 40  }
 0x648   :  { %789 = vxpose.xlu0.b32.start [1/2] (short) (narrow) %v3647_v15, 8 }
 0x64c   :  { %790 = vxpose.xlu0.b32.end [2/2] (short) (narrow) %v3648_v26, 8 }
 0x699   :  { %v676_v27 = vpop.xlane.xlu1 %675 }
 0x69a   :  { %3681 = vrcp.f32 %v676_v27 }
 0x69d   :  { %v679_v28 = vpop.xlane.xlu0 %678  ;;  %v823_v40 = vpop.permute.xlu1 %822 }
 0x69e   :  { %3683 = vrcp.f32 %v679_v28 }
 0x6a1   :  { %v686_v29 = vpop.permute.xlu0 %685 }
 0x6a2   :  { %3441 = vmatpush3.bf16.msra.mxu1 %v686_v29 }
 0x6a3   :  { %3452 = vmatprep.subr.bf16.mxu1 %v3789_v3 }
 0x6a7   :  { %v3682_v30 = vpop.eup %3681 }
 0x6a8   :  { %v681_v33 = vmul.f32 %v3682_v30, %v3678_v22 }
 0x6ab   :  { %v3684_v32 = vpop.eup %3683 }
 0x6ac   :  { %v683_v34 = vmul.f32 %v3684_v32, %v3680_v24 }
 0x6ae   :  { %v684_v35 = vpack.c.bf16 %v683_v34, %v681_v33  ;;  %v3176_v34 = vld [vmem:[%s4872_s26] ss:$0 sm:$0xff] }
 0x6b0   :  { %3443 = vmatmul.mubr.msk.bf16.vlgmr.msra.gmra.mxu1 %vm238_vm4, %v684_v35 }
 0x6b1   :  { %3454 = vmatprep.mubr.msk.bf16.mxu1 %vm3790_vm0, %v3789_v3 }
 0x6c4   :  { %v805_v36 = vpop.trf.xlu0 }
 0x6c5   :  { %v821_v37 = vpack.c.bf16 %v805_v36, %v805_v36 }
 0x6c7   :  { %v828_v38 = vsel %vm189_vm2, %v821_v37, 0 }
 0x6c8   :  { %3453 = vmatpush3.bf16.msra.mxu1 %v828_v38 }
 0x6c9   :  { %3464 = vmatprep.subr.bf16.mxu1 %v3789_v3 }
 0x6cb   :  { %3455 = vmatmul.mubr.msk.bf16.vlgmr.msra.gmra.mxu1 %vm185_vm3, %v823_v40 }
 0x6cc   :  { %3466 = vmatprep.mubr.msk.bf16.mxu1 %vm3790_vm0, %v3789_v3 }
 0x770   :  { %v725_v44 = vpop.f32.mrf.mxu1 }
 0x772   :  { %v3444_v45 = vpop.f32.mrf.mxu1 }
 0x774   :  { %v728_v46 = vpop.f32.mrf.mxu1 }
 0x775   :  { %v732_v47 = vpack.c.bf16 %v728_v46, %v725_v44 }
 0x776   :  { %v3445_v48 = vpop.f32.mrf.mxu1 }
 0x777   :  { %3449 = vmatmul.mubr.msk.bf16.vlgmr.msra.gmra.mxu0 %vm185_vm3, %v732_v47 }
 0x778   :  { %3460 = vmatprep.mubr.msk.bf16.mxu0 %vm3790_vm0, %v3789_v3 }
 0x78b   :  { %v864_v49 = vpop.f32.mrf.mxu1 }
 0x78c   :  { %v871_v50 = vmul.f32 0.35355338, %v864_v49 }
 0x78d   :  { %v3456_v51 = vpop.f32.mrf.mxu1 }
 0x78e   :  { %v873_v52 = vadd.f32 %v871_v50, %v3996_v31 }
 0x78f   :  { %v867_v53 = vpop.f32.mrf.mxu1 }
 0x790   :  { %v872_v54 = vmul.f32 0.35355338, %v867_v53  ;;  %v875_v55 = vsel %vm238_vm4, %v873_v52, -inf  ;;  %v1054_v53 = vld [vmem:[%s4822_s8 + $0x10] sm:$0xff] }
 0x791   :  { %876 = vmax.xlane.f32.xlu1 %v875_v55  ;;  %v3457_v56 = vpop.f32.mrf.mxu1 }
 0x792   :  { %v874_v57 = vadd.f32 %v872_v54, %v4002_v39  ;;  %v1055_v54 = vld [vmem:[%s4822_s8 + $0x18] sm:$0xff]  ;;  %v1052_v56 = vld [vmem:[%s4822_s8] sm:$0xff] }
 0x793   :  { %v1058_v55 = vpack.c.bf16 %v1055_v54, %v1054_v53 }
 0x794   :  { %v878_v59 = vsel %vm238_vm4, %v874_v57, -inf }
 0x795   :  { %879 = vmax.xlane.f32.xlu0 %v878_v59 }
 0x81a   :  { %v877_v60 = vpop.xlane.xlu1 %876 }
 0x81b   :  { %v881_v62 = vsub.f32 %v873_v52, %v877_v60  ;;  %v1126_v60 = vld [vmem:[%s4824_s10 + $0x70] sm:$0xff] }
 0x81d   :  { %v883_v63 = vmul.f32 1.442695, %v881_v62  ;;  %v1127_v62 = vld [vmem:[%s4824_s10 + $0x78] sm:$0xff] }
 0x81e   :  { %v880_v0 = vpop.xlane.xlu0 %879 }
 0x81f   :  { %3685 = vpow2.f32 %v883_v63  ;;  %v882_v1 = vsub.f32 %v874_v57, %v880_v0  ;;  %v1053_v57 = vld [vmem:[%s4822_s8 + $0x8] sm:$0xff]  ;;  %v1124_v63 = vld [vmem:[%s4824_s10 + $0x60] sm:$0xff]  ;;  %v1136_v0 = vpack.c.bf16 %v1127_v62, %v1126_v60 }
 0x820   :  { %v1057_v59 = vpack.c.bf16 %v1053_v57, %v1052_v56 }
 0x821   :  { %v885_v2 = vmul.f32 1.442695, %v882_v1  ;;  %v1125_v1 = vld [vmem:[%s4824_s10 + $0x68] sm:$0xff] }
 0x823   :  { %3687 = vpow2.f32 %v885_v2  ;;  %v1135_v2 = vpack.c.bf16 %v1125_v1, %v1124_v63 }
 0x82c   :  { %v3686_v4 = vpop.eup %3685 }
 0x82d   :  { %v887_v5 = vsel %vm238_vm4, %v3686_v4, 0.0 }
 0x82e   :  { %888 = vadd.xlane.f32.xlu1 %v887_v5  ;;  %v1123_v5 = vld [vmem:[%s4824_s10 + $0x58] sm:$0xff] }
 0x830   :  { %v3688_v6 = vpop.eup %3687 }
 0x831   :  { %v890_v9 = vsel %vm238_vm4, %v3688_v6, 0.0 }
 0x832   :  { %891 = vadd.xlane.f32.xlu1 %v890_v9  ;;  %v1120_v9 = vld [vmem:[%s4824_s10 + $0x40] sm:$0xff] }
 0x837   :  { %v774_v10 = vpop.f32.mrf.mxu0 }
 0x838   :  { %v781_v11 = vadd.f32 %v774_v10, %v4054_v58  ;;  %v1121_v10 = vld [vmem:[%s4824_s10 + $0x48] sm:$0xff] }
 0x839   :  { %v3450_v13 = vpop.f32.mrf.mxu0 }
 0x83a   :  { %v1118_v13 = vld [vmem:[%s4824_s10 + $0x30] sm:$0xff] }
 0x83b   :  { %v777_v14 = vpop.f32.mrf.mxu0 }
 0x83c   :  { %v782_v16 = vadd.f32 %v777_v14, %v4056_v61  ;;  %v1119_v14 = vld [vmem:[%s4824_s10 + $0x38] sm:$0xff] }
 0x83d   :  { %v3451_v18 = vpop.f32.mrf.mxu0 }
 0x843   :  { %898 = vrot.lane.b32.xlu1 %v3978_v17, %s4847_s27  ;;  %v142_v17 = vld [vmem:[%s4871_s2 + $0x18] sm:$0xff]  ;;  %s4883_s27 = smov 104  }
 0x844   :  { %v946_v61 = vpack.c.bf16 %v142_v17, %v142_v17 }
 0x846   :  { %v951_v12 = vsel %vm189_vm2, %v946_v61, 0 }
 0x847   :  { %3465 = vmatpush3.bf16.msra.mxu1 %v951_v12 }
 0x848   :  { %3478 = vmatprep.subr.bf16.mxu1 %v3789_v3 }
 0x8b7   :  { %v889_v19 = vpop.xlane.xlu1 %888 }
 0x8b8   :  { %3689 = vrcp.f32 %v889_v19 }
 0x8bb   :  { %v892_v20 = vpop.xlane.xlu1 %891 }
 0x8bc   :  { %3691 = vrcp.f32 %v892_v20 }
 0x8bf   :  { %v899_v21 = vpop.permute.xlu1 %898 }
 0x8c0   :  { %3459 = vmatpush3.bf16.msra.mxu0 %v899_v21 }
 0x8c1   :  { %3470 = vmatprep.subr.bf16.mxu0 %v3789_v3 }
 0x8c5   :  { %v3690_v22 = vpop.eup %3689 }
 0x8c6   :  { %v894_v58 = vmul.f32 %v3690_v22, %v3686_v4  ;;  %v1122_v4 = vld [vmem:[%s4824_s10 + $0x50] sm:$0xff] }
 0x8c9   :  { %v3692_v23 = vpop.eup %3691 }
 0x8ca   :  { %v896_v24 = vmul.f32 %v3692_v23, %v3688_v6  ;;  %v1134_v6 = vpack.c.bf16 %v1123_v5, %v1122_v4 }
 0x8cc   :  { %v897_v25 = vpack.c.bf16 %v896_v24, %v894_v58 }
 0x8ce   :  { %3461 = vmatmul.mubr.msk.bf16.vlgmr.msra.gmra.mxu0 %vm238_vm4, %v897_v25  ;;  %v3177_v25 = vld [vmem:[%s4873_s28] ss:$0 sm:$0xff] }
 0x8cf   :  { %3474 = vmatprep.mubr.msk.bf16.mxu0 %vm3790_vm0, %v3789_v3  ;;  %3471 = vmatpush3.bf16.msra.mxu0 %v1058_v55 }
 0x8d0   :  { %3472 = vmatprep.subr.bf16.mxu0 %v3789_v3 }
 0x8d3   :  { %3473 = vmatpush3.bf16.msra.mxu0 %v1057_v59 }
 0x8d4   :  { %3498 = vmatprep.subr.bf16.mxu0 %v3789_v3 }
 0x98e   :  { %v938_v15 = vpop.f32.mrf.mxu0 }
 0x990   :  { %v3462_v26 = vpop.f32.mrf.mxu0 }
 0x992   :  { %v941_v27 = vpop.f32.mrf.mxu0 }
 0x993   :  { %v945_v28 = vpack.c.bf16 %v941_v27, %v938_v15  ;;  %v3178_v15 = vld [vmem:[%s4874_s25] ss:$0 sm:$0xff] }
 0x994   :  { %v3463_v29 = vpop.f32.mrf.mxu0 }
 0x995   :  { %3467 = vmatmul.mubr.msk.bf16.vlgmr.msra.gmra.mxu1 %vm185_vm3, %v945_v28 }
 0x996   :  { %3494 = vmatprep.mubr.msk.bf16.mxu1 %vm3790_vm0, %v3789_v3  ;;  %3479 = vmatpush3.bf16.msra.mxu1 %v1136_v0 }
 0x997   :  { %3480 = vmatprep.subr.bf16.mxu1 %v3789_v3 }
 0x99a   :  { %3481 = vmatpush3.bf16.msra.mxu1 %v1135_v2 }
 0x99b   :  { %3482 = vmatprep.subr.bf16.mxu1 %v3789_v3 }
 0x99e   :  { %3483 = vmatpush3.bf16.msra.mxu1 %v1134_v6 }
 0x99f   :  { %3484 = vmatprep.subr.bf16.mxu1 %v3789_v3 }
 0xa55   :  { %v987_v30 = vpop.f32.mrf.mxu1 }
 0xa56   :  { %v994_v32 = vadd.f32 %v987_v30, %v781_v11  ;;  %v1133_v11 = vpack.c.bf16 %v1121_v10, %v1120_v9  ;;  %v1116_v30 = vld [vmem:[%s4824_s10 + $0x20] sm:$0xff] }
 0xa57   :  { %v3468_v33 = vpop.f32.mrf.mxu1 }
 0xa58   :  { %v996_v35 = vadd.f32 %v994_v32, %v3947_v7  ;;  %3485 = vmatpush3.bf16.msra.mxu1 %v1133_v11  ;;  %v1117_v32 = vld [vmem:[%s4824_s10 + $0x28] sm:$0xff]  ;;  %v3186_v11 = vld [vmem:[%s4867_s24 + $0x30] sm:$0xff] }
 0xa59   :  { %v990_v36 = vpop.f32.mrf.mxu1  ;;  %3486 = vmatprep.subr.bf16.mxu1 %v3789_v3  ;;  %v1131_v33 = vpack.c.bf16 %v1117_v32, %v1116_v30 }
 0xa5a   :  { %v995_v37 = vadd.f32 %v990_v36, %v782_v16  ;;  %v1005_v38 = vadd.f32 %v3176_v34, %v996_v35  ;;  %v1132_v16 = vpack.c.bf16 %v1119_v14, %v1118_v13  ;;  %v1115_v35 = vld [vmem:[%s4824_s10 + $0x18] sm:$0xff] }
 0xa5b   :  { %v3469_v40 = vpop.f32.mrf.mxu1  ;;  %v3187_v13 = vld [vmem:[%s4867_s24 + $0x38] sm:$0xff] }
 0xa5c   :  { %v997_v41 = vadd.f32 %v995_v37, %v3952_v8  ;;  %v1009_v42 = vsel %vm94_vm1, %v1005_v38, 0.0  ;;  %3487 = vmatpush3.bf16.msra.mxu1 %v1132_v16  ;;  %v1112_v37 = vld [vmem:[%s4824_s10] sm:$0xff]  ;;  %v1238_v14 = vpack.c.bf16 %v3187_v13, %v3186_v11 }
 0xa5d   :  { %1010 = vadd.xlane.f32.xlu1 %v1009_v42  ;;  %3488 = vmatprep.subr.bf16.mxu1 %v3789_v3  ;;  %v3184_v16 = vld [vmem:[%s4867_s24 + $0x20] sm:$0xff] }
 0xa5e   :  { %v1006_v43 = vadd.f32 %v3176_v34, %v997_v41  ;;  %v1114_v34 = vld [vmem:[%s4824_s10 + $0x10] sm:$0xff]  ;;  %v3179_v41 = vld [vmem:[%s4823_s9] ss:$0 sm:$0xff] }
 0xa5f   :  { %v1130_v36 = vpack.c.bf16 %v1115_v35, %v1114_v34 }
 0xa60   :  { %v1012_v44 = vsel %vm94_vm1, %v1006_v43, 0.0  ;;  %3489 = vmatpush3.bf16.msra.mxu1 %v1131_v33  ;;  %v3189_v33 = vld [vmem:[%s4869_s30 + $0x1] ss:$0 sm:$0xff]  ;;  %s4876_s30 = smov 88  }
 0xa61   :  { %1013 = vadd.xlane.f32.xlu0 %v1012_v44  ;;  %3490 = vmatprep.subr.bf16.mxu1 %v3789_v3 }
 0xa64   :  { %3491 = vmatpush3.bf16.msra.mxu1 %v1130_v36 }
 0xa65   :  { %3492 = vmatprep.subr.bf16.mxu1 %v3789_v3 }
 0xae6   :  { %v1011_v45 = vpop.xlane.xlu1 %1010 }
 0xae7   :  { %v1016_v46 = vmul.f32 0.03125, %v1011_v45 }
 0xae9   :  { %v1018_v47 = vsub.f32 %v1005_v38, %v1016_v46  ;;  %v1113_v38 = vld [vmem:[%s4824_s10 + $0x8] sm:$0xff] }
 0xaea   :  { %v1014_v48 = vpop.xlane.xlu0 %1013  ;;  %v1129_v40 = vpack.c.bf16 %v1113_v38, %v1112_v37 }
 0xaeb   :  { %v1017_v49 = vmul.f32 0.03125, %v1014_v48  ;;  %v1020_v50 = vmul.f32 %v1018_v47, %v1018_v47 }
 0xaec   :  { %3493 = vmatpush3.bf16.msra.mxu1 %v1129_v40 }
 0xaed   :  { %v1019_v7 = vsub.f32 %v1006_v43, %v1017_v49  ;;  %v1022_v51 = vsel %vm94_vm1, %v1020_v50, 0.0  ;;  %3524 = vmatprep.subr.bf16.mxu1 %v3789_v3 }
 0xaee   :  { %1023 = vadd.xlane.f32.xlu0 %v1022_v51 }
 0xaef   :  { %v1021_v52 = vmul.f32 %v1019_v7, %v1019_v7 }
 0xaf1   :  { %v1025_v8 = vsel %vm94_vm1, %v1021_v52, 0.0 }
 0xaf2   :  { %1026 = vadd.xlane.f32.xlu0 %v1025_v8 }
 0xb77   :  { %v1024_v18 = vpop.xlane.xlu0 %1023 }
 0xb78   :  { %v1028_v19 = vmul.f32 0.03125, %v1024_v18  ;;  %v3185_v18 = vld [vmem:[%s4867_s24 + $0x28] sm:$0xff]  ;;  %s4884_s24 = smov 48  }
 0xb7a   :  { %v1030_v20 = vadd.f32 1e-05, %v1028_v19  ;;  %v1237_v19 = vpack.c.bf16 %v3185_v18, %v3184_v16 }
 0xb7b   :  { %v1027_v21 = vpop.xlane.xlu0 %1026 }
 0xb7c   :  { %3693 = vrsqrt.f32 %v1030_v20  ;;  %v1029_v22 = vmul.f32 0.03125, %v1027_v21 }
 0xb7e   :  { %v1031_v23 = vadd.f32 1e-05, %v1029_v22 }
 0xb80   :  { %3695 = vrsqrt.f32 %v1031_v23 }
 0xb89   :  { %v3694_v58 = vpop.eup %3693 }
 0xb8a   :  { %v1034_v24 = vmul.f32 %v3694_v58, %v1018_v47 }
 0xb8c   :  { %v1042_v12 = vmul.f32 %v3177_v25, %v1034_v24 }
 0xb8d   :  { %v3696_v17 = vpop.eup %3695 }
 0xb8e   :  { %v1035_v61 = vmul.f32 %v3696_v17, %v1019_v7  ;;  %v1050_v27 = vadd.f32 %v3178_v15, %v1042_v12  ;;  %v3181_v7 = vld [vmem:[%s4825_s11] ss:$0 sm:$0xff] }
 0xb90   :  { %v1043_v26 = vmul.f32 %v3177_v25, %v1035_v61  ;;  %v3182_v61 = vld [vmem:[%s4826_s12] ss:$0 sm:$0xff] }
 0xb92   :  { %v1051_v28 = vadd.f32 %v3178_v15, %v1043_v26 }
 0xb94   :  { %v1056_v29 = vpack.c.bf16 %v1051_v28, %v1050_v27 }
 0xb96   :  { %3475 = vmatmul.mubr.msk.bf16.vlgmr.msra.gmra.mxu0 %vm94_vm1, %v1056_v29 }
 0xb97   :  { %3502 = vmatprep.mubr.msk.bf16.mxu0 %vm3790_vm0, %v3789_v3  ;;  %3499 = vmatpush3.bf16.msra.mxu0 %v1238_v14 }
 0xb98   :  { %3500 = vmatprep.subr.bf16.mxu0 %v3789_v3 }
 0xb9b   :  { %3501 = vmatpush3.bf16.msra.mxu0 %v1237_v19 }
 0xb9c   :  { %3506 = vmatprep.subr.bf16.mxu0 %v3789_v3 }
 0xc56   :  { %v1103_v42 = vpop.f32.mrf.mxu0 }
 0xc57   :  { %v1104_v44 = vadd.f32 %v3179_v41, %v1103_v42 }
 0xc58   :  { %v3476_v43 = vpop.f32.mrf.mxu0 }
 0xc59   :  { %v1110_v48 = vmax.f32 %v1104_v44, 0.0 }
 0xc5a   :  { %v1106_v45 = vpop.f32.mrf.mxu0 }
 0xc5b   :  { %v1107_v46 = vadd.f32 %v3179_v41, %v1106_v45 }
 0xc5c   :  { %v3477_v47 = vpop.f32.mrf.mxu0 }
 0xc5d   :  { %v1111_v49 = vmax.f32 %v1107_v46, 0.0 }
 0xc5f   :  { %v1128_v50 = vpack.c.bf16 %v1111_v49, %v1110_v48 }
 0xc61   :  { %3495 = vmatmul.mubr.bf16.vlgmr.msra.gmra.mxu1 %v1128_v50 }
 0xc62   :  { %3526 = vmatprep.mubr.msk.bf16.mxu1 %vm3790_vm0, %v3789_v3 }
 0xd21   :  { %v1178_v51 = vpop.f32.mrf.mxu1 }
 0xd22   :  { %v1179_v52 = vadd.f32 %v3181_v7, %v1178_v51 }
 0xd23   :  { %v3496_v8 = vpop.f32.mrf.mxu1 }
 0xd24   :  { %v1185_v53 = vadd.f32 %v1179_v52, %v1050_v27  ;;  %v3183_v27 = vld [vmem:[%s4827_s13] ss:$0 sm:$0xff] }
 0xd25   :  { %v1181_v54 = vpop.f32.mrf.mxu1 }
 0xd26   :  { %v1182_v55 = vadd.f32 %v3181_v7, %v1181_v54  ;;  %v1189_v56 = vsel %vm94_vm1, %v1185_v53, 0.0 }
 0xd27   :  { %1190 = vadd.xlane.f32.xlu0 %v1189_v56  ;;  %v3497_v57 = vpop.f32.mrf.mxu1 }
 0xd28   :  { %v1186_v59 = vadd.f32 %v1182_v55, %v1051_v28 }
 0xd2a   :  { %v1192_v60 = vsel %vm94_vm1, %v1186_v59, 0.0 }
 0xd2b   :  { %1193 = vadd.xlane.f32.xlu0 %v1192_v60 }
 0xdb0   :  { %v1191_v62 = vpop.xlane.xlu0 %1190 }
 0xdb1   :  { %v1195_v63 = vmul.f32 0.03125, %v1191_v62 }
 0xdb3   :  { %v1197_v0 = vsub.f32 %v1185_v53, %v1195_v63 }
 0xdb4   :  { %v1194_v1 = vpop.xlane.xlu0 %1193 }
 0xdb5   :  { %v1196_v2 = vmul.f32 0.03125, %v1194_v1  ;;  %v1199_v4 = vmul.f32 %v1197_v0, %v1197_v0 }
 0xdb7   :  { %v1198_v5 = vsub.f32 %v1186_v59, %v1196_v2  ;;  %v1201_v6 = vsel %vm94_vm1, %v1199_v4, 0.0 }
 0xdb8   :  { %1202 = vadd.xlane.f32.xlu1 %v1201_v6 }
 0xdb9   :  { %v1200_v9 = vmul.f32 %v1198_v5, %v1198_v5 }
 0xdbb   :  { %v1204_v10 = vsel %vm94_vm1, %v1200_v9, 0.0 }
 0xdbc   :  { %1205 = vadd.xlane.f32.xlu0 %v1204_v10 }
 0xe41   :  { %v1203_v20 = vpop.xlane.xlu1 %1202 }
 0xe42   :  { %v1207_v21 = vmul.f32 0.03125, %v1203_v20 }
 0xe44   :  { %v1209_v22 = vadd.f32 1e-05, %v1207_v21 }
 0xe45   :  { %v1206_v23 = vpop.xlane.xlu0 %1205 }
 0xe46   :  { %3697 = vrsqrt.f32 %v1209_v22  ;;  %v1208_v58 = vmul.f32 0.03125, %v1206_v23 }
 0xe48   :  { %v1210_v24 = vadd.f32 1e-05, %v1208_v58 }
 0xe4a   :  { %3699 = vrsqrt.f32 %v1210_v24 }
 0xe53   :  { %v3698_v25 = vpop.eup %3697 }
 0xe54   :  { %v1213_v17 = vmul.f32 %v3698_v25, %v1197_v0 }
 0xe56   :  { %v1221_v26 = vmul.f32 %v3182_v61, %v1213_v17 }
 0xe57   :  { %v3700_v12 = vpop.eup %3699 }
 0xe58   :  { %v1214_v15 = vmul.f32 %v3700_v12, %v1198_v5  ;;  %v4230_v29 = vadd.f32 %v3183_v27, %v1221_v26  ;;  %v4288_v26 = vld [vmem:[%s4870_s6] sm:$0xff] }
 0xe5a   :  { %v1222_v28 = vmul.f32 %v3182_v61, %v1214_v15 }
 0xe5c   :  { %v4232_v30 = vadd.f32 %v3183_v27, %v1222_v28 }
 0xe5e   :  { %v1236_v32 = vpack.c.bf16 %v4232_v30, %v4230_v29 }
 0xe60   :  { %3503 = vmatmul.mubr.msk.bf16.vlgmr.msra.gmra.mxu0 %vm94_vm1, %v1236_v32 }
 0xe61   :  { %3508 = vmatprep.mubr.msk.bf16.mxu0 %vm3790_vm0, %v3789_v3 }
 0xf20   :  { %v1284_v34 = vpop.f32.mrf.mxu0 }
 0xf21   :  { %v4242_v35 = vadd.f32 %v3189_v33, %v1284_v34 }
 0xf22   :  { %v3504_v36 = vpop.f32.mrf.mxu0 }
 0xf23   :  { %1298 = vrot.lane.b32.xlu1 %v4242_v35, %s4875_s3  ;;  %v4295_v36 = vld [vmem:[%s4870_s6 + $0x8] sm:$0xff]  ;;  %s4879_s6 = smov 56  }
 0xf24   :  { %v1287_v37 = vpop.f32.mrf.mxu0 }
 0xf25   :  { %v4246_v38 = vadd.f32 %v3189_v33, %v1287_v37 }
 0xf26   :  { %v3505_v40 = vpop.f32.mrf.mxu0 }
 0xf27   :  { %1300 = vrot.lane.b32.xlu0 %v4246_v38, %s4875_s3  ;;  %v4253_v46 = vpack.c.bf16 %v4246_v38, %v4242_v35  ;;  %v4266_v55 = vpack.i.bf16 %v4246_v38, %v4242_v35  ;;  %s3803_s3 = smov [#allocation2]  }
 0xf95   :  { %v1299_v41 = vpop.permute.xlu1 %1298 }
 0xf96   :  { %1304 = vxpose.xlu1.b32.start [1/2] (short) (narrow) %v1299_v41, 8 }
 0xf99   :  { %v1301_v42 = vpop.permute.xlu0 %1300 }
 0xf9a   :  { %1305 = vxpose.xlu1.b32.end [2/2] (short) (narrow) %v1301_v42, 8 }
0x1012   :  { %v1320_v43 = vpop.trf.xlu1 }
0x1013   :  { %v1337_v44 = vpack.c.bf16 %v1320_v43, %v1320_v43 }
0x1015   :  { %v1342_v45 = vsel %vm189_vm2, %v1337_v44, 0 }
0x1016   :  { %3507 = vmatpush3.bf16.msra.mxu0 %v1342_v45 }
0x1017   :  { %3512 = vmatprep.subr.bf16.mxu0 %v3789_v3 }
0x1019   :  { %3509 = vmatmul.mubr.msk.bf16.vlgmr.msra.gmra.mxu0 %vm185_vm3, %v4253_v46 }
0x101a   :  { %3514 = vmatprep.mubr.msk.bf16.mxu0 %vm3790_vm0, %v3789_v3 }
0x10d9   :  { %v1378_v47 = vpop.f32.mrf.mxu0 }
0x10da   :  { %v1385_v48 = vmul.f32 0.35355338, %v1378_v47 }
0x10db   :  { %v3510_v49 = vpop.f32.mrf.mxu0 }
0x10dc   :  { %v1387_v50 = vadd.f32 %v1385_v48, %v3996_v31 }
0x10dd   :  { %v1381_v7 = vpop.f32.mrf.mxu0 }
0x10de   :  { %v1386_v51 = vmul.f32 0.35355338, %v1381_v7  ;;  %v1389_v52 = vsel %vm238_vm4, %v1387_v50, -inf }
0x10df   :  { %1390 = vmax.xlane.f32.xlu0 %v1389_v52  ;;  %v3511_v8 = vpop.f32.mrf.mxu0 }
0x10e0   :  { %v1388_v53 = vadd.f32 %v1386_v51, %v4002_v39 }
0x10e2   :  { %v1392_v54 = vsel %vm238_vm4, %v1388_v53, -inf }
0x10e3   :  { %1393 = vmax.xlane.f32.xlu0 %v1392_v54 }
0x10f9   :  { %3650 = vrot.lane.b32.xlu0 %v4266_v55, %s4876_s30 }
0x1168   :  { %v1391_v56 = vpop.xlane.xlu0 %1390 }
0x1169   :  { %v1395_v31 = vsub.f32 %v1387_v50, %v1391_v56 }
0x116b   :  { %v1397_v57 = vmul.f32 1.442695, %v1395_v31 }
0x116c   :  { %v1394_v59 = vpop.xlane.xlu0 %1393 }
0x116d   :  { %3701 = vpow2.f32 %v1397_v57  ;;  %v1396_v60 = vsub.f32 %v1388_v53, %v1394_v59 }
0x116f   :  { %v1399_v62 = vmul.f32 1.442695, %v1396_v60 }
0x1170   :  { %v3651_v2 = vpop.permute.xlu0 %3650 }
0x1171   :  { %3703 = vpow2.f32 %v1399_v62  ;;  %v3652_v4 = vunpack.i.l.bf16 %v3651_v2  ;;  %v3653_v5 = vunpack.i.h.bf16 %v3651_v2 }
0x117a   :  { %v3702_v63 = vpop.eup %3701 }
0x117b   :  { %v1401_v39 = vsel %vm238_vm4, %v3702_v63, 0.0 }
0x117c   :  { %1402 = vadd.xlane.f32.xlu1 %v1401_v39 }
0x117e   :  { %v3704_v0 = vpop.eup %3703 }
0x117f   :  { %v1404_v1 = vsel %vm238_vm4, %v3704_v0, 0.0 }
0x1180   :  { %1405 = vadd.xlane.f32.xlu0 %v1404_v1 }
0x118d   :  { %1413 = vrot.lane.b32.xlu1 %v4253_v46, %s4877_s5 }
0x1196   :  { %1501 = vrot.lane.b32.xlu0 %v4253_v46, %s4878_s1 }
0x11b6   :  { %1468 = vxpose.xlu1.b32.start [1/2] (short) (narrow) %v3652_v4, 8 }
0x11ba   :  { %1469 = vxpose.xlu1.b32.end [2/2] (short) (narrow) %v3653_v5, 8 }
0x1205   :  { %v1403_v6 = vpop.xlane.xlu1 %1402 }
0x1206   :  { %3705 = vrcp.f32 %v1403_v6 }
0x1209   :  { %v1414_v9 = vpop.permute.xlu1 %1413  ;;  %v1406_v10 = vpop.xlane.xlu0 %1405 }
0x120a   :  { %3707 = vrcp.f32 %v1406_v10  ;;  %3513 = vmatpush3.bf16.msra.mxu0 %v1414_v9 }
0x120b   :  { %3518 = vmatprep.subr.bf16.mxu0 %v3789_v3 }
0x120d   :  { %v1502_v22 = vpop.permute.xlu0 %1501 }
0x1213   :  { %v3706_v11 = vpop.eup %3705 }
0x1214   :  { %v1408_v14 = vmul.f32 %v3706_v11, %v3702_v63  ;;  %v3192_v63 = vld [vmem:[%s4871_s2 + $0x28] sm:$0xff] }
0x1215   :  { %v1625_v39 = vpack.c.bf16 %v3192_v63, %v3192_v63 }
0x1217   :  { %v3708_v13 = vpop.eup %3707 }
0x1218   :  { %v1410_v16 = vmul.f32 %v3708_v13, %v3704_v0  ;;  %v1630_v0 = vsel %vm189_vm2, %v1625_v39, 0 }
0x121a   :  { %v1411_v18 = vpack.c.bf16 %v1410_v16, %v1408_v14 }
0x121c   :  { %3515 = vmatmul.mubr.msk.bf16.vlgmr.msra.gmra.mxu0 %vm238_vm4, %v1411_v18 }
0x121d   :  { %3520 = vmatprep.mubr.msk.bf16.mxu0 %vm3790_vm0, %v3789_v3 }
0x1232   :  { %v1484_v19 = vpop.trf.xlu1 }
0x1233   :  { %v1500_v20 = vpack.c.bf16 %v1484_v19, %v1484_v19 }
0x1235   :  { %v1507_v21 = vsel %vm189_vm2, %v1500_v20, 0 }
0x1236   :  { %3519 = vmatpush3.bf16.msra.mxu0 %v1507_v21 }
0x1237   :  { %3530 = vmatprep.subr.bf16.mxu0 %v3789_v3 }
0x1239   :  { %3521 = vmatmul.mubr.msk.bf16.vlgmr.msra.gmra.mxu0 %vm185_vm3, %v1502_v22 }
0x123a   :  { %3532 = vmatprep.mubr.msk.bf16.mxu0 %vm3790_vm0, %v3789_v3  ;;  %3531 = vmatpush3.bf16.msra.mxu0 %v1630_v0 }
0x123b   :  { %3542 = vmatprep.subr.bf16.mxu0 %v3789_v3 }
0x12dc   :  { %v1453_v23 = vpop.f32.mrf.mxu0 }
0x12de   :  { %v3516_v58 = vpop.f32.mrf.mxu0 }
0x12e0   :  { %v1456_v24 = vpop.f32.mrf.mxu0 }
0x12e1   :  { %v1460_v25 = vpack.c.bf16 %v1456_v24, %v1453_v23 }
0x12e2   :  { %v3517_v17 = vpop.f32.mrf.mxu0 }
0x12f9   :  { %v1543_v61 = vpop.f32.mrf.mxu0 }
0x12fa   :  { %v1550_v12 = vmul.f32 0.35355338, %v1543_v61 }
0x12fb   :  { %v3522_v15 = vpop.f32.mrf.mxu0 }
0x12fc   :  { %v1552_v27 = vadd.f32 %v4288_v26, %v1550_v12 }
0x12fd   :  { %v1546_v28 = vpop.f32.mrf.mxu0 }
0x12fe   :  { %v1551_v32 = vmul.f32 0.35355338, %v1546_v28  ;;  %v1554_v33 = vsel %vm238_vm4, %v1552_v27, -inf }
0x12ff   :  { %1555 = vmax.xlane.f32.xlu0 %v1554_v33  ;;  %v3523_v34 = vpop.f32.mrf.mxu0 }
0x1300   :  { %v1553_v37 = vadd.f32 %v4295_v36, %v1551_v32 }
0x1302   :  { %v1557_v40 = vsel %vm238_vm4, %v1553_v37, -inf }
0x1303   :  { %1558 = vmax.xlane.f32.xlu1 %v1557_v40 }
0x1388   :  { %v1556_v41 = vpop.xlane.xlu0 %1555 }
0x1389   :  { %v1560_v42 = vsub.f32 %v1552_v27, %v1556_v41 }
0x138b   :  { %v1562_v43 = vmul.f32 1.442695, %v1560_v42 }
0x138c   :  { %v1559_v44 = vpop.xlane.xlu1 %1558 }
0x138d   :  { %3709 = vpow2.f32 %v1562_v43  ;;  %v1561_v45 = vsub.f32 %v1553_v37, %v1559_v44 }
0x138f   :  { %v1564_v47 = vmul.f32 1.442695, %v1561_v45 }
0x1391   :  { %3711 = vpow2.f32 %v1564_v47 }
0x139a   :  { %v3710_v48 = vpop.eup %3709 }
0x139b   :  { %v1566_v49 = vsel %vm238_vm4, %v3710_v48, 0.0 }
0x139c   :  { %1567 = vadd.xlane.f32.xlu0 %v1566_v49 }
0x139e   :  { %v3712_v50 = vpop.eup %3711 }
0x139f   :  { %v1569_v7 = vsel %vm238_vm4, %v3712_v50, 0.0 }
0x13a0   :  { %1570 = vadd.xlane.f32.xlu0 %v1569_v7 }
0x13b6   :  { %1577 = vrot.lane.b32.xlu0 %v4253_v46, %s4879_s6 }
0x13ba   :  { %1720 = vrot.lane.b32.xlu0 %v4242_v35, %s4880_s0  ;;  %v3191_v35 = vld [vmem:[%s4871_s2 + $0x20] sm:$0xff] }
0x13be   :  { %1722 = vrot.lane.b32.xlu0 %v4246_v38, %s4880_s0  ;;  %v1461_v38 = vpack.c.bf16 %v3191_v35, %v3191_v35 }
0x13c0   :  { %v1677_v62 = vsel %vm189_vm2, %v1461_v38, 0 }
0x13c2   :  { %1759 = vrot.lane.b32.xlu0 %v4253_v46, %s4881_s4 }
0x1425   :  { %v1568_v51 = vpop.xlane.xlu0 %1567 }
0x1426   :  { %3713 = vrcp.f32 %v1568_v51 }
0x1429   :  { %v1571_v52 = vpop.xlane.xlu0 %1570 }
0x142a   :  { %3715 = vrcp.f32 %v1571_v52 }
0x142d   :  { %v1578_v8 = vpop.permute.xlu0 %1577 }
0x142e   :  { %3525 = vmatpush3.bf16.msra.mxu1 %v1578_v8 }
0x142f   :  { %3536 = vmatprep.subr.bf16.mxu1 %v3789_v3 }
0x1431   :  { %v1721_v53 = vpop.permute.xlu0 %1720 }
0x1432   :  { %1726 = vxpose.xlu1.b32.start [1/2] (short) (narrow) %v1721_v53, 8 }
0x1433   :  { %v3714_v54 = vpop.eup %3713 }
0x1434   :  { %v1573_v57 = vmul.f32 %v3714_v54, %v3710_v48 }
0x1435   :  { %v1723_v56 = vpop.permute.xlu0 %1722 }
0x1436   :  { %1727 = vxpose.xlu1.b32.end [2/2] (short) (narrow) %v1723_v56, 8 }
0x1437   :  { %v3716_v31 = vpop.eup %3715 }
0x1438   :  { %v1575_v59 = vmul.f32 %v3716_v31, %v3712_v50 }
0x1439   :  { %v1760_v18 = vpop.permute.xlu0 %1759 }
0x143a   :  { %v1576_v60 = vpack.c.bf16 %v1575_v59, %v1573_v57  ;;  %v3193_v57 = vld [vmem:[%s4871_s2 + $0x30] sm:$0xff] }
0x143b   :  { %v1883_v59 = vpack.c.bf16 %v3193_v57, %v3193_v57 }
0x143c   :  { %3527 = vmatmul.mubr.msk.bf16.vlgmr.msra.gmra.mxu1 %vm238_vm4, %v1576_v60 }
0x143d   :  { %3537 = vmatpush3.bf16.msra.mxu1 %v1677_v62  ;;  %3538 = vmatprep.mubr.msk.bf16.mxu1 %vm3790_vm0, %v3789_v3  ;;  %v1888_v60 = vsel %vm189_vm2, %v1883_v59, 0 }
0x143e   :  { %3548 = vmatprep.subr.bf16.mxu1 %v3789_v3 }
0x1444   :  { %3539 = vmatmul.mubr.msk.bf16.vlgmr.msra.gmra.mxu1 %vm185_vm3, %v1460_v25 }
0x1445   :  { %3550 = vmatprep.mubr.msk.bf16.mxu1 %vm3790_vm0, %v3789_v3 }
0x14ae   :  { %v1742_v1 = vpop.trf.xlu1 }
0x14af   :  { %v1758_v4 = vpack.c.bf16 %v1742_v1, %v1742_v1 }
0x14b1   :  { %v1765_v10 = vsel %vm189_vm2, %v1758_v4, 0 }
0x14fc   :  { %v1617_v2 = vpop.f32.mrf.mxu1 }
0x14fe   :  { %v3528_v5 = vpop.f32.mrf.mxu1 }
0x1500   :  { %v1620_v6 = vpop.f32.mrf.mxu1 }
0x1501   :  { %v1624_v9 = vpack.c.bf16 %v1620_v6, %v1617_v2 }
0x1502   :  { %v3529_v11 = vpop.f32.mrf.mxu1 }
0x1503   :  { %3533 = vmatmul.mubr.msk.bf16.vlgmr.msra.gmra.mxu0 %vm185_vm3, %v1624_v9 }
0x1504   :  { %v4328_v13 = vpop.f32.mrf.mxu1  ;;  %3543 = vmatpush3.bf16.msra.mxu0 %v1765_v10  ;;  %3544 = vmatprep.mubr.msk.bf16.mxu0 %vm3790_vm0, %v3789_v3 }
0x1505   :  { %3554 = vmatprep.subr.bf16.mxu0 %v3789_v3 }
0x1506   :  { %v3540_v14 = vpop.f32.mrf.mxu1 }
0x1508   :  { %v4333_v16 = vpop.f32.mrf.mxu1 }
0x150a   :  { %v3541_v19 = vpop.f32.mrf.mxu1 }
0x150b   :  { %3545 = vmatmul.mubr.msk.bf16.vlgmr.msra.gmra.mxu0 %vm185_vm3, %v1760_v18 }
0x150c   :  { %3556 = vmatprep.mubr.msk.bf16.mxu0 %vm3790_vm0, %v3789_v3  ;;  %3555 = vmatpush3.bf16.msra.mxu0 %v1888_v60 }
0x150d   :  { %3566 = vmatprep.subr.bf16.mxu0 %v3789_v3 }
0x15c3   :  { %v4338_v20 = vpop.f32.mrf.mxu0 }
0x15c5   :  { %v3534_v21 = vpop.f32.mrf.mxu0 }
0x15c7   :  { %v4340_v22 = vpop.f32.mrf.mxu0 }
0x15c9   :  { %v3535_v23 = vpop.f32.mrf.mxu0 }
0x15cb   :  { %v1801_v58 = vpop.f32.mrf.mxu0 }
0x15cc   :  { %v1808_v24 = vmul.f32 0.35355338, %v1801_v58 }
0x15cd   :  { %v3546_v25 = vpop.f32.mrf.mxu0 }
0x15ce   :  { %v1810_v17 = vadd.f32 %v4288_v26, %v1808_v24 }
0x15cf   :  { %v1804_v61 = vpop.f32.mrf.mxu0 }
0x15d0   :  { %v1809_v12 = vmul.f32 0.35355338, %v1804_v61  ;;  %v1812_v15 = vsel %vm238_vm4, %v1810_v17, -inf }
0x15d1   :  { %1813 = vmax.xlane.f32.xlu0 %v1812_v15  ;;  %v3547_v27 = vpop.f32.mrf.mxu0 }
0x15d2   :  { %v1811_v28 = vadd.f32 %v4295_v36, %v1809_v12 }
0x15d4   :  { %v1815_v32 = vsel %vm238_vm4, %v1811_v28, -inf }
0x15d5   :  { %1816 = vmax.xlane.f32.xlu0 %v1815_v32 }
0x15eb   :  { %3655 = vrot.lane.b32.xlu0 %v4266_v55, %s4882_s29 }
0x165a   :  { %v1814_v33 = vpop.xlane.xlu0 %1813 }
0x165b   :  { %v1818_v34 = vsub.f32 %v1810_v17, %v1814_v33 }
0x165d   :  { %v1820_v37 = vmul.f32 1.442695, %v1818_v34  ;;  %v1717_v34 = vadd.f32 %v4333_v16, %v4340_v22 }
0x165e   :  { %v1817_v40 = vpop.xlane.xlu0 %1816 }
0x165f   :  { %3717 = vpow2.f32 %v1820_v37  ;;  %v1819_v41 = vsub.f32 %v1811_v28, %v1817_v40 }
0x1661   :  { %v1822_v42 = vmul.f32 1.442695, %v1819_v41 }
0x1662   :  { %v3656_v55 = vpop.permute.xlu0 %3655 }
0x1663   :  { %3719 = vpow2.f32 %v1822_v42  ;;  %v3657_v48 = vunpack.i.l.bf16 %v3656_v55  ;;  %v3658_v49 = vunpack.i.h.bf16 %v3656_v55 }
0x166c   :  { %v3718_v43 = vpop.eup %3717 }
0x166d   :  { %v1824_v44 = vsel %vm238_vm4, %v3718_v43, 0.0 }
0x166e   :  { %1825 = vadd.xlane.f32.xlu1 %v1824_v44 }
0x1670   :  { %v3720_v45 = vpop.eup %3719 }
0x1671   :  { %v1827_v47 = vsel %vm238_vm4, %v3720_v45, 0.0 }
0x1672   :  { %1828 = vadd.xlane.f32.xlu0 %v1827_v47 }
0x167f   :  { %1972 = vrot.lane.b32.xlu1 %v4253_v46, %s4883_s27 }
0x1688   :  { %1835 = vrot.lane.b32.xlu0 %v4253_v46, %s4884_s24 }
0x16a8   :  { %1939 = vxpose.xlu1.b32.start [1/2] (short) (narrow) %v3657_v48, 8 }
0x16ac   :  { %1940 = vxpose.xlu1.b32.end [2/2] (short) (narrow) %v3658_v49, 8 }
0x16ca   :  { %2048 = vrot.lane.b32.xlu1 %v4253_v46, %s4885_s7 }
0x16f7   :  { %v1826_v50 = vpop.xlane.xlu1 %1825 }
0x16f8   :  { %3721 = vrcp.f32 %v1826_v50 }
0x16fb   :  { %v1829_v7 = vpop.xlane.xlu0 %1828  ;;  %v1973_v56 = vpop.permute.xlu1 %1972 }
0x16fc   :  { %3723 = vrcp.f32 %v1829_v7 }
0x16ff   :  { %v1836_v51 = vpop.permute.xlu0 %1835 }
0x1700   :  { %3549 = vmatpush3.bf16.msra.mxu1 %v1836_v51 }
0x1701   :  { %3560 = vmatprep.subr.bf16.mxu1 %v3789_v3 }
0x1705   :  { %v3722_v52 = vpop.eup %3721 }
0x1706   :  { %v1831_v53 = vmul.f32 %v3722_v52, %v3718_v43 }
0x1709   :  { %v3724_v8 = vpop.eup %3723 }
0x170a   :  { %v1833_v35 = vmul.f32 %v3724_v8, %v3720_v45 }
0x170c   :  { %v1834_v54 = vpack.c.bf16 %v1833_v35, %v1831_v53  ;;  %v3208_v35 = vld [vmem:[%s4872_s26 + $0x1] ss:$0 sm:$0xff] }
0x170e   :  { %3551 = vmatmul.mubr.msk.bf16.vlgmr.msra.gmra.mxu1 %vm238_vm4, %v1834_v54 }
0x170f   :  { %3562 = vmatprep.mubr.msk.bf16.mxu1 %vm3790_vm0, %v3789_v3 }
0x1724   :  { %v1955_v46 = vpop.trf.xlu1 }
0x1725   :  { %v1971_v38 = vpack.c.bf16 %v1955_v46, %v1955_v46 }
0x1727   :  { %v1978_v31 = vsel %vm189_vm2, %v1971_v38, 0 }
0x1728   :  { %3561 = vmatpush3.bf16.msra.mxu1 %v1978_v31 }
0x1729   :  { %3572 = vmatprep.subr.bf16.mxu1 %v3789_v3 }
0x172b   :  { %3563 = vmatmul.mubr.msk.bf16.vlgmr.msra.gmra.mxu1 %vm185_vm3, %v1973_v56 }
0x172c   :  { %3574 = vmatprep.mubr.msk.bf16.mxu1 %vm3790_vm0, %v3789_v3 }
0x173c   :  { %v2049_v2 = vpop.permute.xlu1 %2048 }
0x17ce   :  { %v1875_v62 = vpop.f32.mrf.mxu1 }
0x17d0   :  { %v3552_v63 = vpop.f32.mrf.mxu1 }
0x17d2   :  { %v1878_v39 = vpop.f32.mrf.mxu1 }
0x17d3   :  { %v1882_v0 = vpack.c.bf16 %v1878_v39, %v1875_v62 }
0x17d4   :  { %v3553_v1 = vpop.f32.mrf.mxu1 }
0x17d5   :  { %3557 = vmatmul.mubr.msk.bf16.vlgmr.msra.gmra.mxu0 %vm185_vm3, %v1882_v0 }
0x17d6   :  { %3567 = vmatpush3.bf16.msra.mxu0 %v2049_v2  ;;  %3568 = vmatprep.mubr.msk.bf16.mxu0 %vm3790_vm0, %v3789_v3 }
0x17d7   :  { %3578 = vmatprep.subr.bf16.mxu0 %v3789_v3 }
0x17eb   :  { %v2014_v4 = vpop.f32.mrf.mxu1 }
0x17ec   :  { %v2021_v5 = vmul.f32 0.35355338, %v2014_v4 }
0x17ed   :  { %v3564_v6 = vpop.f32.mrf.mxu1 }
0x17ee   :  { %v2023_v9 = vadd.f32 %v4288_v26, %v2021_v5 }
0x17ef   :  { %v2017_v10 = vpop.f32.mrf.mxu1 }
0x17f0   :  { %v2022_v11 = vmul.f32 0.35355338, %v2017_v10  ;;  %v2025_v14 = vsel %vm238_vm4, %v2023_v9, -inf  ;;  %v3216_v10 = vld [vmem:[%s4822_s8 + $0x38] sm:$0xff] }
0x17f1   :  { %2026 = vmax.xlane.f32.xlu0 %v2025_v14  ;;  %v3565_v18 = vpop.f32.mrf.mxu1  ;;  %v3213_v14 = vld [vmem:[%s4822_s8 + $0x20] sm:$0xff] }
0x17f2   :  { %v2024_v19 = vadd.f32 %v4295_v36, %v2022_v11  ;;  %v1714_v36 = vadd.f32 %v4328_v13, %v4338_v20  ;;  %v3194_v13 = vld [vmem:[%s4871_s2 + $0x38] sm:$0xff]  ;;  %v3214_v18 = vld [vmem:[%s4822_s8 + $0x28] sm:$0xff] }
0x17f3   :  { %v2096_v16 = vpack.c.bf16 %v3194_v13, %v3194_v13 }
0x17f4   :  { %v2028_v21 = vsel %vm238_vm4, %v2024_v19, -inf }
0x17f5   :  { %2029 = vmax.xlane.f32.xlu0 %v2028_v21  ;;  %v2101_v20 = vsel %vm189_vm2, %v2096_v16, 0  ;;  %v3234_v21 = vld [vmem:[%s4824_s10 + $0xf0] sm:$0xff]  ;;  %v3212_v16 = vld [vmem:[%s4874_s25 + $0x1] ss:$0 sm:$0xff] }
0x17f6   :  { %3573 = vmatpush3.bf16.msra.mxu1 %v2101_v20 }
0x17f7   :  { %3586 = vmatprep.subr.bf16.mxu1 %v3789_v3 }
0x187a   :  { %v2027_v23 = vpop.xlane.xlu0 %2026 }
0x187b   :  { %v2031_v58 = vsub.f32 %v2023_v9, %v2027_v23  ;;  %v3215_v9 = vld [vmem:[%s4822_s8 + $0x30] sm:$0xff]  ;;  %v3235_v23 = vld [vmem:[%s4824_s10 + $0xf8] sm:$0xff] }
0x187c   :  { %v2211_v11 = vpack.c.bf16 %v3216_v10, %v3215_v9 }
0x187d   :  { %v2033_v24 = vmul.f32 1.442695, %v2031_v58  ;;  %v3232_v58 = vld [vmem:[%s4824_s10 + $0xe0] sm:$0xff] }
0x187e   :  { %v2030_v25 = vpop.xlane.xlu0 %2029 }
0x187f   :  { %3725 = vpow2.f32 %v2033_v24  ;;  %v2032_v17 = vsub.f32 %v2024_v19, %v2030_v25  ;;  %v2210_v19 = vpack.c.bf16 %v3214_v18, %v3213_v14  ;;  %v2291_v24 = vpack.c.bf16 %v3235_v23, %v3234_v21  ;;  %v3233_v25 = vld [vmem:[%s4824_s10 + $0xe8] sm:$0xff] }
0x1881   :  { %v2035_v61 = vmul.f32 1.442695, %v2032_v17  ;;  %v2290_v17 = vpack.c.bf16 %v3233_v25, %v3232_v58 }
0x1883   :  { %3727 = vpow2.f32 %v2035_v61  ;;  %v3230_v61 = vld [vmem:[%s4824_s10 + $0xd0] sm:$0xff] }
0x188c   :  { %v3726_v26 = vpop.eup %3725 }
0x188d   :  { %v2037_v12 = vsel %vm238_vm4, %v3726_v26, 0.0 }
0x188e   :  { %2038 = vadd.xlane.f32.xlu0 %v2037_v12 }
0x1890   :  { %v3728_v15 = vpop.eup %3727 }
0x1891   :  { %v2040_v27 = vsel %vm238_vm4, %v3728_v15, 0.0 }
0x1892   :  { %2041 = vadd.xlane.f32.xlu0 %v2040_v27  ;;  %v3229_v27 = vld [vmem:[%s4824_s10 + $0xc8] sm:$0xff] }
0x1895   :  { %v1924_v28 = vpop.f32.mrf.mxu0 }
0x1896   :  { %v1931_v32 = vadd.f32 %v1924_v28, %v1714_v36  ;;  %v3226_v28 = vld [vmem:[%s4824_s10 + $0xb0] sm:$0xff] }
0x1897   :  { %v3558_v33 = vpop.f32.mrf.mxu0 }
0x1899   :  { %v1927_v37 = vpop.f32.mrf.mxu0 }
0x189a   :  { %v1932_v40 = vadd.f32 %v1927_v37, %v1717_v34 }
0x189b   :  { %v3559_v41 = vpop.f32.mrf.mxu0 }
0x1917   :  { %v2039_v42 = vpop.xlane.xlu0 %2038 }
0x1918   :  { %3729 = vrcp.f32 %v2039_v42 }
0x191b   :  { %v2042_v43 = vpop.xlane.xlu0 %2041 }
0x191c   :  { %3731 = vrcp.f32 %v2042_v43 }
0x1925   :  { %v3730_v44 = vpop.eup %3729 }
0x1926   :  { %v2044_v47 = vmul.f32 %v3730_v44, %v3726_v26  ;;  %v3231_v26 = vld [vmem:[%s4824_s10 + $0xd8] sm:$0xff] }
0x1927   :  { %v2289_v12 = vpack.c.bf16 %v3231_v26, %v3230_v61 }
0x1929   :  { %v3732_v45 = vpop.eup %3731 }
0x192a   :  { %v2046_v55 = vmul.f32 %v3732_v45, %v3728_v15  ;;  %v3228_v15 = vld [vmem:[%s4824_s10 + $0xc0] sm:$0xff] }
0x192b   :  { %v2288_v36 = vpack.c.bf16 %v3229_v27, %v3228_v15  ;;  %v2391_v15 = vld [vmem:[%s4828_s14 + $0x10] sm:$0xff]  ;;  %v2392_v27 = vld [vmem:[%s4828_s14 + $0x18] sm:$0xff] }
0x192c   :  { %v2047_v48 = vpack.c.bf16 %v2046_v55, %v2044_v47  ;;  %v3211_v47 = vld [vmem:[%s4873_s28 + $0x1] ss:$0 sm:$0xff] }
0x192e   :  { %3569 = vmatmul.mubr.msk.bf16.vlgmr.msra.gmra.mxu0 %vm238_vm4, %v2047_v48 }
0x192f   :  { %3582 = vmatprep.mubr.msk.bf16.mxu0 %vm3790_vm0, %v3789_v3  ;;  %3579 = vmatpush3.bf16.msra.mxu0 %v2211_v11 }
0x1930   :  { %3580 = vmatprep.subr.bf16.mxu0 %v3789_v3 }
0x1933   :  { %3581 = vmatpush3.bf16.msra.mxu0 %v2210_v19 }
0x1934   :  { %3606 = vmatprep.subr.bf16.mxu0 %v3789_v3 }
0x19ee   :  { %v2088_v22 = vpop.f32.mrf.mxu0 }
0x19f0   :  { %v3570_v49 = vpop.f32.mrf.mxu0 }
0x19f2   :  { %v2091_v50 = vpop.f32.mrf.mxu0 }
0x19f3   :  { %v2095_v7 = vpack.c.bf16 %v2091_v50, %v2088_v22 }
0x19f4   :  { %v3571_v51 = vpop.f32.mrf.mxu0 }
0x19f5   :  { %3575 = vmatmul.mubr.msk.bf16.vlgmr.msra.gmra.mxu1 %vm185_vm3, %v2095_v7  ;;  %v3224_v7 = vld [vmem:[%s4824_s10 + $0xa0] sm:$0xff]  ;;  %v3225_v51 = vld [vmem:[%s4824_s10 + $0xa8] sm:$0xff] }
0x19f6   :  { %3602 = vmatprep.mubr.msk.bf16.mxu1 %vm3790_vm0, %v3789_v3  ;;  %3587 = vmatpush3.bf16.msra.mxu1 %v2291_v24 }
0x19f7   :  { %3588 = vmatprep.subr.bf16.mxu1 %v3789_v3 }
0x19fa   :  { %3589 = vmatpush3.bf16.msra.mxu1 %v2290_v17 }
0x19fb   :  { %3590 = vmatprep.subr.bf16.mxu1 %v3789_v3 }
0x19fe   :  { %3591 = vmatpush3.bf16.msra.mxu1 %v2289_v12 }
0x19ff   :  { %3592 = vmatprep.subr.bf16.mxu1 %v3789_v3 }
0x1a02   :  { %3593 = vmatpush3.bf16.msra.mxu1 %v2288_v36  ;;  %v2395_v36 = vpack.c.bf16 %v2392_v27, %v2391_v15 }
0x1a03   :  { %3594 = vmatprep.subr.bf16.mxu1 %v3789_v3 }
0x1ab5   :  { %v2137_v52 = vpop.f32.mrf.mxu1 }
0x1ab6   :  { %v2144_v8 = vadd.f32 %v2137_v52, %v1931_v32  ;;  %v3227_v32 = vld [vmem:[%s4824_s10 + $0xb8] sm:$0xff]  ;;  %v2286_v52 = vpack.c.bf16 %v3225_v51, %v3224_v7  ;;  %v2478_v7 = vld [vmem:[%s4830_s16 + $0x40] sm:$0xff] }
0x1ab7   :  { %v3576_v53 = vpop.f32.mrf.mxu1  ;;  %v2287_v33 = vpack.c.bf16 %v3227_v32, %v3226_v28  ;;  %v2389_v28 = vld [vmem:[%s4828_s14] sm:$0xff]  ;;  %v2390_v32 = vld [vmem:[%s4828_s14 + $0x8] sm:$0xff]  ;;  %s3151_s14 = sshll.u32 %s3803_s3, 4  ;;  %s3152_s14 = int_to_ptr.vmem [resolvable:$true] %s3151_s14 }
0x1ab8   :  { %v2146_v54 = vadd.f32 %v2144_v8, %v4230_v29  ;;  %v3222_v8 = vld [vmem:[%s4824_s10 + $0x90] sm:$0xff]  ;;  %v3223_v53 = vld [vmem:[%s4824_s10 + $0x98] sm:$0xff]  ;;  %v2482_v51 = vld [vmem:[%s4830_s16 + $0x60] sm:$0xff]  ;;  %s3767_s2 = scalar_lea.vmem %s3152_s14, 256  ;;  %p3772_p1 = scmp.lt.s32.totalorder %s3152_s14, %s3152_s14 }
0x1ab9   :  { %v2140_v56 = vpop.f32.mrf.mxu1  ;;  %3595 = vmatpush3.bf16.msra.mxu1 %v2287_v33  ;;  %v2394_v33 = vpack.c.bf16 %v2390_v32, %v2389_v28  ;;  %v2643_v32 = vld [vmem:[%s4832_s18] sm:$0xff]  ;;  %p3768_p0 = scmp.ne.s32.totalorder %s3152_s14, %s3767_s2  ;;  %p3773_p2 = scmp.lt.s32.totalorder %s3767_s2, %s3767_s2 }
0x1aba   :  { %v2145_v46 = vadd.f32 %v2140_v56, %v1932_v40  ;;  %v2156_v38 = vadd.f32 %v3208_v35, %v2146_v54  ;;  %3596 = vmatprep.subr.bf16.mxu1 %v3789_v3  ;;  %v3220_v54 = vld [vmem:[%s4824_s10 + $0x80] sm:$0xff]  ;;  %v3221_v56 = vld [vmem:[%s4824_s10 + $0x88] sm:$0xff] }
0x1abb   :  { %v3577_v31 = vpop.f32.mrf.mxu1  ;;  %p3774_p3 = por %p3773_p2, %p3772_p1 }
0x1abc   :  { %v2147_v57 = vadd.f32 %v2145_v46, %v4232_v30  ;;  %v2162_v59 = vsel %vm94_vm1, %v2156_v38, 0.0  ;;  %v2284_v46 = vpack.c.bf16 %v3221_v56, %v3220_v54  ;;  %v2490_v54 = vpack.c.bf16 %v2482_v51, %v2478_v7 }
0x1abd   :  { %2163 = vadd.xlane.f32.xlu0 %v2162_v59  ;;  %3597 = vmatpush3.bf16.msra.mxu1 %v2286_v52  ;;  %v2471_v52 = vld [vmem:[%s4830_s16 + $0x8] sm:$0xff]  ;;  %p3775_p4 = pnand %p3774_p3, %p3768_p0 }
0x1abe   :  { %v2157_v60 = vadd.f32 %v3208_v35, %v2147_v57  ;;  %3598 = vmatprep.subr.bf16.mxu1 %v3789_v3  ;;  %v2285_v35 = vpack.c.bf16 %v3223_v53, %v3222_v8  ;;  %v2475_v8 = vld [vmem:[%s4830_s16 + $0x28] sm:$0xff] }
0x1ac0   :  { %v2165_v62 = vsel %vm94_vm1, %v2157_v60, 0.0 }
0x1ac1   :  { %2166 = vadd.xlane.f32.xlu0 %v2165_v62  ;;  %3599 = vmatpush3.bf16.msra.mxu1 %v2285_v35 }
0x1ac2   :  { %3600 = vmatprep.subr.bf16.mxu1 %v3789_v3 }
0x1ac5   :  { %3601 = vmatpush3.bf16.msra.mxu1 %v2284_v46  ;;  %v2487_v46 = vpack.c.bf16 %v2475_v8, %v2471_v52  ;;  %v2837_v52 = vld [vmem:[%s4833_s19 + $0x60] sm:$0xff]  ;;  %v2838_v8 = vld [vmem:[%s4833_s19 + $0x68] sm:$0xff] }
0x1b46   :  { %v2164_v63 = vpop.xlane.xlu0 %2163 }
0x1b47   :  { %v2168_v39 = vmul.f32 0.03125, %v2164_v63 }
0x1b49   :  { %v2170_v0 = vsub.f32 %v2156_v38, %v2168_v39  ;;  %v3218_v38 = vld [vmem:[%s4823_s9 + $0x1] ss:$0 sm:$0xff] }
0x1b4a   :  { %v2167_v1 = vpop.xlane.xlu0 %2166 }
0x1b4b   :  { %v2169_v2 = vmul.f32 0.03125, %v2167_v1  ;;  %v2172_v4 = vmul.f32 %v2170_v0, %v2170_v0 }
0x1b4d   :  { %v2171_v29 = vsub.f32 %v2157_v60, %v2169_v2  ;;  %v2174_v5 = vsel %vm94_vm1, %v2172_v4, 0.0  ;;  %v3237_v2 = vld [vmem:[%s4825_s11 + $0x1] ss:$0 sm:$0xff] }
0x1b4e   :  { %2175 = vadd.xlane.f32.xlu0 %v2174_v5 }
0x1b4f   :  { %v2173_v6 = vmul.f32 %v2171_v29, %v2171_v29 }
0x1b51   :  { %v2177_v30 = vsel %vm94_vm1, %v2173_v6, 0.0 }
0x1b52   :  { %2178 = vadd.xlane.f32.xlu0 %v2177_v30 }
0x1bd7   :  { %v2176_v34 = vpop.xlane.xlu0 %2175 }
0x1bd8   :  { %v2180_v37 = vmul.f32 0.03125, %v2176_v34  ;;  %v2479_v34 = vld [vmem:[%s4830_s16 + $0x48] sm:$0xff] }
0x1bda   :  { %v2182_v40 = vadd.f32 1e-05, %v2180_v37  ;;  %v2483_v37 = vld [vmem:[%s4830_s16 + $0x68] sm:$0xff] }
0x1bdb   :  { %v2179_v41 = vpop.xlane.xlu0 %2178 }
0x1bdc   :  { %3733 = vrsqrt.f32 %v2182_v40  ;;  %v2181_v42 = vmul.f32 0.03125, %v2179_v41  ;;  %v2491_v40 = vpack.c.bf16 %v2483_v37, %v2479_v34  ;;  %v2647_v34 = vcombine.high %v2643_v32, %v2643_v32 }
0x1bde   :  { %v2183_v43 = vadd.f32 1e-05, %v2181_v42 }
0x1be0   :  { %3735 = vrsqrt.f32 %v2183_v43 }
0x1be9   :  { %v3734_v44 = vpop.eup %3733 }
0x1bea   :  { %v2186_v45 = vmul.f32 %v3734_v44, %v2170_v0 }
0x1bec   :  { %v2194_v13 = vmul.f32 %v3211_v47, %v2186_v45 }
0x1bed   :  { %v3736_v55 = vpop.eup %3735 }
0x1bee   :  { %v2187_v48 = vmul.f32 %v3736_v55, %v2171_v29  ;;  %v2202_v22 = vadd.f32 %v3212_v16, %v2194_v13  ;;  %v3240_v13 = vld [vmem:[%s4826_s12 + $0x1] ss:$0 sm:$0xff] }
0x1bf0   :  { %v2195_v20 = vmul.f32 %v3211_v47, %v2187_v48 }
0x1bf2   :  { %v2203_v49 = vadd.f32 %v3212_v16, %v2195_v20 }
0x1bf4   :  { %v2209_v50 = vpack.c.bf16 %v2203_v49, %v2202_v22 }
0x1bf6   :  { %3583 = vmatmul.mubr.msk.bf16.vlgmr.msra.gmra.mxu0 %vm94_vm1, %v2209_v50 }
0x1bf7   :  { %3610 = vmatprep.mubr.msk.bf16.mxu0 %vm3790_vm0, %v3789_v3  ;;  %3607 = vmatpush3.bf16.msra.mxu0 %v2395_v36 }
0x1bf8   :  { %3608 = vmatprep.subr.bf16.mxu0 %v3789_v3 }
0x1bfb   :  { %3609 = vmatpush3.bf16.msra.mxu0 %v2394_v33  ;;  %v2644_v33 = vld [vmem:[%s4832_s18 + $0x8] sm:$0xff] }
0x1bfc   :  { %2528 = vmatprep.subr.bf16.mxu0 %v2491_v40  ;;  %v2648_v37 = vcombine.high %v2644_v33, %v2644_v33  ;;  %v2925_v40 = vld [vmem:[%s4834_s20] sm:$0xf] }
0x1bfe   :  { %3250 = vmatprep.subr.msk.mxu1 %vm189_vm2, %v2648_v37 }
0x1cb6   :  { %v2257_v31 = vpop.f32.mrf.mxu0 }
0x1cb7   :  { %v2258_v59 = vadd.f32 %v3218_v38, %v2257_v31  ;;  %v2474_v31 = vld [vmem:[%s4830_s16 + $0x20] sm:$0xff] }
0x1cb8   :  { %v3584_v57 = vpop.f32.mrf.mxu0 }
0x1cb9   :  { %v2264_v39 = vmax.f32 %v2258_v59, 0.0  ;;  %v2481_v57 = vld [vmem:[%s4830_s16 + $0x58] sm:$0xff] }
0x1cba   :  { %v2260_v60 = vpop.f32.mrf.mxu0  ;;  %v2485_v59 = vld [vmem:[%s4830_s16 + $0x78] sm:$0xff] }
0x1cbb   :  { %v2261_v62 = vadd.f32 %v3218_v38, %v2260_v60  ;;  %v2470_v38 = vld [vmem:[%s4830_s16] sm:$0xff] }
0x1cbc   :  { %v3585_v63 = vpop.f32.mrf.mxu0  ;;  %v2486_v60 = vpack.c.bf16 %v2474_v31, %v2470_v38  ;;  %v2872_v38 = vld [vmem:[%s4833_s19 + $0x178] sm:$0xff]  ;;  %v2885_v31 = vld [vmem:[%s4833_s19 + $0x1e0] sm:$0xff] }
0x1cbd   :  { %v2265_v0 = vmax.f32 %v2261_v62, 0.0  ;;  %v3802_v62 = vmov 0   ;;  %v2493_v63 = vpack.c.bf16 %v2485_v59, %v2481_v57  ;;  %v2899_v57 = vpack.c.bf16 %v2838_v8, %v2837_v52  ;;  %v2886_v59 = vld [vmem:[%s4833_s19 + $0x1e8] sm:$0xff]  ;;  %v2844_v52 = vld [vmem:[%s4833_s19 + $0x98] sm:$0xff]  ;;  %v2875_v8 = vld [vmem:[%s4833_s19 + $0x190] sm:$0xff] }
0x1cbf   :  { %v2283_v1 = vpack.c.bf16 %v2265_v0, %v2264_v39  ;;  %v2480_v39 = vld [vmem:[%s4830_s16 + $0x50] sm:$0xff] }
0x1cc0   :  { %v2484_v0 = vld [vmem:[%s4830_s16 + $0x70] sm:$0xff] }
0x1cc1   :  { %3603 = vmatmul.mubr.bf16.vlgmr.msra.gmra.mxu1 %v2283_v1  ;;  %v2473_v1 = vld [vmem:[%s4830_s16 + $0x18] sm:$0xff] }
0x1cc2   :  { %2804 = vmatprep.mubr.f32.mxu1 %v3789_v3  ;;  %3251 = vmatpush1.msk.msra.mxu1 %vm189_vm2, %v2644_v33  ;;  %v2879_v33 = vld [vmem:[%s4833_s19 + $0x1b0] sm:$0xff] }
0x1d81   :  { %v2334_v4 = vpop.f32.mrf.mxu1 }
0x1d82   :  { %v2335_v29 = vadd.f32 %v3237_v2, %v2334_v4  ;;  %v2492_v4 = vpack.c.bf16 %v2484_v0, %v2480_v39  ;;  %v2849_v39 = vld [vmem:[%s4833_s19 + $0xc0] sm:$0xff]  ;;  %v2850_v0 = vld [vmem:[%s4833_s19 + $0xc8] sm:$0xff] }
0x1d83   :  { %v3604_v5 = vpop.f32.mrf.mxu1 }
0x1d84   :  { %v2341_v6 = vadd.f32 %v2335_v29, %v2202_v22  ;;  %v2472_v5 = vld [vmem:[%s4830_s16 + $0x10] sm:$0xff] }
0x1d85   :  { %v2337_v30 = vpop.f32.mrf.mxu1 }
0x1d86   :  { %v2338_v9 = vadd.f32 %v3237_v2, %v2337_v30  ;;  %v2347_v10 = vsel %vm94_vm1, %v2341_v6, 0.0  ;;  %v2477_v2 = vld [vmem:[%s4830_s16 + $0x38] sm:$0xff] }
0x1d87   :  { %2348 = vadd.xlane.f32.xlu0 %v2347_v10  ;;  %v3605_v11 = vpop.f32.mrf.mxu1  ;;  %v2489_v29 = vpack.c.bf16 %v2477_v2, %v2473_v1  ;;  %v2923_v2 = vpack.c.bf16 %v2886_v59, %v2885_v31  ;;  %v2859_v31 = vld [vmem:[%s4833_s19 + $0x110] sm:$0xff] }
0x1d88   :  { %v2342_v14 = vadd.f32 %v2338_v9, %v2203_v49  ;;  %v3241_v49 = vld [vmem:[%s4827_s13 + $0x1] ss:$0 sm:$0xff]  ;;  %v3242_v9 = vld [vmem:[%s4829_s15] ss:$0 sm:$0xff] }
0x1d8a   :  { %v2350_v18 = vsel %vm94_vm1, %v2342_v14, 0.0 }
0x1d8b   :  { %2351 = vadd.xlane.f32.xlu0 %v2350_v18 }
0x1e10   :  { %v2349_v19 = vpop.xlane.xlu0 %2348 }
0x1e11   :  { %v2353_v21 = vmul.f32 0.03125, %v2349_v19 }
0x1e13   :  { %v2355_v23 = vsub.f32 %v2341_v6, %v2353_v21  ;;  %v2476_v6 = vld [vmem:[%s4830_s16 + $0x30] sm:$0xff] }
0x1e14   :  { %v2352_v58 = vpop.xlane.xlu0 %2351  ;;  %v2488_v30 = vpack.c.bf16 %v2476_v6, %v2472_v5  ;;  %v2883_v5 = vld [vmem:[%s4833_s19 + $0x1d0] sm:$0xff] }
0x1e15   :  { %v2354_v24 = vmul.f32 0.03125, %v2352_v58  ;;  %v2357_v25 = vmul.f32 %v2355_v23, %v2355_v23 }
0x1e17   :  { %v2356_v17 = vsub.f32 %v2342_v14, %v2354_v24  ;;  %v2359_v61 = vsel %vm94_vm1, %v2357_v25, 0.0 }
0x1e18   :  { %2360 = vadd.xlane.f32.xlu0 %v2359_v61 }
0x1e19   :  { %v2358_v26 = vmul.f32 %v2356_v17, %v2356_v17 }
0x1e1b   :  { %v2362_v12 = vsel %vm94_vm1, %v2358_v26, 0.0 }
0x1e1c   :  { %2363 = vadd.xlane.f32.xlu0 %v2362_v12 }
0x1ea1   :  { %v2361_v41 = vpop.xlane.xlu0 %2360 }
0x1ea2   :  { %v2365_v42 = vmul.f32 0.03125, %v2361_v41  ;;  %v2855_v41 = vld [vmem:[%s4833_s19 + $0xf0] sm:$0xff] }
0x1ea4   :  { %v2367_v43 = vadd.f32 1e-05, %v2365_v42  ;;  %v2856_v42 = vld [vmem:[%s4833_s19 + $0xf8] sm:$0xff] }
0x1ea5   :  { %v2364_v44 = vpop.xlane.xlu0 %2363 }
0x1ea6   :  { %3737 = vrsqrt.f32 %v2367_v43  ;;  %v2366_v45 = vmul.f32 0.03125, %v2364_v44  ;;  %v2908_v43 = vpack.c.bf16 %v2856_v42, %v2855_v41  ;;  %v2863_v41 = vld [vmem:[%s4833_s19 + $0x130] sm:$0xff]  ;;  %v2864_v42 = vld [vmem:[%s4833_s19 + $0x138] sm:$0xff] }
0x1ea8   :  { %v2368_v47 = vadd.f32 1e-05, %v2366_v45  ;;  %3343 = vmatprep.subr.bf16.mxu1 %v2908_v43  ;;  %v2912_v43 = vpack.c.bf16 %v2864_v42, %v2863_v41 }
0x1eaa   :  { %3739 = vrsqrt.f32 %v2368_v47  ;;  %v2887_v47 = vld [vmem:[%s4833_s19 + $0x1f0] sm:$0xff] }
0x1eb3   :  { %v3738_v55 = vpop.eup %3737 }
0x1eb4   :  { %v2371_v48 = vmul.f32 %v3738_v55, %v2355_v23  ;;  %v2839_v55 = vld [vmem:[%s4833_s19 + $0x70] sm:$0xff] }
0x1eb6   :  { %v2379_v22 = vmul.f32 %v3240_v13, %v2371_v48  ;;  %v2840_v48 = vld [vmem:[%s4833_s19 + $0x78] sm:$0xff] }
0x1eb7   :  { %v3740_v16 = vpop.eup %3739 }
0x1eb8   :  { %v2372_v20 = vmul.f32 %v3740_v16, %v2356_v17  ;;  %v2387_v53 = vadd.f32 %v3241_v49, %v2379_v22  ;;  %v2853_v16 = vld [vmem:[%s4833_s19 + $0xe0] sm:$0xff] }
0x1eba   :  { %v2380_v50 = vmul.f32 %v3240_v13, %v2372_v20  ;;  %v2888_v13 = vld [vmem:[%s4833_s19 + $0x1f8] sm:$0xff]  ;;  %v2854_v20 = vld [vmem:[%s4833_s19 + $0xe8] sm:$0xff] }
0x1ebb   :  { %v2924_v7 = vpack.c.bf16 %v2888_v13, %v2887_v47  ;;  %v2907_v51 = vpack.c.bf16 %v2854_v20, %v2853_v16  ;;  %v2877_v47 = vld [vmem:[%s4833_s19 + $0x1a0] sm:$0xff]  ;;  %v2830_v16 = vld [vmem:[%s4833_s19 + $0x28] sm:$0xff] }
0x1ebc   :  { %v2388_v35 = vadd.f32 %v3241_v49, %v2380_v50  ;;  %v2900_v50 = vpack.c.bf16 %v2840_v48, %v2839_v55  ;;  %v2878_v48 = vld [vmem:[%s4833_s19 + $0x1a8] sm:$0xff]  ;;  %v2829_v13 = vld [vmem:[%s4833_s19 + $0x20] sm:$0xff] }
0x1ebd   :  { %v2919_v20 = vpack.c.bf16 %v2878_v48, %v2877_v47 }
0x1ebe   :  { %v2393_v56 = vpack.c.bf16 %v2388_v35, %v2387_v53  ;;  %v2851_v53 = vld [vmem:[%s4833_s19 + $0xd0] sm:$0xff]  ;;  %v2852_v35 = vld [vmem:[%s4833_s19 + $0xd8] sm:$0xff] }
0x1ec0   :  { %3611 = vmatmul.mubr.msk.bf16.vlgmr.msra.gmra.mxu0 %vm94_vm1, %v2393_v56 }
0x1ec1   :  { %2529 = vmatpush1.bf16.msra.mxu0 %v2490_v54  ;;  %2548 = vmatprep.mubr.bf16.mxu0 %v3802_v62 }
0x1ec2   :  { %2530 = vmatprep.subr.bf16.mxu0 %v2487_v46  ;;  %v2871_v46 = vld [vmem:[%s4833_s19 + $0x170] sm:$0xff] }
0x1ec3   :  { %v2916_v1 = vpack.c.bf16 %v2872_v38, %v2871_v46 }
0x1ec5   :  { %2531 = vmatpush1.bf16.msra.mxu0 %v2486_v60  ;;  %v2906_v60 = vpack.c.bf16 %v2852_v35, %v2851_v53  ;;  %v2876_v35 = vld [vmem:[%s4833_s19 + $0x198] sm:$0xff] }
0x1ec6   :  { %2571 = vmatprep.subr.bf16.mxu0 %v2493_v63  ;;  %v2836_v63 = vld [vmem:[%s4833_s19 + $0x58] sm:$0xff]  ;;  %v2918_v46 = vpack.c.bf16 %v2876_v35, %v2875_v8 }
0x1ec8   :  { %3244 = vmatmul.mubr.msk.bf16.vlgmr.msra.gmra.mxu0 %vm94_vm1, %v2393_v56 }
0x1ec9   :  { %2572 = vmatpush1.bf16.msra.mxu0 %v2492_v4  ;;  %2591 = vmatprep.mubr.bf16.mxu0 %v3802_v62  ;;  %v2835_v62 = vld [vmem:[%s4833_s19 + $0x50] sm:$0xff]  ;;  %v2869_v4 = vld [vmem:[%s4833_s19 + $0x160] sm:$0xff] }
0x1eca   :  { %2573 = vmatprep.subr.bf16.mxu0 %v2489_v29  ;;  %v2870_v29 = vld [vmem:[%s4833_s19 + $0x168] sm:$0xff]  ;;  %v2898_v6 = vpack.c.bf16 %v2836_v63, %v2835_v62  ;;  %v2873_v63 = vld [vmem:[%s4833_s19 + $0x180] sm:$0xff] }
0x1ecb   :  { %v2842_v62 = vld [vmem:[%s4833_s19 + $0x88] sm:$0xff] }
0x1ecd   :  { %2574 = vmatpush1.bf16.msra.mxu0 %v2488_v30  ;;  %v2884_v30 = vld [vmem:[%s4833_s19 + $0x1d8] sm:$0xff] }
0x1ece   :  { %3246 = vmatprep.subr.msk.mxu0 %vm189_vm2, %v2647_v34  ;;  %v2880_v34 = vld [vmem:[%s4833_s19 + $0x1b8] sm:$0xff] }
0x1ed0   :  { %3245 = vmatmul.mubr.msk.bf16.vlgmr.msra.gmra.mxu0 %vm94_vm1, %v2393_v56 }
0x1ed1   :  { %2727 = vmatprep.mubr.f32.mxu0 %v3789_v3  ;;  %3247 = vmatpush1.msk.msra.mxu0 %vm189_vm2, %v2643_v32 }
0x1ed2   :  { %3614 = vmatprep.subr.msk.mxu0 %vm189_vm2, %v2925_v40 }
0x1f80   :  { %v2440_v10 = vpop.f32.mrf.mxu0 }
0x1f81   :  { %v2441_v11 = vadd.f32 %v3242_v9, %v2440_v10  ;;  %v2833_v10 = vld [vmem:[%s4833_s19 + $0x40] sm:$0xff] }
0x1f82   :  { %v3612_v14 = vpop.f32.mrf.mxu0 }
0x1f83   :  { %v2448_v18 = vsel %vm2447_vm5, %v2441_v11, -inf  ;;  %v2847_v14 = vld [vmem:[%s4833_s19 + $0xb0] sm:$0xff] }
0x1f84   :  { %2449 = vmax.xlane.f32.xlu1 %v2448_v18  ;;  %v2443_v19 = vpop.f32.mrf.mxu0  ;;  %v2848_v18 = vld [vmem:[%s4833_s19 + $0xb8] sm:$0xff] }
0x1f85   :  { %v2444_v21 = vadd.f32 %v3242_v9, %v2443_v19  ;;  %v2905_v9 = vpack.c.bf16 %v2850_v0, %v2849_v39  ;;  %v2915_v19 = vpack.c.bf16 %v2870_v29, %v2869_v4  ;;  %v2874_v0 = vld [vmem:[%s4833_s19 + $0x188] sm:$0xff] }
0x1f86   :  { %v3613_v23 = vpop.f32.mrf.mxu0  ;;  %v2917_v4 = vpack.c.bf16 %v2874_v0, %v2873_v63 }
0x1f87   :  { %v2451_v58 = vsel %vm2447_vm5, %v2444_v21, -inf  ;;  %v2867_v23 = vld [vmem:[%s4833_s19 + $0x150] sm:$0xff] }
0x1f88   :  { %2452 = vmax.xlane.f32.xlu0 %v2451_v58  ;;  %v2868_v58 = vld [vmem:[%s4833_s19 + $0x158] sm:$0xff] }
0x200d   :  { %v2450_v24 = vpop.xlane.xlu1 %2449 }
0x200e   :  { %v2454_v25 = vsub.f32 %v2441_v11, %v2450_v24  ;;  %v2834_v11 = vld [vmem:[%s4833_s19 + $0x48] sm:$0xff]  ;;  %v2881_v24 = vld [vmem:[%s4833_s19 + $0x1c0] sm:$0xff] }
0x2010   :  { %v2456_v17 = vmul.f32 1.442695, %v2454_v25  ;;  %v2897_v25 = vpack.c.bf16 %v2834_v11, %v2833_v10 }
0x2011   :  { %v2453_v61 = vpop.xlane.xlu0 %2452 }
0x2012   :  { %3741 = vpow2.f32 %v2456_v17  ;;  %v2455_v26 = vsub.f32 %v2444_v21, %v2453_v61  ;;  %v2922_v21 = vpack.c.bf16 %v2884_v30, %v2883_v5  ;;  %v2882_v17 = vld [vmem:[%s4833_s19 + $0x1c8] sm:$0xff]  ;;  %v2904_v61 = vpack.c.bf16 %v2848_v18, %v2847_v14  ;;  %v2857_v5 = vld [vmem:[%s4833_s19 + $0x100] sm:$0xff] }
0x2013   :  { %v2496_v14 = vlaneseq }
0x2014   :  { %v2458_v12 = vmul.f32 1.442695, %v2455_v26  ;;  %v2831_v26 = vld [vmem:[%s4833_s19 + $0x30] sm:$0xff] }
0x2016   :  { %3743 = vpow2.f32 %v2458_v12  ;;  %v2832_v12 = vld [vmem:[%s4833_s19 + $0x38] sm:$0xff] }
0x2017   :  { %v2896_v32 = vpack.c.bf16 %v2832_v12, %v2831_v26 }
0x201f   :  { %v3742_v15 = vpop.eup %3741 }
0x2020   :  { %v2460_v27 = vsel %vm2447_vm5, %v3742_v15, 0.0 }
0x2021   :  { %2461 = vadd.xlane.f32.xlu0 %v2460_v27  ;;  %v2921_v27 = vpack.c.bf16 %v2882_v17, %v2881_v24 }
0x2023   :  { %v3744_v36 = vpop.eup %3743 }
0x2024   :  { %v2463_v28 = vsel %vm2447_vm5, %v3744_v36, 0.0 }
0x2025   :  { %2464 = vadd.xlane.f32.xlu0 %v2463_v28  ;;  %v2866_v28 = vld [vmem:[%s4833_s19 + $0x148] sm:$0xff] }
0x20aa   :  { %v2462_v44 = vpop.xlane.xlu0 %2461 }
0x20ab   :  { %3745 = vrcp.f32 %v2462_v44  ;;  %v2845_v44 = vld [vmem:[%s4833_s19 + $0xa0] sm:$0xff] }
0x20ae   :  { %v2465_v45 = vpop.xlane.xlu0 %2464 }
0x20af   :  { %3747 = vrcp.f32 %v2465_v45  ;;  %v2846_v45 = vld [vmem:[%s4833_s19 + $0xa8] sm:$0xff] }
0x20b0   :  { %v2903_v55 = vpack.c.bf16 %v2846_v45, %v2845_v44 }
0x20b8   :  { %v3746_v22 = vpop.eup %3745 }
0x20b9   :  { %v2467_v49 = vmul.f32 %v3746_v22, %v3742_v15  ;;  %v2914_v15 = vpack.c.bf16 %v2868_v58, %v2867_v23  ;;  %v2895_v22 = vpack.c.bf16 %v2830_v16, %v2829_v13  ;;  %v2494_v58 = vld [vmem:[%s4831_s17] sm:$0xf] }
0x20bb   :  { %3248 = vmatmul.mubr.msk.f32.vlgmr.msra.gmra.mxu0 %vm2447_vm5, %v2467_v49  ;;  %3252 = vmatmul.mubr.msk.f32.vlgmr.msra.gmra.mxu1 %vm2447_vm5, %v2467_v49 }
0x20bc   :  { %v3748_v54 = vpop.eup %3747  ;;  %2733 = vmatprep.mubr.f32.mxu0 %v3789_v3  ;;  %2810 = vmatprep.mubr.f32.mxu1 %v3789_v3 }
0x20bd   :  { %v2469_v56 = vmul.f32 %v3748_v54, %v3744_v36  ;;  %3615 = vmatpush3.msk.msra.mxu0 %vm189_vm2, %v2925_v40  ;;  %3344 = vmatpush3.bf16.msra.mxu1 %v2900_v50  ;;  %v2865_v36 = vld [vmem:[%s4833_s19 + $0x140] sm:$0xff]  ;;  %v2920_v40 = vpack.c.bf16 %v2880_v34, %v2879_v33  ;;  %v2862_v50 = vld [vmem:[%s4833_s19 + $0x128] sm:$0xff]  ;;  %v2827_v54 = vld [vmem:[%s4833_s19 + $0x10] sm:$0xff] }
0x20be   :  { %3365 = vmatprep.subr.bf16.mxu0 %v2924_v7  ;;  %3345 = vmatprep.subr.bf16.mxu1 %v2907_v51  ;;  %v2913_v37 = vpack.c.bf16 %v2866_v28, %v2865_v36  ;;  %v2843_v51 = vld [vmem:[%s4833_s19 + $0x90] sm:$0xff] }
0x20bf   :  { %3249 = vmatmul.mubr.msk.f32.gmra.mxu0 %vm2447_vm5, %v2469_v56  ;;  %3253 = vmatmul.mubr.msk.f32.gmra.mxu1 %vm2447_vm5, %v2469_v56  ;;  %v2902_v53 = vpack.c.bf16 %v2844_v52, %v2843_v51 }
0x20c0   :  { %3616 = vmatprep.mubr.msk.f32.mxu0 %vm2447_vm5, %v2467_v49  ;;  %v2861_v49 = vld [vmem:[%s4833_s19 + $0x120] sm:$0xff] }
0x20c1   :  { %3346 = vmatpush3.bf16.msra.mxu1 %v2899_v57  ;;  %v2911_v7 = vpack.c.bf16 %v2862_v50, %v2861_v49  ;;  %v2860_v57 = vld [vmem:[%s4833_s19 + $0x118] sm:$0xff] }
0x20c2   :  { %3347 = vmatprep.subr.bf16.mxu1 %v2906_v60  ;;  %v2910_v59 = vpack.c.bf16 %v2860_v57, %v2859_v31  ;;  %v2841_v60 = vld [vmem:[%s4833_s19 + $0x80] sm:$0xff] }
0x20c3   :  { %3617 = vmatmul.mubr.msk.f32.vlgmr.msra.gmra.mxu0 %vm2447_vm5, %v2469_v56  ;;  %v2828_v56 = vld [vmem:[%s4833_s19 + $0x18] sm:$0xff]  ;;  %v2901_v39 = vpack.c.bf16 %v2842_v62, %v2841_v60 }
0x20c4   :  { %3366 = vmatpush3.bf16.msra.mxu0 %v2916_v1  ;;  %v2894_v38 = vpack.c.bf16 %v2828_v56, %v2827_v54  ;;  %v2825_v1 = vld [vmem:[%s4833_s19] sm:$0xff] }
0x20c5   :  { %3367 = vmatprep.subr.bf16.mxu0 %v2923_v2  ;;  %3348 = vmatpush3.bf16.msra.mxu1 %v2898_v6  ;;  %v2826_v2 = vld [vmem:[%s4833_s19 + $0x8] sm:$0xff] }
0x20c6   :  { %3349 = vmatprep.subr.bf16.mxu1 %v2905_v9  ;;  %v2893_v29 = vpack.c.bf16 %v2826_v2, %v2825_v1  ;;  %v2858_v6 = vld [vmem:[%s4833_s19 + $0x108] sm:$0xff]  ;;  %v2550_v9 = vpop.f32.mrf.mxu0 }
0x20c7   :  { %v2909_v30 = vpack.c.bf16 %v2858_v6, %v2857_v5 }
0x20c8   :  { %3368 = vmatpush3.bf16.msra.mxu0 %v2915_v19  ;;  %v2552_v10 = vpop.f32.mrf.mxu0  ;;  %v2497_v19 = vshrl.u32 %v2496_v14, 7 }
0x20c9   :  { %3369 = vmatprep.subr.bf16.mxu0 %v2922_v21  ;;  %3350 = vmatpush3.bf16.msra.mxu1 %v2897_v25 }
0x20ca   :  { %3351 = vmatprep.subr.bf16.mxu1 %v2904_v61  ;;  %v2554_v11 = vpop.f32.mrf.mxu0  ;;  %v2498_v23 = vsub.s32 0, %v2497_v19  ;;  %v2502_v24 = vsub.s32 1, %v2497_v19  ;;  %v2510_v61 = vsub.s32 3, %v2497_v19  ;;  %v2506_v12 = vsub.s32 2, %v2497_v19 }
0x20cc   :  { %3370 = vmatpush3.bf16.msra.mxu0 %v2914_v15  ;;  %v2556_v18 = vpop.f32.mrf.mxu0  ;;  %v2499_v17 = vrot.slane %v2494_v58, %v2498_v23  ;;  %v2503_v26 = vrot.slane %v2494_v58, %v2502_v24  ;;  %v2511_v36 = vrot.slane %v2494_v58, %v2510_v61  ;;  %v2507_v34 = vrot.slane %v2494_v58, %v2506_v12 }
0x20cd   :  { %3371 = vmatprep.subr.bf16.mxu0 %v2921_v27  ;;  %3352 = vmatpush3.bf16.msra.mxu1 %v2896_v32 }
0x20ce   :  { %3353 = vmatprep.subr.bf16.mxu1 %v2903_v55  ;;  %v2593_v21 = vpop.f32.mrf.mxu0  ;;  %v2551_v27 = vadd.f32 %v2550_v9, %v2499_v17  ;;  %v2553_v28 = vadd.f32 %v2552_v10, %v2503_v26  ;;  %v2555_v32 = vadd.f32 %v2554_v11, %v2499_v17  ;;  %v2557_v33 = vadd.f32 %v2556_v18, %v2503_v26 }
0x20cf   :  { %v2594_v55 = vadd.f32 %v2593_v21, %v2507_v34 }
0x20d0   :  { %3372 = vmatpush3.bf16.msra.mxu0 %v2913_v37  ;;  %v2595_v25 = vpop.f32.mrf.mxu0  ;;  %v2612_v42 = vmul.f32 0.70710677, %v2553_v28  ;;  %v2615_v44 = vmul.f32 0.70710677, %v2555_v32  ;;  %v2616_v47 = vmul.f32 0.70710677, %v2557_v33 }
0x20d1   :  { %3373 = vmatprep.subr.bf16.mxu0 %v2920_v40  ;;  %3354 = vmatpush3.bf16.msra.mxu1 %v2895_v22  ;;  %v2611_v40 = vmul.f32 0.70710677, %v2551_v27  ;;  %v2596_v41 = vadd.f32 %v2595_v25, %v2511_v36  ;;  %v2606_v60 = vmul.f32 0.5, %v2555_v32  ;;  %v2603_v2 = vmul.f32 0.5, %v2553_v28 }
0x20d2   :  { %3355 = vmatprep.subr.bf16.mxu1 %v2902_v53  ;;  %v2597_v15 = vpop.f32.mrf.mxu0  ;;  %v2602_v6 = vmul.f32 0.5, %v2551_v27 }
0x20d3   :  { %3749 = verf.f32 %v2611_v40  ;;  %v2614_v48 = vmul.f32 0.70710677, %v2596_v41 }
0x20d4   :  { %3374 = vmatpush3.bf16.msra.mxu0 %v2912_v43  ;;  %v2599_v37 = vpop.f32.mrf.mxu0  ;;  %v2598_v43 = vadd.f32 %v2597_v15, %v2507_v34  ;;  %3751 = verf.f32 %v2612_v42  ;;  %v3089_v42 = vld [vmem:[%s4835_s21 + $0x18] sm:$0xff] }
0x20d5   :  { %3375 = vmatprep.subr.bf16.mxu0 %v2919_v20  ;;  %3356 = vmatpush3.bf16.msra.mxu1 %v2894_v38  ;;  %v2600_v45 = vadd.f32 %v2599_v37, %v2511_v36  ;;  %3753 = verf.f32 %v2615_v44  ;;  %v2613_v20 = vmul.f32 0.70710677, %v2594_v55  ;;  %v3086_v44 = vld [vmem:[%s4835_s21] sm:$0xff] }
0x20d6   :  { %3357 = vmatprep.subr.bf16.mxu1 %v2901_v39  ;;  %v2617_v13 = vmul.f32 0.70710677, %v2598_v43  ;;  %3755 = verf.f32 %v2616_v47  ;;  %v2608_v62 = vmul.f32 0.5, %v2598_v43 }
0x20d7   :  { %v2618_v16 = vmul.f32 0.70710677, %v2600_v45  ;;  %3757 = verf.f32 %v2614_v48  ;;  %v2609_v5 = vmul.f32 0.5, %v2600_v45  ;;  %v3087_v45 = vld [vmem:[%s4835_s21 + $0x8] sm:$0xff] }
0x20d8   :  { %3376 = vmatpush3.bf16.msra.mxu0 %v2911_v7  ;;  %3759 = verf.f32 %v2617_v13  ;;  %v3091_v47 = vpack.c.bf16 %v3087_v45, %v3086_v44 }
0x20d9   :  { %3377 = vmatprep.subr.bf16.mxu0 %v2918_v46  ;;  %3358 = vmatpush3.bf16.msra.mxu1 %v2893_v29  ;;  %3761 = verf.f32 %v2618_v16  ;;  %v2605_v29 = vmul.f32 0.5, %v2596_v41  ;;  %v3088_v41 = vld [vmem:[%s4835_s21 + $0x10] sm:$0xff] }
0x20da   :  { %3619 = vmatprep.subr.bf16.mxu1 %v3789_v3  ;;  %3763 = verf.f32 %v2613_v20  ;;  %v3092_v43 = vpack.c.bf16 %v3089_v42, %v3088_v41 }
0x20dc   :  { %3378 = vmatpush3.bf16.msra.mxu0 %v2910_v59 }
0x20dd   :  { %3379 = vmatprep.subr.bf16.mxu0 %v2917_v4  ;;  %v2607_v4 = vmul.f32 0.5, %v2557_v33 }
0x20e0   :  { %3380 = vmatpush3.bf16.msra.mxu0 %v2909_v30  ;;  %v3750_v22 = vpop.eup %3749  ;;  %v2604_v30 = vmul.f32 0.5, %v2594_v55 }
0x20e1   :  { %v3752_v49 = vpop.eup %3751  ;;  %v2627_v63 = vadd.f32 1.0, %v3750_v22 }
0x20e2   :  { %v3754_v50 = vpop.eup %3753  ;;  %v2628_v38 = vadd.f32 1.0, %v3752_v49 }
0x20e3   :  { %v3756_v7 = vpop.eup %3755  ;;  %v2631_v56 = vadd.f32 1.0, %v3754_v50  ;;  %v2635_v58 = vmul.f32 %v2627_v63, %v2602_v6 }
0x20e4   :  { %v3758_v51 = vpop.eup %3757  ;;  %v2632_v57 = vadd.f32 1.0, %v3756_v7  ;;  %v2636_v18 = vmul.f32 %v2628_v38, %v2603_v2 }
0x20e5   :  { %v3760_v52 = vpop.eup %3759  ;;  %v2630_v31 = vadd.f32 1.0, %v3758_v51  ;;  %v2639_v9 = vmul.f32 %v2631_v56, %v2606_v60 }
0x20e6   :  { %v3762_v8 = vpop.eup %3761  ;;  %v2633_v46 = vadd.f32 1.0, %v3760_v52  ;;  %v2640_v21 = vmul.f32 %v2632_v57, %v2607_v4 }
0x20e7   :  { %v3764_v53 = vpop.eup %3763  ;;  %v2634_v59 = vadd.f32 1.0, %v3762_v8  ;;  %v2638_v19 = vmul.f32 %v2630_v31, %v2605_v29  ;;  %v3257_v31 = vld [vmem:[%s4836_s22] ss:$0 sm:$0xff] }
0x20e8   :  { %v2629_v39 = vadd.f32 1.0, %v3764_v53  ;;  %v2641_v11 = vmul.f32 %v2633_v46, %v2608_v62 }
0x20e9   :  { %v2642_v23 = vmul.f32 %v2634_v59, %v2609_v5 }
0x20ea   :  { %v2637_v24 = vmul.f32 %v2629_v39, %v2604_v30 }
0x217b   :  { %v2729_v35 = vpop.f32.mrf.mxu0  ;;  %v2806_v54 = vpop.f32.mrf.mxu1 }
0x217c   :  { %v2817_v27 = vmul.f32 %v2729_v35, %v2635_v58  ;;  %v2819_v32 = vmul.f32 %v2806_v54, %v2637_v24 }
0x217d   :  { %v2731_v0 = vpop.f32.mrf.mxu0  ;;  %v2808_v1 = vpop.f32.mrf.mxu1 }
0x217e   :  { %v2818_v12 = vmul.f32 %v2731_v0, %v2636_v18  ;;  %v2820_v15 = vmul.f32 %v2808_v1, %v2638_v19 }
0x217f   :  { %v2735_v10 = vpop.f32.mrf.mxu0  ;;  %v2812_v14 = vpop.f32.mrf.mxu1 }
0x2180   :  { %v2821_v25 = vmul.f32 %v2735_v10, %v2639_v9  ;;  %v2823_v17 = vmul.f32 %v2812_v14, %v2641_v11 }
0x2181   :  { %v2737_v61 = vpop.f32.mrf.mxu0  ;;  %v2814_v26 = vpop.f32.mrf.mxu1 }
0x2182   :  { %v2822_v36 = vmul.f32 %v2737_v61, %v2640_v21  ;;  %v2824_v28 = vmul.f32 %v2814_v26, %v2642_v23  ;;  %v2889_v37 = vpack.c.bf16 %v2821_v25, %v2817_v27  ;;  %v2891_v40 = vpack.c.bf16 %v2823_v17, %v2819_v32 }
0x2183   :  { %v3618_v55 = vpop.f32.mrf.mxu0 }
0x2184   :  { %v2890_v33 = vpack.c.bf16 %v2822_v36, %v2818_v12  ;;  %v2892_v34 = vpack.c.bf16 %v2824_v28, %v2820_v15 }
0x2185   :  { %v2995_v48 = vpop.f32.mrf.mxu0 }
0x2186   :  { %3036 = vmatprep.mubr.bf16.mxu1 %v2890_v33  ;;  %3077 = vmatprep.mubr.bf16.mxu0 %v2892_v34 }
0x2187   :  { %3037 = vmatmul.mubr.bf16.vlgmr.msra.gmra.mxu1 %v2889_v37  ;;  %3078 = vmatmul.mubr.bf16.vlgmr.msra.gmra.mxu0 %v2891_v40 }
0x2188   :  { %3623 = vmatprep.mubr.msk.bf16.mxu1 %vm3790_vm0, %v3789_v3  ;;  %3620 = vmatpush3.bf16.msra.mxu1 %v3092_v43 }
0x2189   :  { %3621 = vmatprep.subr.bf16.mxu1 %v3789_v3 }
0x218c   :  { %3622 = vmatpush3.bf16.msra.mxu1 %v3091_v47 }
0x2247   :  { %v3359_v13 = vpop.f32.mrf.mxu1  ;;  %v3381_v16 = vpop.f32.mrf.mxu0 }
0x2249   :  { %v3360_v20 = vpop.f32.mrf.mxu1  ;;  %v3382_v22 = vpop.f32.mrf.mxu0 }
0x224a   :  { %v3361_v49 = vadd.f32 %v3360_v20, %v3359_v13  ;;  %v3383_v53 = vadd.f32 %v3382_v22, %v3381_v16 }
0x224b   :  { %v3362_v50 = vpop.f32.mrf.mxu1  ;;  %v3384_v7 = vpop.f32.mrf.mxu0 }
0x224c   :  { %v3039_v52 = vadd.f32 %v3361_v49, %v2995_v48 }
0x224d   :  { %v3363_v3 = vpop.f32.mrf.mxu1  ;;  %v3385_v51 = vpop.f32.mrf.mxu0 }
0x224e   :  { %v3364_v8 = vadd.f32 %v3363_v3, %v3362_v50  ;;  %v3386_v54 = vadd.f32 %v3385_v51, %v3384_v7  ;;  %v3080_v56 = vadd.f32 %v3383_v53, %v3039_v52 }
0x2250   :  { %v3042_v35 = vadd.f32 %v3618_v55, %v3364_v8 }
0x2252   :  { %v3083_v46 = vadd.f32 %v3386_v54, %v3042_v35 }
0x2254   :  { %v3090_v38 = vpack.c.bf16 %v3083_v46, %v3080_v56 }
0x2256   :  { %3624 = vmatmul.mubr.msk.bf16.vlgmr.msra.gmra.mxu1 %vm94_vm1, %v3090_v38 }
0x2316   :  { %v3137_v57 = vpop.f32.mrf.mxu1 }
0x2317   :  { %v3138_v59 = vadd.f32 %v3257_v31, %v3137_v57 }
0x2318   :  { %v3625_v60 = vpop.f32.mrf.mxu1 }
0x2319   :  { %3144 = vst.msk [vmem:[#allocation2] sm:$0xff] %vm94_vm1, %v3138_v59 }
0x231a   :  { %v3140_v62 = vpop.f32.mrf.mxu1 }
0x231b   :  { %v3141_v63 = vadd.f32 %v3257_v31, %v3140_v62 }
0x231c   :  { %v3626_v39 = vpop.f32.mrf.mxu1 }
0x231d   :  { %3145 = vst.msk [vmem:[#allocation2 + $0x8] sm:$0xff] %vm94_vm1, %v3141_v63 }
0x231e   :  { %3778 = shalt.err (!%p3775_p4)
}
0x231f   :  { %s3804_s22 = smov 128   ;;  %s3805_s30 = smov 8  }
0x2320   :  { %3157 = dma.vmem_to_hbm [thread:$0]  %s3152_s14, 256, %s4837_s23, [#allocation3], %s3804_s22, %s3804_s22, %s3805_s30  }
0x2321   :  { %3787 = dma.done.wait [#allocation3], 256  }
0x2322   :  { %3788 = vsyncadd [#allocation3], 4294967040 }
0x2323   :  { %3161 = vsyncpa [#allocation3], 1 }

</bundles_post_ra>
